<compile_context>
chip_gen: v7x
topology: tpu7x:2x2x1
jax: 0.10.0
libtpu: 0.0.40
codegen_flags: <defaults>
</compile_context>

<pallas_src>
import math

import jax
import jax.numpy as jnp
from jax.experimental import pallas as pl
from jax.experimental.pallas import tpu as pltpu

_SHIFT = math.log(2.0)  # same constant as torch.log(torch.tensor(2.0)).item()

_LANE = 128
_TARGET_BLOCK_BYTES = 4 << 20      # ~4 MiB per block per buffer
_VMEM_LIMIT_BYTES = 32 << 20       # covers 4 x 4 MiB double-buffers everywhere
_MIN_PALLAS_BYTES = 256 * 1024     # below this, fused XLA is faster


def _shifted_softplus_kernel(x_ref, o_ref):
    # Numerically stable softplus in f32: max(x, 0) + log1p(exp(-|x|)).
    x = x_ref[...].astype(jnp.float32)
    sp = jnp.maximum(x, 0.0) + jnp.log1p(jnp.exp(-jnp.abs(x)))
    o_ref[...] = (sp - _SHIFT).astype(o_ref.dtype)


def _shifted_softplus_jnp(x: jnp.ndarray) -> jnp.ndarray:
    """Plain-JAX fallback with the same numerics as the kernel."""
    xf = x.astype(jnp.float32)
    sp = jnp.maximum(xf, 0.0) + jnp.log1p(jnp.exp(-jnp.abs(xf)))
    return (sp - _SHIFT).astype(x.dtype)


def _run_pallas_2d(x2d: jnp.ndarray, block_rows=None, donate_input=False):
    """Run the kernel on a lane-dense (rows, 128) slab."""
    rows, _ = x2d.shape
    dtype = x2d.dtype
    itemsize = jnp.dtype(dtype).itemsize
    # Packed sublane tile: 8 for f32, 16 for bf16/fp16, 32 for 1-byte dtypes.
    sublane = 8 * max(1, 4 // itemsize)

    if block_rows is None:
        block_rows = (_TARGET_BLOCK_BYTES // (_LANE * itemsize)) // sublane * sublane

    if block_rows >= rows:
        # Single block equal to the full row extent (always a legal block shape).
        block_rows = rows
    else:
        # Multi-block: keep block_rows a multiple of the packed sublane count.
        block_rows = max(sublane, (block_rows // sublane) * sublane)
        nblocks = pl.cdiv(rows, block_rows)
        if nblocks > 1 and nblocks % 2 == 1:
            # v7x: make the parallel grid split evenly across 2 TensorCores.
            br = pl.cdiv(pl.cdiv(rows, nblocks + 1), sublane) * sublane
            br = max(sublane, min(br, rows))
            if br < rows and pl.cdiv(rows, br) % 2 == 0:
                block_rows = br

    grid = (pl.cdiv(rows, block_rows),)
    total = rows * _LANE
    cost = pl.CostEstimate(
        flops=5 * total,
        transcendentals=2 * total,
        bytes_accessed=2 * total * itemsize,
    )

    return pl.pallas_call(
        _shifted_softplus_kernel,
        out_shape=jax.ShapeDtypeStruct((rows, _LANE), dtype),
        grid_spec=pltpu.PrefetchScalarGridSpec(
            num_scalar_prefetch=0,
            grid=grid,
            in_specs=[pl.BlockSpec((block_rows, _LANE), lambda i: (i, 0))],
            out_specs=pl.BlockSpec((block_rows, _LANE), lambda i: (i, 0)),
        ),
        compiler_params=pltpu.CompilerParams(
            dimension_semantics=("parallel",),
            vmem_limit_bytes=_VMEM_LIMIT_BYTES,
        ),
        cost_estimate=cost,
        input_output_aliases=({0: 0} if donate_input else {}),
    )(x2d)


def shifted_softplus(x: jnp.ndarray, *, block_rows=None,
                     donate_input: bool = False) -> jnp.ndarray:
    """Applies ShiftedSoftplus (softplus(x) - log 2) elementwise.

    Accepts any shape / float dtype; returns same shape & dtype.
    """
    orig_shape = x.shape
    total = x.size
    if total == 0:
        return x
    itemsize = jnp.dtype(x.dtype).itemsize

    # Tiny inputs: a standalone pallas_call is pure overhead; let XLA fuse.
    if total * itemsize < _MIN_PALLAS_BYTES:
        return _shifted_softplus_jnp(x)

    if total % _LANE == 0:
        # Fast path: zero extra HBM traffic (no pad, no slice). Pallas masks a
        # partial last block along the row grid automatically.
        rows = total // _LANE
        out2d = _run_pallas_2d(x.reshape(rows, _LANE), block_rows, donate_input)
        return out2d.reshape(orig_shape)

    # Ragged path (total not 128-aligned, uncommon): kernel on the aligned
    # prefix, plain jnp on the <128-element tail. No whole-array pad/slice.
    x_flat = x.reshape(-1)
    aligned = (total // _LANE) * _LANE
    out_prefix = _run_pallas_2d(
        x_flat[:aligned].reshape(aligned // _LANE, _LANE), block_rows, donate_input
    ).reshape(-1)
    out_tail = _shifted_softplus_jnp(x_flat[aligned:])
    return jnp.concatenate([out_prefix, out_tail]).reshape(orig_shape)


if __name__ == "__main__":
    key = jax.random.PRNGKey(0)
    k1, k2, k3, k4 = jax.random.split(key, 4)

    def ref(x):
        return (jax.nn.softplus(x.astype(jnp.float32)) - _SHIFT).astype(x.dtype)

    # 1) Small NCHW-like input (small-input bypass path).
    x1 = jax.random.normal(k1, (2, 4, 16, 16), dtype=jnp.float32) * 3.0
    o1 = jax.block_until_ready(shifted_softplus(x1))
    assert o1.shape == x1.shape and o1.dtype == x1.dtype
    assert jnp.max(jnp.abs(o1 - ref(x1))) < 1e-5

    # 2) Tiny ragged input (bypass path).
    x2 = jax.random.normal(k2, (3, 7, 5), dtype=jnp.float32)
    o2 = jax.block_until_ready(shifted_softplus(x2))
    assert o2.shape == x2.shape and o2.dtype == x2.dtype
    assert jnp.max(jnp.abs(o2 - ref(x2))) < 1e-5

    # 3) Pallas fast path: 128-aligned element count, single block.
    x3 = jax.random.normal(k3, (2, 4, 128, 128), dtype=jnp.float32) * 4.0
    o3 = jax.block_until_ready(shifted_softplus(x3))
    assert o3.shape == x3.shape and o3.dtype == x3.dtype
    assert jnp.max(jnp.abs(o3 - ref(x3))) < 1e-5

    # 4) Pallas path with a masked partial last block and the even-grid
    #    (2-TensorCore) block-size heuristic exercised via a small override.
    x4 = jax.random.normal(k4, (520, 128), dtype=jnp.float32) * 4.0
    o4 = jax.block_until_ready(shifted_softplus(x4, block_rows=128))
    assert o4.shape == x4.shape and o4.dtype == x4.dtype
    assert jnp.max(jnp.abs(o4 - ref(x4))) < 1e-5

    print("KERNEL_OK")
</pallas_src>

<mosaic_0001>
module attributes {stable_mosaic.version = 11 : i64} {
  func.func @_shifted_softplus_kernel(%arg0: i32, %arg1: memref<1024x128xf32, #tpu.memory_space<vmem>>, %arg2: memref<1024x128xf32, #tpu.memory_space<vmem>>) attributes {dimension_semantics = [#tpu.dimension_semantics<parallel>], iteration_bounds = array<i64: 1>, scalar_prefetch = 0 : i64, scratch_operands = 0 : i64, tpu.core_type = #tpu.core_type<tc>, window_params = [{transform_indices = @transform_0, window_bounds = array<i64: 1024, 128>}, {transform_indices = @transform_1, window_bounds = array<i64: 1024, 128>}]} {
    %c0 = arith.constant 0 : index
    %c0_0 = arith.constant 0 : index
    %0 = vector.load %arg1[%c0, %c0_0] : memref<1024x128xf32, #tpu.memory_space<vmem>>, vector<1024x128xf32>
    %cst = arith.constant 0.000000e+00 : f32
    %1 = vector.broadcast %cst : f32 to vector<1024x128xf32>
    %2 = arith.maximumf %0, %1 : vector<1024x128xf32>
    %3 = math.absf %0 : vector<1024x128xf32>
    %cst_1 = arith.constant 0.000000e+00 : f32
    %4 = vector.broadcast %cst_1 : f32 to vector<1024x128xf32>
    %5 = arith.subf %4, %3 : vector<1024x128xf32>
    %6 = math.exp %5 : vector<1024x128xf32>
    %7 = math.log1p %6 : vector<1024x128xf32>
    %8 = arith.addf %2, %7 : vector<1024x128xf32>
    %cst_2 = arith.constant 0.693147182 : f32
    %9 = vector.broadcast %cst_2 : f32 to vector<1024x128xf32>
    %10 = arith.subf %8, %9 : vector<1024x128xf32>
    %c0_3 = arith.constant 0 : index
    %c0_4 = arith.constant 0 : index
    %11 = vector.load %arg2[%c0_3, %c0_4] : memref<1024x128xf32, #tpu.memory_space<vmem>>, vector<1024x128xf32>
    tpu.vector_store %arg2[%c0_3, %c0_4], %10 {strides = array<i32>} : memref<1024x128xf32, #tpu.memory_space<vmem>>, vector<1024x128xf32>,
    return
  }
  func.func @transform_0(%arg0: i32) -> (i32, i32) {
    %c0_i32 = arith.constant 0 : i32
    %c0_i32_0 = arith.constant 0 : i32
    return %arg0, %c0_i32 : i32, i32
  }
  func.func @transform_1(%arg0: i32) -> (i32, i32) {
    %c0_i32 = arith.constant 0 : i32
    %c0_i32_0 = arith.constant 0 : i32
    return %arg0, %c0_i32 : i32, i32
  }
}

</mosaic_0001>

<bundles_post_ra>
// kernel: tpu_custom_call.1
= control target key start
LH: loop header
LB: loop body
LE: loop exit
PB: predicated region body
PF: predicated region fallthrough
CT: control target
= control target key end

     0   :  { %6 = vsyncpa [#allocation3], 0  ;;  %s4795_s0 = inlined_call_operand.hbm [shape: f32[1024,128], index: 0, kind: input, shape index: {}]   ;;  %s4796_s1 = inlined_call_operand.hbm [shape: f32[1024,128], index: 1, kind: output, shape index: {}]  }
   0x1   :  { %7 = vsyncpa [#allocation4], 0  ;;  %s3036_s6 = smov [#allocation2]   ;;  %s2988_s10 = scalar_lea.hbm %s4795_s0, 16384 }
   0x2   :  { %s13_s7 = sshll.u32 %s3036_s6, 4  ;;  %p2989_p0 = scmp.ne.s32.totalorder %s4795_s0, %s2988_s10  ;;  %s14_s7 = int_to_ptr.vmem [resolvable:$true] %s13_s7 }
   0x3   :  { %p2992_p1 = scmp.lt.u32.totalorder %s2988_s10, %s4795_s0 }
   0x5   :  { %p2994_p2 = pnand %p2992_p1, %p2989_p0 }
   0x7   :  { %2997 = shalt.err (!%p2994_p2)
}
   0x8   :  { %s2998_s15 = scalar_lea.vmem %s14_s7, 16384  ;;  %p3003_p4 = scmp.lt.s32.totalorder %s14_s7, %s14_s7 }
   0x9   :  { %p2999_p3 = scmp.ne.s32.totalorder %s14_s7, %s2998_s15  ;;  %p3004_p5 = scmp.lt.s32.totalorder %s2998_s15, %s2998_s15 }
   0xb   :  { %p3005_p6 = por %p3004_p5, %p3003_p4 }
   0xd   :  { %p3006_p7 = pnand %p3005_p6, %p2999_p3 }
   0xf   :  { %3009 = shalt.err (!%p3006_p7)
}
  0x10   :  { %s3037_s16 = smov 128   ;;  %s3038_s17 = smov 8  }
  0x11   :  { %19 = dma.hbm_to_vmem [thread:$0]  %s4795_s0, 16384, %s14_s7, [#allocation3], %s3037_s16, %s3037_s16, %s3038_s17  }
  0x12   :  { %3032 = dma.done.wait [#allocation3], 16384  }
  0x13   :  { %3033 = vsyncadd [#allocation3], 4294950912  ;;  %v3065_v0 = vld [vmem:[#allocation2] sm:$0xff]  ;;  %v3067_v1 = vld [vmem:[#allocation2 + $0x8] sm:$0xff]  ;;  %s3039_s0 = smov [#allocation5]  }
  0x14   :  { %v3069_v2 = vld [vmem:[#allocation2 + $0x10] sm:$0xff]  ;;  %v279_v3 = vand.u32 2147483647, %v3065_v0  ;;  %v280_v4 = vand.u32 2147483647, %v3067_v1  ;;  %v3074_v6 = vld [vmem:[#allocation2 + $0x18] sm:$0xff] }
  0x15   :  { %v281_v5 = vand.u32 2147483647, %v3069_v2  ;;  %v3076_v7 = vld [vmem:[#allocation2 + $0x20] sm:$0xff]  ;;  %v282_v10 = vand.u32 2147483647, %v3074_v6  ;;  %v3079_v11 = vld [vmem:[#allocation2 + $0x28] sm:$0xff] }
  0x16   :  { %v407_v8 = vsub.f32 0.0, %v279_v3  ;;  %v408_v9 = vsub.f32 0.0, %v280_v4  ;;  %v283_v13 = vand.u32 2147483647, %v3076_v7  ;;  %v3082_v14 = vld [vmem:[#allocation2 + $0x30] sm:$0xff]  ;;  %v3084_v15 = vld [vmem:[#allocation2 + $0x38] sm:$0xff] }
  0x17   :  { %v409_v12 = vsub.f32 0.0, %v281_v5  ;;  %v410_v18 = vsub.f32 0.0, %v282_v10  ;;  %v284_v21 = vand.u32 2147483647, %v3079_v11  ;;  %v285_v23 = vand.u32 2147483647, %v3082_v14 }
  0x18   :  { %v535_v16 = vmul.f32 1.442695, %v407_v8  ;;  %v537_v17 = vmul.f32 1.442695, %v408_v9  ;;  %v411_v20 = vsub.f32 0.0, %v283_v13  ;;  %v151_v25 = vmax.f32 %v3065_v0, 0.0 }
  0x19   :  { %v539_v19 = vmul.f32 1.442695, %v409_v12  ;;  %v541_v22 = vmul.f32 1.442695, %v410_v18  ;;  %v286_v24 = vand.u32 2147483647, %v3084_v15 }
  0x1a   :  { %2476 = vpow2.f32 %v535_v16  ;;  %v543_v26 = vmul.f32 1.442695, %v411_v20  ;;  %v412_v27 = vsub.f32 0.0, %v284_v21  ;;  %v3090_v28 = vld [vmem:[#allocation2 + $0x40] sm:$0xff]  ;;  %v3092_v29 = vld [vmem:[#allocation2 + $0x48] sm:$0xff]  ;;  %v152_v30 = vmax.f32 %v3067_v1, 0.0 }
  0x1b   :  { %2478 = vpow2.f32 %v537_v17  ;;  %v413_v31 = vsub.f32 0.0, %v285_v23  ;;  %v414_v32 = vsub.f32 0.0, %v286_v24  ;;  %v3095_v33 = vld [vmem:[#allocation2 + $0x50] sm:$0xff]  ;;  %v153_v34 = vmax.f32 %v3069_v2, 0.0  ;;  %v3099_v37 = vld [vmem:[#allocation2 + $0x58] sm:$0xff]  ;;  %v3107_v48 = vld [vmem:[#allocation2 + $0x60] sm:$0xff] }
  0x1c   :  { %2480 = vpow2.f32 %v539_v19  ;;  %v545_v35 = vmul.f32 1.442695, %v412_v27  ;;  %v287_v36 = vand.u32 2147483647, %v3090_v28  ;;  %v288_v40 = vand.u32 2147483647, %v3092_v29 }
  0x1d   :  { %2482 = vpow2.f32 %v541_v22  ;;  %v547_v38 = vmul.f32 1.442695, %v413_v31  ;;  %v549_v39 = vmul.f32 1.442695, %v414_v32  ;;  %v154_v41 = vmax.f32 %v3074_v6, 0.0  ;;  %v3113_v58 = vld [vmem:[#allocation2 + $0x68] sm:$0xff] }
  0x1e   :  { %2484 = vpow2.f32 %v543_v26  ;;  %v155_v42 = vmax.f32 %v3076_v7, 0.0  ;;  %v415_v43 = vsub.f32 0.0, %v287_v36  ;;  %v289_v44 = vand.u32 2147483647, %v3095_v33  ;;  %v3118_v13 = vld [vmem:[#allocation2 + $0x70] sm:$0xff]  ;;  %s2332_s20 = sshll.u32 %s3039_s0, 4  ;;  %s2333_s20 = int_to_ptr.vmem [resolvable:$true] %s2332_s20 }
  0x1f   :  { %v156_v45 = vmax.f32 %v3079_v11, 0.0  ;;  %2486 = vpow2.f32 %v545_v35  ;;  %v416_v46 = vsub.f32 0.0, %v288_v40  ;;  %v290_v47 = vand.u32 2147483647, %v3099_v37  ;;  %s3010_s21 = scalar_lea.vmem %s2333_s20, 16384  ;;  %p3015_p9 = scmp.lt.s32.totalorder %s2333_s20, %s2333_s20 }
  0x20   :  { %v157_v49 = vmax.f32 %v3082_v14, 0.0  ;;  %2488 = vpow2.f32 %v547_v38  ;;  %v551_v50 = vmul.f32 1.442695, %v415_v43  ;;  %v417_v51 = vsub.f32 0.0, %v289_v44  ;;  %p3011_p8 = scmp.ne.s32.totalorder %s2333_s20, %s3010_s21  ;;  %p3016_p10 = scmp.lt.s32.totalorder %s3010_s21, %s3010_s21 }
  0x21   :  { %v158_v52 = vmax.f32 %v3084_v15, 0.0  ;;  %2490 = vpow2.f32 %v549_v39  ;;  %v553_v53 = vmul.f32 1.442695, %v416_v46  ;;  %v418_v54 = vsub.f32 0.0, %v290_v47 }
  0x22   :  { %v159_v55 = vmax.f32 %v3090_v28, 0.0  ;;  %2492 = vpow2.f32 %v551_v50  ;;  %v555_v56 = vmul.f32 1.442695, %v417_v51  ;;  %v291_v57 = vand.u32 2147483647, %v3107_v48  ;;  %p3017_p11 = por %p3016_p10, %p3015_p9 }
  0x23   :  { %2494 = vpow2.f32 %v553_v53  ;;  %v557_v62 = vmul.f32 1.442695, %v418_v54  ;;  %v292_v12 = vand.u32 2147483647, %v3113_v58  ;;  %v293_v27 = vand.u32 2147483647, %v3118_v13 }
  0x24   :  { %v2477_v59 = vpop.eup %2476  ;;  %2496 = vpow2.f32 %v555_v56  ;;  %v3120_v19 = vsub.f32 0.0, %v291_v57  ;;  %p3018_p12 = pnand %p3017_p11, %p3011_p8 }
  0x25   :  { %v2479_v63 = vpop.eup %2478  ;;  %v791_v3 = vadd.f32 1.0, %v2477_v59  ;;  %v794_v4 = vmul.f32 -0.5, %v2477_v59  ;;  %v797_v5 = vand.u32 2147483647, %v2477_v59  ;;  %2498 = vpow2.f32 %v557_v62 }
  0x26   :  { %v2481_v8 = vpop.eup %2480  ;;  %v800_v9 = vadd.f32 1.0, %v2479_v63  ;;  %v803_v10 = vmul.f32 -0.5, %v2479_v63  ;;  %v806_v17 = vand.u32 2147483647, %v2479_v63  ;;  %v421_v28 = vsub.f32 0.0, %v293_v27 }
  0x27   :  { %v2483_v16 = vpop.eup %2482  ;;  %2500 = vlog2.f32 %v791_v3  ;;  %v809_v18 = vadd.f32 1.0, %v2481_v8  ;;  %v795_v21 = vadd.f32 1.0, %v794_v4  ;;  %v812_v23 = vmul.f32 -0.5, %v2481_v8 }
  0x28   :  { %v2485_v20 = vpop.eup %2484  ;;  %2502 = vlog2.f32 %v800_v9  ;;  %v804_v22 = vadd.f32 1.0, %v803_v10  ;;  %vm3122_vm0 = vcmp.lt.f32.partialorder %v797_v5, 0.0004427343  ;;  %v818_v26 = vadd.f32 1.0, %v2483_v16 }
  0x29   :  { %2504 = vlog2.f32 %v809_v18  ;;  %v2487_v31 = vpop.eup %2486  ;;  %v813_v32 = vadd.f32 1.0, %v812_v23  ;;  %v815_v35 = vand.u32 2147483647, %v2481_v8  ;;  %v821_v36 = vmul.f32 -0.5, %v2483_v16 }
  0x2a   :  { %v824_v38 = vand.u32 2147483647, %v2483_v16  ;;  %v2489_v39 = vpop.eup %2488  ;;  %vm3127_vm1 = vcmp.lt.f32.partialorder %v806_v17, 0.0004427343  ;;  %2506 = vlog2.f32 %v818_v26  ;;  %v827_v43 = vadd.f32 1.0, %v2485_v20 }
  0x2b   :  { %v830_v44 = vmul.f32 -0.5, %v2485_v20  ;;  %v2491_v46 = vpop.eup %2490  ;;  %v796_v47 = vmul.f32 %v2477_v59, %v795_v21  ;;  %v805_v50 = vmul.f32 %v2479_v63, %v804_v22  ;;  %v822_v51 = vadd.f32 1.0, %v821_v36 }
  0x2c   :  { %v833_v53 = vand.u32 2147483647, %v2485_v20  ;;  %v3131_v54 = vpop.eup %2492  ;;  %2508 = vlog2.f32 %v827_v43  ;;  %v836_v57 = vadd.f32 1.0, %v2487_v31  ;;  %v839_v62 = vmul.f32 -0.5, %v2487_v31 }
  0x2d   :  { %v831_v56 = vadd.f32 1.0, %v830_v44  ;;  %v3133_v3 = vpop.eup %2494  ;;  %v814_v4 = vmul.f32 %v2481_v8, %v813_v32  ;;  %vm3135_vm2 = vcmp.lt.f32.partialorder %v815_v35, 0.0004427343  ;;  %vm3139_vm3 = vcmp.lt.f32.partialorder %v824_v38, 0.0004427343 }
  0x2e   :  { %v845_v59 = vadd.f32 1.0, %v2489_v39  ;;  %v3143_v63 = vpop.eup %2496  ;;  %2510 = vlog2.f32 %v836_v57  ;;  %v840_v10 = vadd.f32 1.0, %v839_v62  ;;  %v842_v17 = vand.u32 2147483647, %v2487_v31 }
  0x2f   :  { %v848_v18 = vmul.f32 -0.5, %v2489_v39  ;;  %v3145_v21 = vpop.eup %2498  ;;  %v823_v22 = vmul.f32 %v2483_v16, %v822_v51  ;;  %vm3147_vm4 = vcmp.lt.f32.partialorder %v833_v53, 0.0004427343  ;;  %v854_v23 = vadd.f32 1.0, %v2491_v46 }
  0x30   :  { %2512 = vlog2.f32 %v845_v59  ;;  %v832_v32 = vmul.f32 %v2485_v20, %v831_v56  ;;  %v851_v36 = vand.u32 2147483647, %v2489_v39  ;;  %v857_v38 = vmul.f32 -0.5, %v2491_v46 }
  0x31   :  { %v2501_v26 = vpop.eup %2500  ;;  %v849_v35 = vadd.f32 1.0, %v848_v18  ;;  %2514 = vlog2.f32 %v854_v23  ;;  %v860_v57 = vand.u32 2147483647, %v2491_v46  ;;  %v863_v62 = vadd.f32 1.0, %v3131_v54 }
  0x32   :  { %v2503_v43 = vpop.eup %2502  ;;  %v793_v44 = vmul.f32 0.6931472, %v2501_v26  ;;  %v841_v16 = vmul.f32 %v2487_v31, %v840_v10  ;;  %vm3152_vm5 = vcmp.lt.f32.partialorder %v842_v17, 0.0004427343  ;;  %v858_v53 = vadd.f32 1.0, %v857_v38 }
  0x33   :  { %v2505_v61 = vpop.eup %2504  ;;  %v802_v60 = vmul.f32 0.6931472, %v2503_v43  ;;  %2516 = vlog2.f32 %v863_v62  ;;  %v866_v59 = vmul.f32 -0.5, %v3131_v54  ;;  %v850_v31 = vmul.f32 %v2489_v39, %v849_v35 }
  0x34   :  { %v799_v20 = vsel %vm3122_vm0, %v796_v47, %v793_v44  ;;  %v811_v56 = vmul.f32 0.6931472, %v2505_v61  ;;  %v2507_v18 = vpop.eup %2506  ;;  %vm3163_vm6 = vcmp.lt.f32.partialorder %v851_v36, 0.0004427343  ;;  %vm3171_vm7 = vcmp.lt.f32.partialorder %v860_v57, 0.0004427343 }
  0x35   :  { %v1943_v23 = vadd.f32 %v799_v20, %v151_v25  ;;  %v808_v26 = vsel %vm3127_vm1, %v805_v50, %v802_v60  ;;  %v820_v47 = vmul.f32 0.6931472, %v2507_v18  ;;  %v867_v39 = vadd.f32 1.0, %v866_v59 }
  0x36   :  { %v1944_v24 = vadd.f32 %v808_v26, %v152_v30  ;;  %v817_v61 = vsel %vm3135_vm2, %v814_v4, %v811_v56  ;;  %v2509_v0 = vpop.eup %2508  ;;  %v872_v40 = vadd.f32 1.0, %v3133_v3  ;;  %v859_v5 = vmul.f32 %v2491_v46, %v858_v53 }
  0x37   :  { %v2344_v25 = vadd.f32 -0.6931472, %v1943_v23  ;;  %v1945_v60 = vadd.f32 %v817_v61, %v153_v34  ;;  %v826_v1 = vsel %vm3139_vm3, %v823_v22, %v820_v47  ;;  %v829_v30 = vmul.f32 0.6931472, %v2509_v0  ;;  %v3215_v47 = vld [vmem:[#allocation2 + $0x78] sm:$0xff]  ;;  %v3222_v0 = vld [vmem:[#allocation2 + $0x80] sm:$0xff] }
  0x38   :  { %v2345_v50 = vadd.f32 -0.6931472, %v1944_v24  ;;  %v2511_v4 = vpop.eup %2510  ;;  %v1946_v36 = vadd.f32 %v826_v1, %v154_v41  ;;  %2518 = vlog2.f32 %v872_v40  ;;  %v875_v38 = vmul.f32 -0.5, %v3133_v3 }
  0x39   :  { %2199 = vst [vmem:[#allocation5] sm:$0xff] %v2344_v25  ;;  %v2346_v35 = vadd.f32 -0.6931472, %v1945_v60  ;;  %v835_v34 = vsel %vm3147_vm4, %v832_v32, %v829_v30  ;;  %v838_v43 = vmul.f32 0.6931472, %v2511_v4  ;;  %v881_v22 = vadd.f32 1.0, %v3143_v63 }
  0x3a   :  { %v2513_v2 = vpop.eup %2512  ;;  %2200 = vst [vmem:[#allocation5 + $0x8] sm:$0xff] %v2345_v50  ;;  %v869_v9 = vand.u32 2147483647, %v3131_v54  ;;  %v2347_v46 = vadd.f32 -0.6931472, %v1946_v36  ;;  %v1947_v44 = vadd.f32 %v835_v34, %v155_v42  ;;  %v868_v41 = vmul.f32 %v3131_v54, %v867_v39 }
  0x3b   :  { %2201 = vst [vmem:[#allocation5 + $0x10] sm:$0xff] %v2346_v35  ;;  %v847_v6 = vmul.f32 0.6931472, %v2513_v2  ;;  %v2515_v57 = vpop.eup %2514  ;;  %v844_v62 = vsel %vm3152_vm5, %v841_v16, %v838_v43  ;;  %v876_v53 = vadd.f32 1.0, %v875_v38  ;;  %2520 = vlog2.f32 %v881_v22  ;;  %v3239_v35 = vld [vmem:[#allocation2 + $0x90] sm:$0xff]  ;;  %v3247_v22 = vld [vmem:[#allocation2 + $0x98] sm:$0xff] }
  0x3c   :  { %v884_v8 = vmul.f32 -0.5, %v3143_v63  ;;  %2202 = vst [vmem:[#allocation5 + $0x18] sm:$0xff] %v2347_v46  ;;  %v2348_v32 = vadd.f32 -0.6931472, %v1947_v44  ;;  %v1948_v20 = vadd.f32 %v844_v62, %v156_v45  ;;  %v856_v42 = vmul.f32 0.6931472, %v2515_v57 }
  0x3d   :  { %v853_v7 = vsel %vm3163_vm6, %v850_v31, %v847_v6  ;;  %v2517_v56 = vpop.eup %2516  ;;  %vm3199_vm8 = vcmp.lt.f32.partialorder %v869_v9, 0.0004427343  ;;  %v878_v16 = vand.u32 2147483647, %v3133_v3  ;;  %v887_v59 = vand.u32 2147483647, %v3143_v63 }
  0x3e   :  { %v1949_v54 = vadd.f32 %v853_v7, %v157_v49  ;;  %2203 = vst [vmem:[#allocation5 + $0x20] sm:$0xff] %v2348_v32  ;;  %v2349_v18 = vadd.f32 -0.6931472, %v1948_v20  ;;  %v862_v11 = vsel %vm3171_vm7, %v859_v5, %v856_v42  ;;  %v865_v45 = vmul.f32 0.6931472, %v2517_v56  ;;  %v3257_v56 = vld [vmem:[#allocation2 + $0xa0] sm:$0xff] }
  0x3f   :  { %v890_v23 = vadd.f32 1.0, %v3145_v21  ;;  %v1950_v14 = vadd.f32 %v862_v11, %v158_v52  ;;  %v877_v49 = vmul.f32 %v3133_v3, %v876_v53  ;;  %v162_v31 = vmax.f32 %v3099_v37, 0.0 }
  0x40   :  { %v2350_v26 = vadd.f32 -0.6931472, %v1949_v54  ;;  %2204 = vst [vmem:[#allocation5 + $0x28] sm:$0xff] %v2349_v18  ;;  %v871_v10 = vsel %vm3199_vm8, %v868_v41, %v865_v45  ;;  %v885_v24 = vadd.f32 1.0, %v884_v8  ;;  %v893_v61 = vmul.f32 -0.5, %v3145_v21 }
  0x41   :  { %2522 = vlog2.f32 %v890_v23  ;;  %v2351_v17 = vadd.f32 -0.6931472, %v1950_v14  ;;  %v1951_v15 = vadd.f32 %v871_v10, %v159_v55  ;;  %v559_v52 = vmul.f32 1.442695, %v3120_v19  ;;  %v3235_v55 = vld [vmem:[#allocation2 + $0x88] sm:$0xff] }
  0x42   :  { %2205 = vst [vmem:[#allocation5 + $0x30] sm:$0xff] %v2350_v26  ;;  %v420_v3 = vsub.f32 0.0, %v292_v12  ;;  %v2519_v25 = vpop.eup %2518  ;;  %vm3224_vm9 = vcmp.lt.f32.partialorder %v878_v16, 0.0004427343  ;;  %vm3228_vm10 = vcmp.lt.f32.partialorder %v887_v59, 0.0004427343  ;;  %v886_v1 = vmul.f32 %v3143_v63, %v885_v24 }
  0x43   :  { %v163_v40 = vmax.f32 %v3107_v48, 0.0  ;;  %2206 = vst [vmem:[#allocation5 + $0x38] sm:$0xff] %v2351_v17  ;;  %v2352_v12 = vadd.f32 -0.6931472, %v1951_v15  ;;  %v874_v19 = vmul.f32 0.6931472, %v2519_v25  ;;  %2524 = vpow2.f32 %v559_v52 }
  0x44   :  { %v561_v50 = vmul.f32 1.442695, %v420_v3  ;;  %v894_v30 = vadd.f32 1.0, %v893_v61  ;;  %v563_v5 = vmul.f32 1.442695, %v421_v28  ;;  %v4819_v34 = vmax.f32 %v3092_v29, 0.0 }
  0x45   :  { %v294_v4 = vand.u32 2147483647, %v3215_v47  ;;  %v2521_v36 = vpop.eup %2520  ;;  %2207 = vst [vmem:[#allocation5 + $0x40] sm:$0xff] %v2352_v12  ;;  %v880_v27 = vsel %vm3224_vm9, %v877_v49, %v874_v19  ;;  %v896_v38 = vand.u32 2147483647, %v3145_v21  ;;  %v164_v46 = vmax.f32 %v3113_v58, 0.0 }
  0x46   :  { %2526 = vpow2.f32 %v561_v50  ;;  %v295_v2 = vand.u32 2147483647, %v3222_v0  ;;  %v1952_v43 = vadd.f32 %v880_v27, %v4819_v34  ;;  %v883_v63 = vmul.f32 0.6931472, %v2521_v36  ;;  %v3265_v59 = vld [vmem:[#allocation2 + $0xa8] sm:$0xff]  ;;  %v3328_v58 = vld [vmem:[#allocation2 + $0xb8] sm:$0xff] }
  0x47   :  { %2528 = vpow2.f32 %v563_v5  ;;  %v422_v9 = vsub.f32 0.0, %v294_v4  ;;  %v296_v6 = vand.u32 2147483647, %v3235_v55  ;;  %v297_v41 = vand.u32 2147483647, %v3239_v35  ;;  %v3279_v4 = vld [vmem:[#allocation2 + $0xb0] sm:$0xff] }
  0x48   :  { %v423_v44 = vsub.f32 0.0, %v295_v2  ;;  %v2353_v57 = vadd.f32 -0.6931472, %v1952_v43  ;;  %v889_v62 = vsel %vm3228_vm10, %v886_v1, %v883_v63  ;;  %v895_v53 = vmul.f32 %v3145_v21, %v894_v30 }
  0x49   :  { %v565_v29 = vmul.f32 1.442695, %v422_v9  ;;  %v4820_v8 = vmax.f32 %v3095_v33, 0.0  ;;  %v424_v7 = vsub.f32 0.0, %v296_v6  ;;  %v425_v42 = vsub.f32 0.0, %v297_v41 }
  0x4a   :  { %v567_v20 = vmul.f32 1.442695, %v423_v44  ;;  %2208 = vst [vmem:[#allocation5 + $0x48] sm:$0xff] %v2353_v57  ;;  %vm3259_vm11 = vcmp.lt.f32.partialorder %v896_v38, 0.0004427343  ;;  %v165_v16 = vmax.f32 %v3118_v13, 0.0 }
  0x4b   :  { %v1953_v32 = vadd.f32 %v889_v62, %v4820_v8  ;;  %v2523_v54 = vpop.eup %2522  ;;  %2530 = vpow2.f32 %v565_v29  ;;  %v298_v21 = vand.u32 2147483647, %v3247_v22  ;;  %v569_v11 = vmul.f32 1.442695, %v424_v7 }
  0x4c   :  { %v892_v18 = vmul.f32 0.6931472, %v2523_v54  ;;  %2532 = vpow2.f32 %v567_v20  ;;  %v166_v45 = vmax.f32 %v3215_v47, 0.0  ;;  %v571_v23 = vmul.f32 1.442695, %v425_v42 }
  0x4d   :  { %v2354_v33 = vadd.f32 -0.6931472, %v1953_v32  ;;  %v426_v26 = vsub.f32 0.0, %v298_v21  ;;  %v299_v14 = vand.u32 2147483647, %v3257_v56  ;;  %v2525_v49 = vpop.eup %2524  ;;  %v167_v24 = vmax.f32 %v3222_v0, 0.0 }
  0x4e   :  { %v898_v10 = vsel %vm3259_vm11, %v895_v53, %v892_v18  ;;  %v168_v61 = vmax.f32 %v3235_v55, 0.0  ;;  %2534 = vpow2.f32 %v569_v11  ;;  %v899_v15 = vadd.f32 1.0, %v2525_v49 }
  0x4f   :  { %2209 = vst [vmem:[#allocation5 + $0x50] sm:$0xff] %v2354_v33  ;;  %v1954_v17 = vadd.f32 %v898_v10, %v162_v31  ;;  %v902_v52 = vmul.f32 -0.5, %v2525_v49  ;;  %v169_v3 = vmax.f32 %v3239_v35, 0.0  ;;  %2536 = vpow2.f32 %v571_v23 }
  0x50   :  { %v2527_v25 = vpop.eup %2526  ;;  %v170_v60 = vmax.f32 %v3247_v22, 0.0  ;;  %v573_v39 = vmul.f32 1.442695, %v426_v26  ;;  %v300_v28 = vand.u32 2147483647, %v3265_v59  ;;  %2538 = vlog2.f32 %v899_v15 }
  0x51   :  { %v2529_v12 = vpop.eup %2528  ;;  %v2355_v19 = vadd.f32 -0.6931472, %v1954_v17  ;;  %v905_v50 = vand.u32 2147483647, %v2525_v49  ;;  %v427_v1 = vsub.f32 0.0, %v299_v14  ;;  %v908_v30 = vadd.f32 1.0, %v2527_v25 }
  0x52   :  { %v911_v5 = vmul.f32 -0.5, %v2527_v25  ;;  %v917_v37 = vadd.f32 1.0, %v2529_v12  ;;  %v171_v31 = vmax.f32 %v3257_v56, 0.0  ;;  %v903_v36 = vadd.f32 1.0, %v902_v52 }
  0x53   :  { %2210 = vst [vmem:[#allocation5 + $0x58] sm:$0xff] %v2355_v19  ;;  %v914_v27 = vand.u32 2147483647, %v2527_v25  ;;  %v920_v38 = vmul.f32 -0.5, %v2529_v12  ;;  %2540 = vpow2.f32 %v573_v39  ;;  %v172_v2 = vmax.f32 %v3265_v59, 0.0 }
  0x54   :  { %2542 = vlog2.f32 %v908_v30  ;;  %v428_v34 = vsub.f32 0.0, %v300_v28  ;;  %v173_v43 = vmax.f32 %v3279_v4, 0.0  ;;  %vm3283_vm12 = vcmp.lt.f32.partialorder %v905_v50, 0.0004427343 }
  0x55   :  { %v2531_v63 = vpop.eup %2530  ;;  %2544 = vlog2.f32 %v917_v37  ;;  %v575_v44 = vmul.f32 1.442695, %v427_v1  ;;  %v301_v6 = vand.u32 2147483647, %v3279_v4  ;;  %v912_v57 = vadd.f32 1.0, %v911_v5 }
  0x56   :  { %v2533_v41 = vpop.eup %2532  ;;  %v921_v62 = vadd.f32 1.0, %v920_v38  ;;  %v923_v53 = vand.u32 2147483647, %v2529_v12  ;;  %v926_v29 = vadd.f32 1.0, %v2531_v63  ;;  %v904_v8 = vmul.f32 %v2525_v49, %v903_v36 }
  0x57   :  { %vm3288_vm13 = vcmp.lt.f32.partialorder %v914_v27, 0.0004427343  ;;  %v929_v20 = vmul.f32 -0.5, %v2531_v63  ;;  %v935_v7 = vadd.f32 1.0, %v2533_v41  ;;  %v932_v54 = vand.u32 2147483647, %v2531_v63 }
  0x58   :  { %v2535_v42 = vpop.eup %2534  ;;  %2546 = vlog2.f32 %v926_v29  ;;  %v938_v51 = vmul.f32 -0.5, %v2533_v41  ;;  %v577_v21 = vmul.f32 1.442695, %v428_v34  ;;  %v941_v33 = vand.u32 2147483647, %v2533_v41 }
  0x59   :  { %2548 = vlog2.f32 %v935_v7  ;;  %v944_v18 = vadd.f32 1.0, %v2535_v42  ;;  %v429_v11 = vsub.f32 0.0, %v301_v6  ;;  %v2537_v23 = vpop.eup %2536  ;;  %v913_v26 = vmul.f32 %v2527_v25, %v912_v57 }
  0x5a   :  { %v922_v14 = vmul.f32 %v2529_v12, %v921_v62  ;;  %vm3292_vm14 = vcmp.lt.f32.partialorder %v923_v53, 0.0004427343  ;;  %2550 = vpow2.f32 %v575_v44  ;;  %v2539_v10 = vpop.eup %2538  ;;  %v930_v17 = vadd.f32 1.0, %v929_v20 }
  0x5b   :  { %2552 = vlog2.f32 %v944_v18  ;;  %v947_v15 = vmul.f32 -0.5, %v2535_v42  ;;  %v953_v52 = vadd.f32 1.0, %v2537_v23  ;;  %v901_v39 = vmul.f32 0.6931472, %v2539_v10 }
  0x5c   :  { %vm3296_vm15 = vcmp.lt.f32.partialorder %v932_v54, 0.0004427343  ;;  %v956_v19 = vmul.f32 -0.5, %v2537_v23  ;;  %2554 = vpow2.f32 %v577_v21  ;;  %v939_v25 = vadd.f32 1.0, %v938_v51 }
  0x5d   :  { %v3300_v50 = vpop.eup %2540  ;;  %vm3302_vm0 = vcmp.lt.f32.partialorder %v941_v33, 0.0004427343  ;;  %2556 = vlog2.f32 %v953_v52  ;;  %v579_v1 = vmul.f32 1.442695, %v429_v11  ;;  %v907_v5 = vsel %vm3283_vm12, %v904_v8, %v901_v39 }
  0x5e   :  { %v2543_v30 = vpop.eup %2542  ;;  %v950_v37 = vand.u32 2147483647, %v2535_v42  ;;  %v962_v36 = vadd.f32 1.0, %v3300_v50  ;;  %v965_v27 = vmul.f32 -0.5, %v3300_v50  ;;  %v1955_v34 = vadd.f32 %v907_v5, %v163_v40 }
  0x5f   :  { %v2545_v38 = vpop.eup %2544  ;;  %v910_v44 = vmul.f32 0.6931472, %v2543_v30  ;;  %v948_v6 = vadd.f32 1.0, %v947_v15  ;;  %v959_v57 = vand.u32 2147483647, %v2537_v23  ;;  %v931_v53 = vmul.f32 %v2531_v63, %v930_v17 }
  0x60   :  { %v919_v62 = vmul.f32 0.6931472, %v2545_v38  ;;  %v957_v29 = vadd.f32 1.0, %v956_v19  ;;  %2558 = vlog2.f32 %v962_v36  ;;  %v2356_v20 = vadd.f32 -0.6931472, %v1955_v34  ;;  %v3401_v36 = vld [vmem:[#allocation2 + $0xf8] sm:$0xff] }
  0x61   :  { %v916_v9 = vsel %vm3288_vm13, %v913_v26, %v910_v44  ;;  %v966_v8 = vadd.f32 1.0, %v965_v27  ;;  %2560 = vpow2.f32 %v579_v1  ;;  %v940_v40 = vmul.f32 %v2533_v41, %v939_v25 }
  0x62   :  { %v2547_v7 = vpop.eup %2546  ;;  %v1956_v54 = vadd.f32 %v916_v9, %v164_v46  ;;  %v925_v48 = vsel %vm3292_vm14, %v922_v14, %v919_v62  ;;  %vm3318_vm1 = vcmp.lt.f32.partialorder %v950_v37, 0.0004427343  ;;  %2211 = vst [vmem:[#allocation5 + $0x60] sm:$0xff] %v2356_v20  ;;  %v949_v33 = vmul.f32 %v2535_v42, %v948_v6  ;;  %v3330_v46 = vld [vmem:[#allocation2 + $0xc0] sm:$0xff]  ;;  %v3362_v9 = vld [vmem:[#allocation2 + $0xc8] sm:$0xff] }
  0x63   :  { %v2549_v63 = vpop.eup %2548  ;;  %v1957_v32 = vadd.f32 %v925_v48, %v165_v16  ;;  %v928_v21 = vmul.f32 0.6931472, %v2547_v7  ;;  %vm3324_vm2 = vcmp.lt.f32.partialorder %v959_v57, 0.0004427343  ;;  %v958_v14 = vmul.f32 %v2537_v23, %v957_v29 }
  0x64   :  { %v3332_v41 = vpop.eup %2550  ;;  %v2357_v11 = vadd.f32 -0.6931472, %v1956_v54  ;;  %v937_v26 = vmul.f32 0.6931472, %v2549_v63  ;;  %v968_v49 = vand.u32 2147483647, %v3300_v50  ;;  %v967_v42 = vmul.f32 %v3300_v50, %v966_v8 }
  0x65   :  { %v2553_v10 = vpop.eup %2552  ;;  %v2358_v13 = vadd.f32 -0.6931472, %v1957_v32  ;;  %v934_v16 = vsel %vm3296_vm15, %v931_v53, %v928_v21  ;;  %v971_v17 = vadd.f32 1.0, %v3332_v41  ;;  %v302_v19 = vand.u32 2147483647, %v3328_v58  ;;  %v3371_v63 = vld [vmem:[#allocation2 + $0xd8] sm:$0xff] }
  0x66   :  { %v2555_v15 = vpop.eup %2554  ;;  %2212 = vst [vmem:[#allocation5 + $0x68] sm:$0xff] %v2357_v11  ;;  %v1958_v52 = vadd.f32 %v934_v16, %v166_v45  ;;  %v943_v39 = vsel %vm3302_vm0, %v940_v40, %v937_v26  ;;  %v946_v23 = vmul.f32 0.6931472, %v2553_v10  ;;  %v303_v1 = vand.u32 2147483647, %v3330_v46  ;;  %v3366_v40 = vld [vmem:[#allocation2 + $0xd0] sm:$0xff] }
  0x67   :  { %v2557_v25 = vpop.eup %2556  ;;  %2213 = vst [vmem:[#allocation5 + $0x70] sm:$0xff] %v2358_v13  ;;  %v1959_v28 = vadd.f32 %v943_v39, %v167_v24  ;;  %2562 = vlog2.f32 %v971_v17  ;;  %v980_v50 = vadd.f32 1.0, %v2555_v15  ;;  %v974_v12 = vmul.f32 -0.5, %v3332_v41  ;;  %v3373_v32 = vld [vmem:[#allocation2 + $0xe0] sm:$0xff]  ;;  %v3375_v21 = vld [vmem:[#allocation2 + $0xe8] sm:$0xff] }
  0x68   :  { %v2359_v30 = vadd.f32 -0.6931472, %v1958_v52  ;;  %v952_v47 = vsel %vm3318_vm1, %v949_v33, %v946_v23  ;;  %v955_v45 = vmul.f32 0.6931472, %v2557_v25  ;;  %vm3352_vm3 = vcmp.lt.f32.partialorder %v968_v49, 0.0004427343 }
  0x69   :  { %v2360_v5 = vadd.f32 -0.6931472, %v1959_v28  ;;  %v1960_v37 = vadd.f32 %v952_v47, %v168_v61  ;;  %2564 = vlog2.f32 %v980_v50  ;;  %v977_v27 = vand.u32 2147483647, %v3332_v41  ;;  %v3397_v47 = vld [vmem:[#allocation2 + $0xf0] sm:$0xff] }
  0x6a   :  { %v2559_v0 = vpop.eup %2558  ;;  %2214 = vst [vmem:[#allocation5 + $0x78] sm:$0xff] %v2359_v30  ;;  %v961_v24 = vsel %vm3324_vm2, %v958_v14, %v955_v45  ;;  %v983_v38 = vmul.f32 -0.5, %v2555_v15  ;;  %v430_v34 = vsub.f32 0.0, %v302_v19  ;;  %v431_v57 = vsub.f32 0.0, %v303_v1 }
  0x6b   :  { %v2561_v44 = vpop.eup %2560  ;;  %2215 = vst [vmem:[#allocation5 + $0x80] sm:$0xff] %v2360_v5  ;;  %v2361_v6 = vadd.f32 -0.6931472, %v1960_v37  ;;  %v1961_v55 = vadd.f32 %v961_v24, %v169_v3  ;;  %v964_v61 = vmul.f32 0.6931472, %v2559_v0  ;;  %v975_v62 = vadd.f32 1.0, %v974_v12 }
  0x6c   :  { %v986_v53 = vand.u32 2147483647, %v2555_v15  ;;  %v989_v29 = vadd.f32 1.0, %v2561_v44  ;;  %v174_v20 = vmax.f32 %v3328_v58, 0.0  ;;  %v984_v54 = vadd.f32 1.0, %v983_v38 }
  0x6d   :  { %2216 = vst [vmem:[#allocation5 + $0x88] sm:$0xff] %v2361_v6  ;;  %v2362_v8 = vadd.f32 -0.6931472, %v1961_v55  ;;  %v970_v7 = vsel %vm3352_vm3, %v967_v42, %v964_v61  ;;  %v581_v48 = vmul.f32 1.442695, %v430_v34  ;;  %v992_v3 = vmul.f32 -0.5, %v2561_v44 }
  0x6e   :  { %v1962_v35 = vadd.f32 %v970_v7, %v170_v60  ;;  %2566 = vlog2.f32 %v989_v29  ;;  %v175_v51 = vmax.f32 %v3330_v46, 0.0  ;;  %vm3377_vm4 = vcmp.lt.f32.partialorder %v977_v27, 0.0004427343 }
  0x6f   :  { %2217 = vst [vmem:[#allocation5 + $0x90] sm:$0xff] %v2362_v8  ;;  %v995_v18 = vand.u32 2147483647, %v2561_v44  ;;  %2568 = vpow2.f32 %v581_v48  ;;  %v583_v11 = vmul.f32 1.442695, %v431_v57  ;;  %v976_v60 = vmul.f32 %v3332_v41, %v975_v62  ;;  %v3412_v8 = vld [vmem:[#allocation2 + $0x100] sm:$0xff] }
  0x70   :  { %v2363_v22 = vadd.f32 -0.6931472, %v1962_v35  ;;  %vm3382_vm5 = vcmp.lt.f32.partialorder %v986_v53, 0.0004427343  ;;  %v304_v14 = vand.u32 2147483647, %v3362_v9  ;;  %v985_v10 = vmul.f32 %v2555_v15, %v984_v54 }
  0x71   :  { %v2563_v49 = vpop.eup %2562  ;;  %2570 = vpow2.f32 %v583_v11  ;;  %v305_v13 = vand.u32 2147483647, %v3366_v40  ;;  %v306_v16 = vand.u32 2147483647, %v3371_v63  ;;  %v993_v17 = vadd.f32 1.0, %v992_v3 }
  0x72   :  { %2218 = vst [vmem:[#allocation5 + $0x98] sm:$0xff] %v2363_v22  ;;  %v973_v42 = vmul.f32 0.6931472, %v2563_v49  ;;  %v432_v52 = vsub.f32 0.0, %v304_v14  ;;  %v307_v39 = vand.u32 2147483647, %v3373_v32 }
  0x73   :  { %v2565_v41 = vpop.eup %2564  ;;  %vm3390_vm6 = vcmp.lt.f32.partialorder %v995_v18, 0.0004427343  ;;  %v433_v19 = vsub.f32 0.0, %v305_v13  ;;  %v434_v25 = vsub.f32 0.0, %v306_v16  ;;  %v308_v15 = vand.u32 2147483647, %v3375_v21 }
  0x74   :  { %v979_v28 = vsel %vm3377_vm4, %v976_v60, %v973_v42  ;;  %v982_v50 = vmul.f32 0.6931472, %v2565_v41  ;;  %v585_v1 = vmul.f32 1.442695, %v432_v52  ;;  %v435_v30 = vsub.f32 0.0, %v307_v39 }
  0x75   :  { %v1963_v45 = vadd.f32 %v979_v28, %v171_v31  ;;  %v587_v12 = vmul.f32 1.442695, %v433_v19  ;;  %v589_v5 = vmul.f32 1.442695, %v434_v25  ;;  %v436_v37 = vsub.f32 0.0, %v308_v15 }
  0x76   :  { %v988_v0 = vsel %vm3382_vm5, %v985_v10, %v982_v50  ;;  %v994_v24 = vmul.f32 %v2561_v44, %v993_v17  ;;  %2572 = vpow2.f32 %v585_v1  ;;  %v591_v27 = vmul.f32 1.442695, %v435_v30 }
  0x77   :  { %v2364_v38 = vadd.f32 -0.6931472, %v1963_v45  ;;  %v1964_v34 = vadd.f32 %v988_v0, %v172_v2  ;;  %2574 = vpow2.f32 %v587_v12  ;;  %v593_v6 = vmul.f32 1.442695, %v436_v37  ;;  %v3432_v45 = vld [vmem:[#allocation2 + $0x108] sm:$0xff] }
  0x78   :  { %v2567_v55 = vpop.eup %2566  ;;  %v176_v56 = vmax.f32 %v3362_v9, 0.0  ;;  %2576 = vpow2.f32 %v589_v5  ;;  %v309_v31 = vand.u32 2147483647, %v3397_v47  ;;  %v310_v61 = vand.u32 2147483647, %v3401_v36 }
  0x79   :  { %v2569_v57 = vpop.eup %2568  ;;  %2219 = vst [vmem:[#allocation5 + $0xa0] sm:$0xff] %v2364_v38  ;;  %v2365_v62 = vadd.f32 -0.6931472, %v1964_v34  ;;  %v991_v44 = vmul.f32 0.6931472, %v2567_v55  ;;  %v177_v53 = vmax.f32 %v3366_v40, 0.0  ;;  %2578 = vpow2.f32 %v591_v27 }
  0x7a   :  { %v998_v29 = vadd.f32 1.0, %v2569_v57  ;;  %v1001_v59 = vmul.f32 -0.5, %v2569_v57  ;;  %v178_v2 = vmax.f32 %v3371_v63, 0.0  ;;  %2580 = vpow2.f32 %v593_v6 }
  0x7b   :  { %v2571_v7 = vpop.eup %2570  ;;  %2220 = vst [vmem:[#allocation5 + $0xa8] sm:$0xff] %v2365_v62  ;;  %v997_v54 = vsel %vm3390_vm6, %v994_v24, %v991_v44  ;;  %v179_v48 = vmax.f32 %v3373_v32, 0.0  ;;  %v437_v35 = vsub.f32 0.0, %v309_v31  ;;  %v438_v3 = vsub.f32 0.0, %v310_v61 }
  0x7c   :  { %v1965_v33 = vadd.f32 %v997_v54, %v173_v43  ;;  %2582 = vlog2.f32 %v998_v29  ;;  %v1002_v18 = vadd.f32 1.0, %v1001_v59  ;;  %v1004_v11 = vand.u32 2147483647, %v2569_v57 }
  0x7d   :  { %v1007_v22 = vadd.f32 1.0, %v2571_v7  ;;  %v1010_v60 = vmul.f32 -0.5, %v2571_v7  ;;  %v595_v26 = vmul.f32 1.442695, %v437_v35  ;;  %v311_v14 = vand.u32 2147483647, %v3412_v8 }
  0x7e   :  { %v2366_v49 = vadd.f32 -0.6931472, %v1965_v33  ;;  %v1013_v10 = vand.u32 2147483647, %v2571_v7  ;;  %v597_v13 = vmul.f32 1.442695, %v438_v3  ;;  %v1003_v43 = vmul.f32 %v2569_v57, %v1002_v18 }
  0x7f   :  { %2584 = vlog2.f32 %v1007_v22  ;;  %v180_v16 = vmax.f32 %v3375_v21, 0.0  ;;  %v181_v42 = vmax.f32 %v3397_v47, 0.0  ;;  %v182_v17 = vmax.f32 %v3401_v36, 0.0 }
  0x80   :  { %v2573_v4 = vpop.eup %2572  ;;  %2221 = vst [vmem:[#allocation5 + $0xb0] sm:$0xff] %v2366_v49  ;;  %vm3423_vm7 = vcmp.lt.f32.partialorder %v1004_v11, 0.0004427343  ;;  %2586 = vpow2.f32 %v595_v26  ;;  %v183_v39 = vmax.f32 %v3412_v8, 0.0  ;;  %v1011_v23 = vadd.f32 1.0, %v1010_v60 }
  0x81   :  { %v2575_v41 = vpop.eup %2574  ;;  %v1016_v19 = vadd.f32 1.0, %v2573_v4  ;;  %v1019_v25 = vmul.f32 -0.5, %v2573_v4  ;;  %v439_v15 = vsub.f32 0.0, %v311_v14  ;;  %vm3428_vm8 = vcmp.lt.f32.partialorder %v1013_v10, 0.0004427343 }
  0x82   :  { %v2577_v28 = vpop.eup %2576  ;;  %v1025_v1 = vadd.f32 1.0, %v2575_v41  ;;  %v1028_v30 = vmul.f32 -0.5, %v2575_v41  ;;  %2588 = vpow2.f32 %v597_v13  ;;  %v1022_v5 = vand.u32 2147483647, %v2573_v4 }
  0x83   :  { %v2579_v12 = vpop.eup %2578  ;;  %2590 = vlog2.f32 %v1016_v19  ;;  %v1034_v37 = vadd.f32 1.0, %v2577_v28  ;;  %v184_v0 = vmax.f32 %v3432_v45, 0.0  ;;  %v1020_v27 = vadd.f32 1.0, %v1019_v25 }
  0x84   :  { %v2581_v24 = vpop.eup %2580  ;;  %2592 = vlog2.f32 %v1025_v1  ;;  %v1031_v38 = vand.u32 2147483647, %v2575_v41  ;;  %v1037_v34 = vmul.f32 -0.5, %v2577_v28  ;;  %v1043_v6 = vadd.f32 1.0, %v2579_v12 }
  0x85   :  { %2594 = vlog2.f32 %v1034_v37  ;;  %v599_v55 = vmul.f32 1.442695, %v439_v15  ;;  %v312_v31 = vand.u32 2147483647, %v3432_v45  ;;  %v1012_v57 = vmul.f32 %v2571_v7, %v1011_v23 }
  0x86   :  { %v2583_v61 = vpop.eup %2582  ;;  %v1029_v62 = vadd.f32 1.0, %v1028_v30  ;;  %v1038_v44 = vadd.f32 1.0, %v1037_v34  ;;  %v1040_v29 = vand.u32 2147483647, %v2577_v28  ;;  %2596 = vlog2.f32 %v1043_v6 }
  0x87   :  { %v1000_v59 = vmul.f32 0.6931472, %v2583_v61  ;;  %v1046_v54 = vmul.f32 -0.5, %v2579_v12  ;;  %v1052_v35 = vadd.f32 1.0, %v2581_v24  ;;  %v1021_v3 = vmul.f32 %v2573_v4, %v1020_v27 }
  0x88   :  { %vm3436_vm9 = vcmp.lt.f32.partialorder %v1022_v5, 0.0004427343  ;;  %vm3440_vm10 = vcmp.lt.f32.partialorder %v1031_v38, 0.0004427343  ;;  %v1055_v11 = vmul.f32 -0.5, %v2581_v24  ;;  %v1030_v13 = vmul.f32 %v2575_v41, %v1029_v62  ;;  %v3474_v62 = vld [vmem:[#allocation2 + $0x110] sm:$0xff] }
  0x89   :  { %v2585_v22 = vpop.eup %2584  ;;  %v1006_v7 = vsel %vm3423_vm7, %v1003_v43, %v1000_v59  ;;  %v1049_v60 = vand.u32 2147483647, %v2579_v12  ;;  %2598 = vlog2.f32 %v1052_v35  ;;  %v1058_v26 = vand.u32 2147483647, %v2581_v24 }
  0x8a   :  { %v3446_v14 = vpop.eup %2586  ;;  %v1966_v49 = vadd.f32 %v1006_v7, %v174_v20  ;;  %v1009_v10 = vmul.f32 0.6931472, %v2585_v22  ;;  %vm3450_vm11 = vcmp.lt.f32.partialorder %v1040_v29, 0.0004427343  ;;  %v1039_v23 = vmul.f32 %v2577_v28, %v1038_v44 }
  0x8b   :  { %v1047_v19 = vadd.f32 1.0, %v1046_v54  ;;  %v1061_v25 = vadd.f32 1.0, %v3446_v14  ;;  %v440_v52 = vsub.f32 0.0, %v312_v31  ;;  %v1056_v30 = vadd.f32 1.0, %v1055_v11  ;;  %v3487_v11 = vld [vmem:[#allocation2 + $0x120] sm:$0xff] }
  0x8c   :  { %v3455_v43 = vpop.eup %2588  ;;  %v2367_v15 = vadd.f32 -0.6931472, %v1966_v49  ;;  %v1015_v1 = vsel %vm3428_vm8, %v1012_v57, %v1009_v10  ;;  %2600 = vpow2.f32 %v599_v55  ;;  %vm3461_vm12 = vcmp.lt.f32.partialorder %v1049_v60, 0.0004427343 }
  0x8d   :  { %v2591_v58 = vpop.eup %2590  ;;  %v1967_v20 = vadd.f32 %v1015_v1, %v175_v51  ;;  %vm3465_vm13 = vcmp.lt.f32.partialorder %v1058_v26, 0.0004427343  ;;  %2602 = vlog2.f32 %v1061_v25  ;;  %v1064_v50 = vmul.f32 -0.5, %v3446_v14 }
  0x8e   :  { %v2593_v5 = vpop.eup %2592  ;;  %2222 = vst [vmem:[#allocation5 + $0xb8] sm:$0xff] %v2367_v15  ;;  %v1018_v37 = vmul.f32 0.6931472, %v2591_v58  ;;  %v1067_v27 = vand.u32 2147483647, %v3446_v14  ;;  %v1070_v38 = vadd.f32 1.0, %v3455_v43  ;;  %v1048_v6 = vmul.f32 %v2579_v12, %v1047_v19 }
  0x8f   :  { %v2595_v46 = vpop.eup %2594  ;;  %v2368_v51 = vadd.f32 -0.6931472, %v1967_v20  ;;  %v1027_v34 = vmul.f32 0.6931472, %v2593_v5  ;;  %v601_v55 = vmul.f32 1.442695, %v440_v52  ;;  %v1057_v57 = vmul.f32 %v2581_v24, %v1056_v30 }
  0x90   :  { %v1024_v31 = vsel %vm3436_vm9, %v1021_v3, %v1018_v37  ;;  %v1036_v61 = vmul.f32 0.6931472, %v2595_v46  ;;  %2604 = vlog2.f32 %v1070_v38  ;;  %v2597_v44 = vpop.eup %2596  ;;  %v1073_v54 = vmul.f32 -0.5, %v3455_v43  ;;  %v3481_v12 = vld [vmem:[#allocation2 + $0x118] sm:$0xff] }
  0x91   :  { %2223 = vst [vmem:[#allocation5 + $0xc0] sm:$0xff] %v2368_v51  ;;  %v1968_v29 = vadd.f32 %v1024_v31, %v176_v56  ;;  %v1033_v59 = vsel %vm3440_vm10, %v1030_v13, %v1027_v34  ;;  %2606 = vpow2.f32 %v601_v55  ;;  %v1045_v3 = vmul.f32 0.6931472, %v2597_v44  ;;  %v3526_v31 = vld [vmem:[#allocation2 + $0x130] sm:$0xff] }
  0x92   :  { %v1969_v35 = vadd.f32 %v1033_v59, %v177_v53  ;;  %v1042_v24 = vsel %vm3450_vm11, %v1039_v23, %v1036_v61  ;;  %v1065_v33 = vadd.f32 1.0, %v1064_v50  ;;  %v1076_v22 = vand.u32 2147483647, %v3455_v43  ;;  %v3519_v50 = vld [vmem:[#allocation2 + $0x128] sm:$0xff] }
  0x93   :  { %v2599_v9 = vpop.eup %2598  ;;  %v2369_v56 = vadd.f32 -0.6931472, %v1968_v29  ;;  %v1970_v18 = vadd.f32 %v1042_v24, %v178_v2  ;;  %v313_v7 = vand.u32 2147483647, %v3474_v62  ;;  %v1051_v40 = vsel %vm3461_vm12, %v1048_v6, %v1045_v3 }
  0x94   :  { %v2370_v60 = vadd.f32 -0.6931472, %v1969_v35  ;;  %v1054_v53 = vmul.f32 0.6931472, %v2599_v9  ;;  %v314_v26 = vand.u32 2147483647, %v3481_v12  ;;  %v1971_v10 = vadd.f32 %v1051_v40, %v179_v48 }
  0x95   :  { %2224 = vst [vmem:[#allocation5 + $0xc8] sm:$0xff] %v2369_v56  ;;  %v2371_v49 = vadd.f32 -0.6931472, %v1970_v18  ;;  %v1074_v13 = vadd.f32 1.0, %v1073_v54  ;;  %v441_v4 = vsub.f32 0.0, %v313_v7  ;;  %v1066_v23 = vmul.f32 %v3446_v14, %v1065_v33  ;;  %v3536_v35 = vld [vmem:[#allocation2 + $0x140] sm:$0xff] }
  0x96   :  { %v3498_v63 = vpop.eup %2600  ;;  %2225 = vst [vmem:[#allocation5 + $0xd0] sm:$0xff] %v2370_v60  ;;  %v1060_v2 = vsel %vm3465_vm13, %v1057_v57, %v1054_v53  ;;  %v442_v19 = vsub.f32 0.0, %v314_v26  ;;  %v315_v25 = vand.u32 2147483647, %v3487_v11  ;;  %v2372_v15 = vadd.f32 -0.6931472, %v1971_v10 }
  0x97   :  { %v2603_v52 = vpop.eup %2602  ;;  %2226 = vst [vmem:[#allocation5 + $0xd8] sm:$0xff] %v2371_v49  ;;  %v1972_v32 = vadd.f32 %v1060_v2, %v180_v16  ;;  %vm3506_vm14 = vcmp.lt.f32.partialorder %v1067_v27, 0.0004427343  ;;  %v1079_v1 = vadd.f32 1.0, %v3498_v63  ;;  %vm3511_vm15 = vcmp.lt.f32.partialorder %v1076_v22, 0.0004427343 }
  0x98   :  { %v1063_v30 = vmul.f32 0.6931472, %v2603_v52  ;;  %v603_v14 = vmul.f32 1.442695, %v441_v4  ;;  %2227 = vst [vmem:[#allocation5 + $0xe0] sm:$0xff] %v2372_v15  ;;  %v1075_v41 = vmul.f32 %v3455_v43, %v1074_v13  ;;  %v1082_v5 = vmul.f32 -0.5, %v3498_v63 }
  0x99   :  { %v2373_v20 = vadd.f32 -0.6931472, %v1972_v32  ;;  %2608 = vlog2.f32 %v1079_v1  ;;  %v605_v28 = vmul.f32 1.442695, %v442_v19  ;;  %v443_v37 = vsub.f32 0.0, %v315_v25  ;;  %v3540_v9 = vld [vmem:[#allocation2 + $0x148] sm:$0xff] }
  0x9a   :  { %v2605_v21 = vpop.eup %2604  ;;  %v1069_v16 = vsel %vm3506_vm14, %v1066_v23, %v1063_v30  ;;  %2610 = vpow2.f32 %v603_v14  ;;  %v185_v43 = vmax.f32 %v3474_v62, 0.0  ;;  %v186_v34 = vmax.f32 %v3481_v12, 0.0  ;;  %v3542_v56 = vld [vmem:[#allocation2 + $0x150] sm:$0xff] }
  0x9b   :  { %v2607_v27 = vpop.eup %2606  ;;  %2228 = vst [vmem:[#allocation5 + $0xe8] sm:$0xff] %v2373_v20  ;;  %v1973_v38 = vadd.f32 %v1069_v16, %v181_v42  ;;  %v1072_v46 = vmul.f32 0.6931472, %v2605_v21  ;;  %2612 = vpow2.f32 %v605_v28  ;;  %v187_v6 = vmax.f32 %v3487_v11, 0.0  ;;  %v3531_v42 = vld [vmem:[#allocation2 + $0x138] sm:$0xff] }
  0x9c   :  { %v1088_v51 = vadd.f32 1.0, %v2607_v27  ;;  %v607_v55 = vmul.f32 1.442695, %v443_v37  ;;  %v1091_v44 = vmul.f32 -0.5, %v2607_v27  ;;  %v316_v47 = vand.u32 2147483647, %v3519_v50 }
  0x9d   :  { %v2374_v61 = vadd.f32 -0.6931472, %v1973_v38  ;;  %v1078_v57 = vsel %vm3511_vm15, %v1075_v41, %v1072_v46  ;;  %v1083_v59 = vadd.f32 1.0, %v1082_v5  ;;  %v1085_v54 = vand.u32 2147483647, %v3498_v63 }
  0x9e   :  { %v1974_v29 = vadd.f32 %v1078_v57, %v182_v17  ;;  %2614 = vlog2.f32 %v1088_v51  ;;  %v188_v24 = vmax.f32 %v3519_v50, 0.0  ;;  %v444_v3 = vsub.f32 0.0, %v316_v47  ;;  %v3570_v57 = vld [vmem:[#allocation2 + $0x158] sm:$0xff] }
  0x9f   :  { %2229 = vst [vmem:[#allocation5 + $0xf0] sm:$0xff] %v2374_v61  ;;  %2616 = vpow2.f32 %v607_v55  ;;  %v317_v33 = vand.u32 2147483647, %v3526_v31  ;;  %v1094_v36 = vand.u32 2147483647, %v2607_v27  ;;  %v1092_v22 = vadd.f32 1.0, %v1091_v44 }
  0xa0   :  { %v2375_v18 = vadd.f32 -0.6931472, %v1974_v29  ;;  %v318_v17 = vand.u32 2147483647, %v3531_v42  ;;  %v609_v7 = vmul.f32 1.442695, %v444_v3  ;;  %v1084_v53 = vmul.f32 %v3498_v63, %v1083_v59 }
  0xa1   :  { %v445_v60 = vsub.f32 0.0, %v317_v33  ;;  %v319_v40 = vand.u32 2147483647, %v3536_v35  ;;  %vm3547_vm0 = vcmp.lt.f32.partialorder %v1085_v54, 0.0004427343  ;;  %v189_v49 = vmax.f32 %v3526_v31, 0.0 }
  0xa2   :  { %2230 = vst [vmem:[#allocation5 + $0xf8] sm:$0xff] %v2375_v18  ;;  %v446_v10 = vsub.f32 0.0, %v318_v17  ;;  %2618 = vpow2.f32 %v609_v7  ;;  %v320_v2 = vand.u32 2147483647, %v3540_v9  ;;  %v321_v23 = vand.u32 2147483647, %v3542_v56 }
  0xa3   :  { %v2609_v13 = vpop.eup %2608  ;;  %v611_v4 = vmul.f32 1.442695, %v445_v60  ;;  %vm3556_vm1 = vcmp.lt.f32.partialorder %v1094_v36, 0.0004427343  ;;  %v190_v63 = vmax.f32 %v3531_v42, 0.0  ;;  %v447_v15 = vsub.f32 0.0, %v319_v40 }
  0xa4   :  { %v3554_v19 = vpop.eup %2610  ;;  %v1081_v25 = vmul.f32 0.6931472, %v2609_v13  ;;  %v1093_v48 = vmul.f32 %v2607_v27, %v1092_v22  ;;  %v613_v30 = vmul.f32 1.442695, %v446_v10  ;;  %v191_v41 = vmax.f32 %v3536_v35, 0.0  ;;  %v3573_v29 = vld [vmem:[#allocation2 + $0x160] sm:$0xff] }
  0xa5   :  { %v2613_v32 = vpop.eup %2612  ;;  %v1097_v1 = vadd.f32 1.0, %v3554_v19  ;;  %2620 = vpow2.f32 %v611_v4  ;;  %v1100_v14 = vmul.f32 -0.5, %v3554_v19  ;;  %v448_v21 = vsub.f32 0.0, %v320_v2 }
  0xa6   :  { %v1087_v58 = vsel %vm3547_vm0, %v1084_v53, %v1081_v25  ;;  %v1106_v20 = vadd.f32 1.0, %v2613_v32  ;;  %v449_v16 = vsub.f32 0.0, %v321_v23  ;;  %v615_v37 = vmul.f32 1.442695, %v447_v15 }
  0xa7   :  { %v1975_v28 = vadd.f32 %v1087_v58, %v183_v39  ;;  %2622 = vlog2.f32 %v1097_v1  ;;  %v192_v27 = vmax.f32 %v3540_v9, 0.0  ;;  %v193_v38 = vmax.f32 %v3542_v56, 0.0 }
  0xa8   :  { %v2615_v5 = vpop.eup %2614  ;;  %2624 = vlog2.f32 %v1106_v20  ;;  %v1109_v61 = vmul.f32 -0.5, %v2613_v32  ;;  %v1101_v44 = vadd.f32 1.0, %v1100_v14  ;;  %v194_v47 = vmax.f32 %v3570_v57, 0.0 }
  0xa9   :  { %v2617_v46 = vpop.eup %2616  ;;  %v2376_v51 = vadd.f32 -0.6931472, %v1975_v28  ;;  %v1090_v55 = vmul.f32 0.6931472, %v2615_v5  ;;  %2626 = vpow2.f32 %v613_v30  ;;  %v617_v54 = vmul.f32 1.442695, %v448_v21 }
  0xaa   :  { %v1115_v8 = vadd.f32 1.0, %v2617_v46  ;;  %v1118_v39 = vmul.f32 -0.5, %v2617_v46  ;;  %2628 = vpow2.f32 %v615_v37  ;;  %v619_v3 = vmul.f32 1.442695, %v449_v16 }
  0xab   :  { %2231 = vst [vmem:[#allocation5 + $0x100] sm:$0xff] %v2376_v51  ;;  %v1096_v59 = vsel %vm3556_vm1, %v1093_v48, %v1090_v55  ;;  %v1103_v18 = vand.u32 2147483647, %v3554_v19  ;;  %v1112_v36 = vand.u32 2147483647, %v2613_v32  ;;  %v1110_v22 = vadd.f32 1.0, %v1109_v61 }
  0xac   :  { %v1976_v33 = vadd.f32 %v1096_v59, %v184_v0  ;;  %2630 = vlog2.f32 %v1115_v8  ;;  %v2619_v17 = vpop.eup %2618  ;;  %v322_v7 = vand.u32 2147483647, %v3570_v57  ;;  %v323_v60 = vand.u32 2147483647, %v3573_v29 }
  0xad   :  { %2632 = vpow2.f32 %v617_v54  ;;  %v1102_v53 = vmul.f32 %v3554_v19, %v1101_v44  ;;  %v1121_v26 = vand.u32 2147483647, %v2617_v46  ;;  %v1124_v10 = vadd.f32 1.0, %v2619_v17 }
  0xae   :  { %v2377_v40 = vadd.f32 -0.6931472, %v1976_v33  ;;  %v1119_v4 = vadd.f32 1.0, %v1118_v39  ;;  %2634 = vpow2.f32 %v619_v3  ;;  %v450_v45 = vsub.f32 0.0, %v322_v7 }
  0xaf   :  { %v2621_v13 = vpop.eup %2620  ;;  %v451_v0 = vsub.f32 0.0, %v323_v60  ;;  %2636 = vlog2.f32 %v1124_v10  ;;  %v1127_v2 = vmul.f32 -0.5, %v2619_v17  ;;  %v1130_v23 = vand.u32 2147483647, %v2619_v17 }
  0xb0   :  { %2232 = vst [vmem:[#allocation5 + $0x108] sm:$0xff] %v2377_v40  ;;  %v1133_v25 = vadd.f32 1.0, %v2621_v13  ;;  %vm3583_vm2 = vcmp.lt.f32.partialorder %v1103_v18, 0.0004427343  ;;  %v1111_v48 = vmul.f32 %v2613_v32, %v1110_v22  ;;  %vm3587_vm3 = vcmp.lt.f32.partialorder %v1112_v36, 0.0004427343 }
  0xb1   :  { %v2623_v52 = vpop.eup %2622  ;;  %v621_v1 = vmul.f32 1.442695, %v450_v45  ;;  %vm3591_vm4 = vcmp.lt.f32.partialorder %v1121_v26, 0.0004427343  ;;  %v1136_v20 = vmul.f32 -0.5, %v2621_v13  ;;  %v1120_v16 = vmul.f32 %v2617_v46, %v1119_v4 }
  0xb2   :  { %v2625_v30 = vpop.eup %2624  ;;  %v1099_v58 = vmul.f32 0.6931472, %v2623_v52  ;;  %2638 = vlog2.f32 %v1133_v25  ;;  %v623_v5 = vmul.f32 1.442695, %v451_v0  ;;  %v1128_v37 = vadd.f32 1.0, %v1127_v2 }
  0xb3   :  { %v2627_v28 = vpop.eup %2626  ;;  %v1108_v21 = vmul.f32 0.6931472, %v2625_v30  ;;  %2640 = vpow2.f32 %v621_v1  ;;  %vm3597_vm5 = vcmp.lt.f32.partialorder %v1130_v23, 0.0004427343  ;;  %v1139_v39 = vand.u32 2147483647, %v2621_v13 }
  0xb4   :  { %v1105_v32 = vsel %vm3583_vm2, %v1102_v53, %v1099_v58  ;;  %v1142_v55 = vadd.f32 1.0, %v2627_v28  ;;  %v2629_v61 = vpop.eup %2628  ;;  %2642 = vpow2.f32 %v623_v5  ;;  %v1137_v54 = vadd.f32 1.0, %v1136_v20 }
  0xb5   :  { %v1977_v44 = vadd.f32 %v1105_v32, %v185_v43  ;;  %v1114_v8 = vsel %vm3587_vm3, %v1111_v48, %v1108_v21  ;;  %v1151_v3 = vadd.f32 1.0, %v2629_v61  ;;  %v1145_v22 = vmul.f32 -0.5, %v2627_v28 }
  0xb6   :  { %v2631_v46 = vpop.eup %2630  ;;  %v1978_v59 = vadd.f32 %v1114_v8, %v186_v34  ;;  %2644 = vlog2.f32 %v1142_v55  ;;  %v195_v7 = vmax.f32 %v3573_v29, 0.0  ;;  %v1148_v43 = vand.u32 2147483647, %v2627_v28  ;;  %v3634_v8 = vld [vmem:[#allocation2 + $0x168] sm:$0xff] }
  0xb7   :  { %v2633_v33 = vpop.eup %2632  ;;  %v2378_v18 = vadd.f32 -0.6931472, %v1977_v44  ;;  %v1117_v36 = vmul.f32 0.6931472, %v2631_v46  ;;  %2646 = vlog2.f32 %v1151_v3  ;;  %v1154_v60 = vmul.f32 -0.5, %v2629_v61 }
  0xb8   :  { %v2379_v62 = vadd.f32 -0.6931472, %v1978_v59  ;;  %v2635_v40 = vpop.eup %2634  ;;  %v1129_v12 = vmul.f32 %v2619_v17, %v1128_v37  ;;  %vm3610_vm6 = vcmp.lt.f32.partialorder %v1139_v39, 0.0004427343  ;;  %v1160_v26 = vadd.f32 1.0, %v2633_v33 }
  0xb9   :  { %2233 = vst [vmem:[#allocation5 + $0x110] sm:$0xff] %v2378_v18  ;;  %v1123_v53 = vsel %vm3591_vm4, %v1120_v16, %v1117_v36  ;;  %v2637_v10 = vpop.eup %2636  ;;  %v1138_v45 = vmul.f32 %v2621_v13, %v1137_v54  ;;  %v1163_v0 = vmul.f32 -0.5, %v2633_v33  ;;  %v1169_v2 = vadd.f32 1.0, %v2635_v40 }
  0xba   :  { %2234 = vst [vmem:[#allocation5 + $0x118] sm:$0xff] %v2379_v62  ;;  %v1979_v4 = vadd.f32 %v1123_v53, %v187_v6  ;;  %v1126_v23 = vmul.f32 0.6931472, %v2637_v10  ;;  %v1146_v25 = vadd.f32 1.0, %v1145_v22  ;;  %v1157_v52 = vand.u32 2147483647, %v2629_v61 }
  0xbb   :  { %2648 = vlog2.f32 %v1160_v26  ;;  %vm3616_vm7 = vcmp.lt.f32.partialorder %v1148_v43, 0.0004427343  ;;  %v1155_v19 = vadd.f32 1.0, %v1154_v60  ;;  %v1166_v13 = vand.u32 2147483647, %v2633_v33 }
  0xbc   :  { %v2639_v15 = vpop.eup %2638  ;;  %v2380_v48 = vadd.f32 -0.6931472, %v1979_v4  ;;  %2650 = vlog2.f32 %v1169_v2  ;;  %v1132_v11 = vsel %vm3597_vm5, %v1129_v12, %v1126_v23  ;;  %v1172_v30 = vmul.f32 -0.5, %v2635_v40 }
  0xbd   :  { %v2641_v1 = vpop.eup %2640  ;;  %v1135_v6 = vmul.f32 0.6931472, %v2639_v15  ;;  %v1980_v58 = vadd.f32 %v1132_v11, %v188_v24  ;;  %v1164_v14 = vadd.f32 1.0, %v1163_v0  ;;  %v1175_v20 = vand.u32 2147483647, %v2635_v40 }
  0xbe   :  { %2235 = vst [vmem:[#allocation5 + $0x120] sm:$0xff] %v2380_v48  ;;  %v1178_v21 = vadd.f32 1.0, %v2641_v1  ;;  %v3624_v16 = vpop.eup %2642  ;;  %v1147_v32 = vmul.f32 %v2627_v28, %v1146_v25  ;;  %vm3628_vm8 = vcmp.lt.f32.partialorder %v1157_v52, 0.0004427343  ;;  %v1181_v51 = vmul.f32 -0.5, %v2641_v1  ;;  %v3665_v48 = vld [vmem:[#allocation2 + $0x180] sm:$0xff] }
  0xbf   :  { %v1141_v5 = vsel %vm3610_vm6, %v1138_v45, %v1135_v6  ;;  %v2381_v44 = vadd.f32 -0.6931472, %v1980_v58  ;;  %v1173_v24 = vadd.f32 1.0, %v1172_v30  ;;  %v1156_v46 = vmul.f32 %v2629_v61, %v1155_v19  ;;  %v3660_v45 = vld [vmem:[#allocation2 + $0x178] sm:$0xff]  ;;  %v3676_v30 = vld [vmem:[#allocation2 + $0x190] sm:$0xff] }
  0xc0   :  { %v2645_v55 = vpop.eup %2644  ;;  %v1981_v50 = vadd.f32 %v1141_v5, %v189_v49  ;;  %2652 = vlog2.f32 %v1178_v21  ;;  %vm3636_vm9 = vcmp.lt.f32.partialorder %v1166_v13, 0.0004427343  ;;  %v1184_v28 = vand.u32 2147483647, %v2641_v1  ;;  %v3645_v49 = vld [vmem:[#allocation2 + $0x170] sm:$0xff]  ;;  %v3670_v13 = vld [vmem:[#allocation2 + $0x188] sm:$0xff] }
  0xc1   :  { %v1144_v39 = vmul.f32 0.6931472, %v2645_v55  ;;  %v2647_v54 = vpop.eup %2646  ;;  %2236 = vst [vmem:[#allocation5 + $0x128] sm:$0xff] %v2381_v44  ;;  %v1165_v18 = vmul.f32 %v2633_v33, %v1164_v14  ;;  %vm3640_vm10 = vcmp.lt.f32.partialorder %v1175_v20, 0.0004427343  ;;  %v1187_v31 = vadd.f32 1.0, %v3624_v16 }
  0xc2   :  { %v2382_v3 = vadd.f32 -0.6931472, %v1981_v50  ;;  %v1153_v22 = vmul.f32 0.6931472, %v2647_v54  ;;  %v1182_v62 = vadd.f32 1.0, %v1181_v51  ;;  %v1174_v33 = vmul.f32 %v2635_v40, %v1173_v24 }
  0xc3   :  { %v1150_v61 = vsel %vm3616_vm7, %v1147_v32, %v1144_v39  ;;  %v324_v43 = vand.u32 2147483647, %v3634_v8  ;;  %2654 = vlog2.f32 %v1187_v31  ;;  %v1190_v53 = vmul.f32 -0.5, %v3624_v16 }
  0xc4   :  { %2237 = vst [vmem:[#allocation5 + $0x130] sm:$0xff] %v2382_v3  ;;  %v1982_v60 = vadd.f32 %v1150_v61, %v190_v63  ;;  %v1159_v34 = vsel %vm3628_vm8, %v1156_v46, %v1153_v22  ;;  %vm3655_vm11 = vcmp.lt.f32.partialorder %v1184_v28, 0.0004427343  ;;  %v325_v4 = vand.u32 2147483647, %v3645_v49  ;;  %v3693_v46 = vld [vmem:[#allocation2 + $0x1a0] sm:$0xff] }
  0xc5   :  { %v2649_v12 = vpop.eup %2648  ;;  %v452_v10 = vsub.f32 0.0, %v324_v43  ;;  %v1983_v63 = vadd.f32 %v1159_v34, %v191_v41  ;;  %v1193_v2 = vand.u32 2147483647, %v3624_v16  ;;  %v1183_v25 = vmul.f32 %v2641_v1, %v1182_v62 }
  0xc6   :  { %v2651_v0 = vpop.eup %2650  ;;  %v2383_v42 = vadd.f32 -0.6931472, %v1982_v60  ;;  %v1162_v40 = vmul.f32 0.6931472, %v2649_v12  ;;  %v453_v15 = vsub.f32 0.0, %v325_v4  ;;  %v1191_v11 = vadd.f32 1.0, %v1190_v53 }
  0xc7   :  { %v1171_v23 = vmul.f32 0.6931472, %v2651_v0  ;;  %v625_v52 = vmul.f32 1.442695, %v452_v10  ;;  %v2384_v17 = vadd.f32 -0.6931472, %v1983_v63 }
  0xc8   :  { %2238 = vst [vmem:[#allocation5 + $0x138] sm:$0xff] %v2383_v42  ;;  %v1168_v19 = vsel %vm3636_vm9, %v1165_v18, %v1162_v40  ;;  %v326_v6 = vand.u32 2147483647, %v3660_v45  ;;  %v627_v1 = vmul.f32 1.442695, %v453_v15  ;;  %v196_v55 = vmax.f32 %v3634_v8, 0.0 }
  0xc9   :  { %v1984_v35 = vadd.f32 %v1168_v19, %v192_v27  ;;  %v1177_v41 = vsel %vm3640_vm10, %v1174_v33, %v1171_v23  ;;  %2656 = vpow2.f32 %v625_v52  ;;  %2239 = vst [vmem:[#allocation5 + $0x140] sm:$0xff] %v2384_v17  ;;  %vm3680_vm12 = vcmp.lt.f32.partialorder %v1193_v2, 0.0004427343  ;;  %v3685_v27 = vld [vmem:[#allocation2 + $0x198] sm:$0xff]  ;;  %v3698_v18 = vld [vmem:[#allocation2 + $0x1a8] sm:$0xff]  ;;  %v3702_v60 = vld [vmem:[#allocation2 + $0x1b0] sm:$0xff] }
  0xca   :  { %v2653_v58 = vpop.eup %2652  ;;  %v1985_v14 = vadd.f32 %v1177_v41, %v193_v38  ;;  %v454_v21 = vsub.f32 0.0, %v326_v6  ;;  %v327_v9 = vand.u32 2147483647, %v3665_v48  ;;  %2658 = vpow2.f32 %v627_v1  ;;  %v3714_v15 = vld [vmem:[#allocation2 + $0x1b8] sm:$0xff] }
  0xcb   :  { %v2385_v5 = vadd.f32 -0.6931472, %v1984_v35  ;;  %v1180_v32 = vmul.f32 0.6931472, %v2653_v58  ;;  %v328_v37 = vand.u32 2147483647, %v3670_v13  ;;  %v1192_v50 = vmul.f32 %v3624_v16, %v1191_v11 }
  0xcc   :  { %v2386_v51 = vadd.f32 -0.6931472, %v1985_v14  ;;  %v629_v44 = vmul.f32 1.442695, %v454_v21  ;;  %v455_v56 = vsub.f32 0.0, %v327_v9  ;;  %v197_v31 = vmax.f32 %v3645_v49, 0.0 }
  0xcd   :  { %2240 = vst [vmem:[#allocation5 + $0x148] sm:$0xff] %v2385_v5  ;;  %v1186_v38 = vsel %vm3655_vm11, %v1183_v25, %v1180_v32  ;;  %v456_v24 = vsub.f32 0.0, %v328_v37  ;;  %v329_v39 = vand.u32 2147483647, %v3676_v30  ;;  %v2655_v59 = vpop.eup %2654  ;;  %v330_v3 = vand.u32 2147483647, %v3685_v27 }
  0xce   :  { %2241 = vst [vmem:[#allocation5 + $0x150] sm:$0xff] %v2386_v51  ;;  %v1986_v28 = vadd.f32 %v1186_v38, %v194_v47  ;;  %2660 = vpow2.f32 %v629_v44  ;;  %v631_v54 = vmul.f32 1.442695, %v455_v56  ;;  %v1189_v36 = vmul.f32 0.6931472, %v2655_v59 }
  0xcf   :  { %v633_v16 = vmul.f32 1.442695, %v456_v24  ;;  %v457_v61 = vsub.f32 0.0, %v329_v39  ;;  %v458_v62 = vsub.f32 0.0, %v330_v3  ;;  %v331_v43 = vand.u32 2147483647, %v3693_v46 }
  0xd0   :  { %v2387_v22 = vadd.f32 -0.6931472, %v1986_v28  ;;  %2662 = vpow2.f32 %v631_v54  ;;  %v1195_v57 = vsel %vm3680_vm12, %v1192_v50, %v1189_v36  ;;  %v198_v47 = vmax.f32 %v3660_v45, 0.0 }
  0xd1   :  { %2664 = vpow2.f32 %v633_v16  ;;  %v635_v33 = vmul.f32 1.442695, %v457_v61  ;;  %v1987_v53 = vadd.f32 %v1195_v57, %v195_v7  ;;  %v637_v12 = vmul.f32 1.442695, %v458_v62 }
  0xd2   :  { %2242 = vst [vmem:[#allocation5 + $0x158] sm:$0xff] %v2387_v22  ;;  %v459_v34 = vsub.f32 0.0, %v331_v43  ;;  %v332_v26 = vand.u32 2147483647, %v3698_v18  ;;  %v199_v4 = vmax.f32 %v3665_v48, 0.0  ;;  %v200_v0 = vmax.f32 %v3670_v13, 0.0 }
  0xd3   :  { %v2657_v10 = vpop.eup %2656  ;;  %2666 = vpow2.f32 %v635_v33  ;;  %v333_v42 = vand.u32 2147483647, %v3702_v60  ;;  %v2388_v63 = vadd.f32 -0.6931472, %v1987_v53  ;;  %v201_v23 = vmax.f32 %v3676_v30, 0.0 }
  0xd4   :  { %v1196_v40 = vadd.f32 1.0, %v2657_v10  ;;  %v1199_v2 = vmul.f32 -0.5, %v2657_v10  ;;  %v2659_v25 = vpop.eup %2658  ;;  %v1202_v29 = vand.u32 2147483647, %v2657_v10  ;;  %2668 = vpow2.f32 %v637_v12 }
  0xd5   :  { %v639_v7 = vmul.f32 1.442695, %v459_v34  ;;  %v460_v52 = vsub.f32 0.0, %v332_v26  ;;  %2243 = vst [vmem:[#allocation5 + $0x160] sm:$0xff] %v2388_v63  ;;  %v1205_v19 = vadd.f32 1.0, %v2659_v25  ;;  %v461_v11 = vsub.f32 0.0, %v333_v42 }
  0xd6   :  { %2670 = vlog2.f32 %v1196_v40  ;;  %v1200_v17 = vadd.f32 1.0, %v1199_v2  ;;  %v1208_v6 = vmul.f32 -0.5, %v2659_v25  ;;  %v202_v35 = vmax.f32 %v3685_v27, 0.0 }
  0xd7   :  { %2672 = vpow2.f32 %v639_v7  ;;  %v641_v41 = vmul.f32 1.442695, %v460_v52  ;;  %v1211_v58 = vand.u32 2147483647, %v2659_v25  ;;  %v203_v14 = vmax.f32 %v3693_v46, 0.0 }
  0xd8   :  { %v2661_v1 = vpop.eup %2660  ;;  %2674 = vlog2.f32 %v1205_v19  ;;  %v334_v20 = vand.u32 2147483647, %v3714_v15  ;;  %vm3719_vm13 = vcmp.lt.f32.partialorder %v1202_v29, 0.0004427343  ;;  %v204_v32 = vmax.f32 %v3698_v18, 0.0  ;;  %v3823_v18 = vld [vmem:[#allocation2 + $0x1f0] sm:$0xff] }
  0xd9   :  { %v1214_v9 = vadd.f32 1.0, %v2661_v1  ;;  %v1217_v5 = vmul.f32 -0.5, %v2661_v1  ;;  %v1201_v51 = vmul.f32 %v2657_v10, %v1200_v17  ;;  %v1209_v44 = vadd.f32 1.0, %v1208_v6 }
  0xda   :  { %v2663_v37 = vpop.eup %2662  ;;  %2676 = vpow2.f32 %v641_v41  ;;  %v3724_v56 = vmul.f32 1.442695, %v461_v11  ;;  %v1220_v24 = vand.u32 2147483647, %v2661_v1  ;;  %vm3726_vm14 = vcmp.lt.f32.partialorder %v1211_v58, 0.0004427343 }
  0xdb   :  { %v2665_v38 = vpop.eup %2664  ;;  %2678 = vlog2.f32 %v1214_v9  ;;  %v1218_v50 = vadd.f32 1.0, %v1217_v5  ;;  %v1223_v39 = vadd.f32 1.0, %v2663_v37  ;;  %v1226_v28 = vmul.f32 -0.5, %v2663_v37 }
  0xdc   :  { %v1232_v54 = vadd.f32 1.0, %v2665_v38  ;;  %v3730_v3 = vsub.f32 0.0, %v334_v20  ;;  %v1229_v16 = vand.u32 2147483647, %v2663_v37  ;;  %v1235_v61 = vmul.f32 -0.5, %v2665_v38 }
  0xdd   :  { %v2667_v36 = vpop.eup %2666  ;;  %2680 = vlog2.f32 %v1223_v39  ;;  %v1238_v22 = vand.u32 2147483647, %v2665_v38  ;;  %v1210_v62 = vmul.f32 %v2659_v25, %v1209_v44  ;;  %v1227_v43 = vadd.f32 1.0, %v1226_v28 }
  0xde   :  { %2682 = vlog2.f32 %v1232_v54  ;;  %v1241_v57 = vadd.f32 1.0, %v2667_v36  ;;  %v2669_v33 = vpop.eup %2668  ;;  %v1219_v53 = vmul.f32 %v2661_v1, %v1218_v50  ;;  %vm3732_vm15 = vcmp.lt.f32.partialorder %v1220_v24, 0.0004427343 }
  0xdf   :  { %v1236_v34 = vadd.f32 1.0, %v1235_v61  ;;  %v1244_v26 = vmul.f32 -0.5, %v2667_v36  ;;  %v1247_v42 = vand.u32 2147483647, %v2667_v36  ;;  %v1250_v63 = vadd.f32 1.0, %v2669_v33 }
  0xe0   :  { %v2671_v10 = vpop.eup %2670  ;;  %2684 = vlog2.f32 %v1241_v57  ;;  %v1253_v40 = vmul.f32 -0.5, %v2669_v33  ;;  %v1228_v7 = vmul.f32 %v2663_v37, %v1227_v43  ;;  %vm3736_vm0 = vcmp.lt.f32.partialorder %v1229_v16, 0.0004427343 }
  0xe1   :  { %v2673_v2 = vpop.eup %2672  ;;  %v1198_v29 = vmul.f32 0.6931472, %v2671_v10  ;;  %vm3740_vm1 = vcmp.lt.f32.partialorder %v1238_v22, 0.0004427343  ;;  %v1245_v19 = vadd.f32 1.0, %v1244_v26  ;;  %2686 = vlog2.f32 %v1250_v63  ;;  %v3764_v22 = vld [vmem:[#allocation2 + $0x1c0] sm:$0xff] }
  0xe2   :  { %v2675_v17 = vpop.eup %2674  ;;  %v1254_v11 = vadd.f32 1.0, %v1253_v40  ;;  %v1259_v6 = vadd.f32 1.0, %v2673_v2  ;;  %v1256_v58 = vand.u32 2147483647, %v2669_v33  ;;  %v1262_v20 = vmul.f32 -0.5, %v2673_v2  ;;  %v3775_v26 = vld [vmem:[#allocation2 + $0x1c8] sm:$0xff] }
  0xe3   :  { %v1204_v41 = vsel %vm3719_vm13, %v1201_v51, %v1198_v29  ;;  %v1207_v1 = vmul.f32 0.6931472, %v2675_v17  ;;  %v1237_v37 = vmul.f32 %v2665_v38, %v1236_v34  ;;  %vm3750_vm2 = vcmp.lt.f32.partialorder %v1247_v42, 0.0004427343  ;;  %v3788_v17 = vld [vmem:[#allocation2 + $0x1d0] sm:$0xff] }
  0xe4   :  { %v3746_v9 = vpop.eup %2676  ;;  %v1988_v5 = vadd.f32 %v1204_v41, %v196_v55  ;;  %2688 = vlog2.f32 %v1259_v6  ;;  %v1263_v21 = vadd.f32 1.0, %v1262_v20  ;;  %v1265_v51 = vand.u32 2147483647, %v2673_v2 }
  0xe5   :  { %v2679_v50 = vpop.eup %2678  ;;  %v1213_v24 = vsel %vm3726_vm14, %v1210_v62, %v1207_v1  ;;  %v1268_v39 = vadd.f32 1.0, %v3746_v9  ;;  %v1246_v55 = vmul.f32 %v2667_v36, %v1245_v19  ;;  %v1255_v16 = vmul.f32 %v2669_v33, %v1254_v11 }
  0xe6   :  { %v2389_v28 = vadd.f32 -0.6931472, %v1988_v5  ;;  %v1989_v54 = vadd.f32 %v1213_v24, %v197_v31  ;;  %v1216_v8 = vmul.f32 0.6931472, %v2679_v50  ;;  %vm3759_vm3 = vcmp.lt.f32.partialorder %v1256_v58, 0.0004427343 }
  0xe7   :  { %v2681_v38 = vpop.eup %2680  ;;  %2690 = vlog2.f32 %v1268_v39  ;;  %v1271_v59 = vmul.f32 -0.5, %v3746_v9  ;;  %v1264_v57 = vmul.f32 %v2673_v2, %v1263_v21  ;;  %vm3770_vm4 = vcmp.lt.f32.partialorder %v1265_v51, 0.0004427343 }
  0xe8   :  { %v2683_v62 = vpop.eup %2682  ;;  %2244 = vst [vmem:[#allocation5 + $0x168] sm:$0xff] %v2389_v28  ;;  %v2390_v43 = vadd.f32 -0.6931472, %v1989_v54  ;;  %v1222_v49 = vsel %vm3732_vm15, %v1219_v53, %v1216_v8  ;;  %v1225_v31 = vmul.f32 0.6931472, %v2681_v38  ;;  %2692 = vpow2.f32 %v3724_v56 }
  0xe9   :  { %v1990_v36 = vadd.f32 %v1222_v49, %v198_v47  ;;  %v1234_v33 = vmul.f32 0.6931472, %v2683_v62  ;;  %v1274_v53 = vand.u32 2147483647, %v3746_v9  ;;  %v645_v42 = vmul.f32 1.442695, %v3730_v3 }
  0xea   :  { %v2685_v10 = vpop.eup %2684  ;;  %2245 = vst [vmem:[#allocation5 + $0x170] sm:$0xff] %v2390_v43  ;;  %v1231_v12 = vsel %vm3736_vm0, %v1228_v7, %v1225_v31  ;;  %v335_v45 = vand.u32 2147483647, %v3764_v22  ;;  %v1272_v25 = vadd.f32 1.0, %v1271_v59  ;;  %v3790_v3 = vld [vmem:[#allocation2 + $0x1d8] sm:$0xff]  ;;  %v3819_v49 = vld [vmem:[#allocation2 + $0x1e8] sm:$0xff] }
  0xeb   :  { %v2391_v47 = vadd.f32 -0.6931472, %v1990_v36  ;;  %v1991_v63 = vadd.f32 %v1231_v12, %v199_v4  ;;  %v1240_v56 = vsel %vm3740_vm1, %v1237_v37, %v1234_v33  ;;  %v1243_v40 = vmul.f32 0.6931472, %v2685_v10  ;;  %v2687_v2 = vpop.eup %2686 }
  0xec   :  { %v1992_v29 = vadd.f32 %v1240_v56, %v200_v0  ;;  %2694 = vpow2.f32 %v645_v42  ;;  %v463_v7 = vsub.f32 0.0, %v335_v45  ;;  %v1252_v4 = vmul.f32 0.6931472, %v2687_v2  ;;  %v3831_v56 = vld [vmem:[#allocation2 + $0x200] sm:$0xff] }
  0xed   :  { %2246 = vst [vmem:[#allocation5 + $0x178] sm:$0xff] %v2391_v47  ;;  %v2392_v19 = vadd.f32 -0.6931472, %v1991_v63  ;;  %v1249_v48 = vsel %vm3750_vm2, %v1246_v55, %v1243_v40  ;;  %v336_v52 = vand.u32 2147483647, %v3775_v26  ;;  %v1273_v30 = vmul.f32 %v3746_v9, %v1272_v25  ;;  %v3829_v63 = vld [vmem:[#allocation2 + $0x1f8] sm:$0xff] }
  0xee   :  { %v2689_v11 = vpop.eup %2688  ;;  %v2393_v6 = vadd.f32 -0.6931472, %v1992_v29  ;;  %v1993_v13 = vadd.f32 %v1249_v48, %v201_v23  ;;  %vm3797_vm5 = vcmp.lt.f32.partialorder %v1274_v53, 0.0004427343  ;;  %v647_v41 = vmul.f32 1.442695, %v463_v7 }
  0xef   :  { %2247 = vst [vmem:[#allocation5 + $0x180] sm:$0xff] %v2392_v19  ;;  %v1258_v1 = vsel %vm3759_vm3, %v1255_v16, %v1252_v4  ;;  %v1261_v58 = vmul.f32 0.6931472, %v2689_v11  ;;  %v464_v20 = vsub.f32 0.0, %v336_v52  ;;  %v337_v5 = vand.u32 2147483647, %v3788_v17 }
  0xf0   :  { %2248 = vst [vmem:[#allocation5 + $0x188] sm:$0xff] %v2393_v6  ;;  %v2394_v37 = vadd.f32 -0.6931472, %v1993_v13  ;;  %v1994_v44 = vadd.f32 %v1258_v1, %v202_v35  ;;  %2696 = vpow2.f32 %v647_v41  ;;  %v3807_v23 = vld [vmem:[#allocation2 + $0x1e0] sm:$0xff]  ;;  %v338_v39 = vand.u32 2147483647, %v3790_v3 }
  0xf1   :  { %v2691_v50 = vpop.eup %2690  ;;  %v1267_v24 = vsel %vm3770_vm4, %v1264_v57, %v1261_v58  ;;  %v649_v21 = vmul.f32 1.442695, %v464_v20  ;;  %v465_v51 = vsub.f32 0.0, %v337_v5  ;;  %v339_v55 = vand.u32 2147483647, %v3807_v23 }
  0xf2   :  { %2249 = vst [vmem:[#allocation5 + $0x190] sm:$0xff] %v2394_v37  ;;  %v2395_v28 = vadd.f32 -0.6931472, %v1994_v44  ;;  %v1995_v54 = vadd.f32 %v1267_v24, %v203_v14  ;;  %v1270_v27 = vmul.f32 0.6931472, %v2691_v50  ;;  %v2693_v35 = vpop.eup %2692  ;;  %v466_v8 = vsub.f32 0.0, %v338_v39 }
  0xf3   :  { %2698 = vpow2.f32 %v649_v21  ;;  %v651_v9 = vmul.f32 1.442695, %v465_v51  ;;  %v1277_v61 = vadd.f32 1.0, %v2693_v35  ;;  %v1280_v14 = vmul.f32 -0.5, %v2693_v35 }
  0xf4   :  { %2250 = vst [vmem:[#allocation5 + $0x198] sm:$0xff] %v2395_v28  ;;  %v2396_v38 = vadd.f32 -0.6931472, %v1995_v54  ;;  %v1276_v16 = vsel %vm3797_vm5, %v1273_v30, %v1270_v27  ;;  %v653_v62 = vmul.f32 1.442695, %v466_v8  ;;  %v467_v43 = vsub.f32 0.0, %v339_v55 }
  0xf5   :  { %v1996_v59 = vadd.f32 %v1276_v16, %v204_v32  ;;  %2700 = vpow2.f32 %v651_v9  ;;  %v205_v57 = vmax.f32 %v3702_v60, 0.0  ;;  %v206_v33 = vmax.f32 %v3714_v15, 0.0 }
  0xf6   :  { %v2695_v46 = vpop.eup %2694  ;;  %2251 = vst [vmem:[#allocation5 + $0x1a0] sm:$0xff] %v2396_v38  ;;  %2702 = vlog2.f32 %v1277_v61  ;;  %v655_v10 = vmul.f32 1.442695, %v467_v43  ;;  %v207_v32 = vmax.f32 %v3764_v22, 0.0  ;;  %v208_v12 = vmax.f32 %v3775_v26, 0.0 }
  0xf7   :  { %v2397_v31 = vadd.f32 -0.6931472, %v1996_v59  ;;  %v1286_v36 = vadd.f32 1.0, %v2695_v46  ;;  %v1289_v34 = vmul.f32 -0.5, %v2695_v46  ;;  %2704 = vpow2.f32 %v653_v62 }
  0xf8   :  { %v340_v53 = vand.u32 2147483647, %v3819_v49  ;;  %v1281_v45 = vadd.f32 1.0, %v1280_v14  ;;  %v1283_v47 = vand.u32 2147483647, %v2693_v35  ;;  %v209_v60 = vmax.f32 %v3788_v17, 0.0 }
  0xf9   :  { %2252 = vst [vmem:[#allocation5 + $0x1a8] sm:$0xff] %v2397_v31  ;;  %2706 = vlog2.f32 %v1286_v36  ;;  %v1292_v40 = vand.u32 2147483647, %v2695_v46  ;;  %v341_v25 = vand.u32 2147483647, %v3823_v18  ;;  %v1290_v7 = vadd.f32 1.0, %v1289_v34 }
  0xfa   :  { %v2697_v42 = vpop.eup %2696  ;;  %2708 = vpow2.f32 %v655_v10  ;;  %v210_v19 = vmax.f32 %v3790_v3, 0.0  ;;  %v211_v48 = vmax.f32 %v3807_v23, 0.0  ;;  %v468_v4 = vsub.f32 0.0, %v340_v53 }
  0xfb   :  { %v1295_v2 = vadd.f32 1.0, %v2697_v42  ;;  %v1298_v29 = vmul.f32 -0.5, %v2697_v42  ;;  %v1301_v11 = vand.u32 2147483647, %v2697_v42  ;;  %v212_v6 = vmax.f32 %v3819_v49, 0.0 }
  0xfc   :  { %v342_v13 = vand.u32 2147483647, %v3829_v63  ;;  %v657_v1 = vmul.f32 1.442695, %v468_v4  ;;  %v343_v58 = vand.u32 2147483647, %v3831_v56  ;;  %v1282_v5 = vmul.f32 %v2693_v35, %v1281_v45 }
  0xfd   :  { %v2699_v52 = vpop.eup %2698  ;;  %2710 = vlog2.f32 %v1295_v2  ;;  %v1299_v0 = vadd.f32 1.0, %v1298_v29  ;;  %vm3839_vm6 = vcmp.lt.f32.partialorder %v1283_v47, 0.0004427343  ;;  %vm3843_vm7 = vcmp.lt.f32.partialorder %v1292_v40, 0.0004427343 }
  0xfe   :  { %v1304_v41 = vadd.f32 1.0, %v2699_v52  ;;  %v469_v30 = vsub.f32 0.0, %v341_v25  ;;  %v1291_v24 = vmul.f32 %v2695_v46, %v1290_v7  ;;  %v1307_v21 = vmul.f32 -0.5, %v2699_v52  ;;  %v3865_v25 = vld [vmem:[#allocation2 + $0x208] sm:$0xff] }
  0xff   :  { %v2701_v20 = vpop.eup %2700  ;;  %vm3847_vm8 = vcmp.lt.f32.partialorder %v1301_v11, 0.0004427343  ;;  %v470_v54 = vsub.f32 0.0, %v342_v13  ;;  %v1300_v35 = vmul.f32 %v2697_v42, %v1299_v0  ;;  %v1310_v9 = vand.u32 2147483647, %v2699_v52  ;;  %v3867_v13 = vld [vmem:[#allocation2 + $0x210] sm:$0xff] }
 0x100   :  { %v2703_v50 = vpop.eup %2702  ;;  %2712 = vlog2.f32 %v1304_v41  ;;  %v1313_v51 = vadd.f32 1.0, %v2701_v20  ;;  %v471_v8 = vsub.f32 0.0, %v343_v58  ;;  %v1316_v16 = vmul.f32 -0.5, %v2701_v20 }
 0x101   :  { %v1279_v39 = vmul.f32 0.6931472, %v2703_v50  ;;  %2714 = vpow2.f32 %v657_v1  ;;  %v2705_v27 = vpop.eup %2704  ;;  %v659_v59 = vmul.f32 1.442695, %v469_v30  ;;  %v1308_v43 = vadd.f32 1.0, %v1307_v21 }
 0x102   :  { %2716 = vlog2.f32 %v1313_v51  ;;  %v1322_v61 = vadd.f32 1.0, %v2705_v27  ;;  %v1319_v31 = vand.u32 2147483647, %v2701_v20  ;;  %v1325_v36 = vmul.f32 -0.5, %v2705_v27 }
 0x103   :  { %v2707_v55 = vpop.eup %2706  ;;  %v1285_v38 = vsel %vm3839_vm6, %v1282_v5, %v1279_v39  ;;  %v661_v10 = vmul.f32 1.442695, %v470_v54  ;;  %v663_v47 = vmul.f32 1.442695, %v471_v8  ;;  %vm3861_vm9 = vcmp.lt.f32.partialorder %v1310_v9, 0.0004427343 }
 0x104   :  { %v3853_v62 = vpop.eup %2708  ;;  %v1997_v46 = vadd.f32 %v1285_v38, %v205_v57  ;;  %v1288_v14 = vmul.f32 0.6931472, %v2707_v55  ;;  %2718 = vlog2.f32 %v1322_v61  ;;  %v1317_v29 = vadd.f32 1.0, %v1316_v16  ;;  %v3889_v9 = vld [vmem:[#allocation2 + $0x218] sm:$0xff] }
 0x105   :  { %v1331_v34 = vadd.f32 1.0, %v3853_v62  ;;  %v1334_v45 = vmul.f32 -0.5, %v3853_v62  ;;  %v1309_v4 = vmul.f32 %v2699_v52, %v1308_v43  ;;  %v1328_v11 = vand.u32 2147483647, %v2705_v27 }
 0x106   :  { %v2398_v53 = vadd.f32 -0.6931472, %v1997_v46  ;;  %v1294_v42 = vsel %vm3843_vm7, %v1291_v24, %v1288_v14  ;;  %vm3869_vm10 = vcmp.lt.f32.partialorder %v1319_v31, 0.0004427343  ;;  %v1326_v15 = vadd.f32 1.0, %v1325_v36 }
 0x107   :  { %v2711_v40 = vpop.eup %2710  ;;  %v1998_v2 = vadd.f32 %v1294_v42, %v206_v33  ;;  %2720 = vlog2.f32 %v1331_v34  ;;  %v1335_v58 = vadd.f32 1.0, %v1334_v45  ;;  %v344_v5 = vand.u32 2147483647, %v3865_v25  ;;  %v3906_v34 = vld [vmem:[#allocation2 + $0x220] sm:$0xff] }
 0x108   :  { %2253 = vst [vmem:[#allocation5 + $0x1b0] sm:$0xff] %v2398_v53  ;;  %v1297_v7 = vmul.f32 0.6931472, %v2711_v40  ;;  %2722 = vpow2.f32 %v659_v59  ;;  %v1318_v30 = vmul.f32 %v2701_v20, %v1317_v29  ;;  %v345_v50 = vand.u32 2147483647, %v3867_v13 }
 0x109   :  { %v2399_v0 = vadd.f32 -0.6931472, %v1998_v2  ;;  %2724 = vpow2.f32 %v661_v10  ;;  %vm3881_vm11 = vcmp.lt.f32.partialorder %v1328_v11, 0.0004427343  ;;  %v1337_v51 = vand.u32 2147483647, %v3853_v62 }
 0x10a   :  { %v2713_v33 = vpop.eup %2712  ;;  %v1303_v1 = vsel %vm3847_vm8, %v1300_v35, %v1297_v7  ;;  %2726 = vpow2.f32 %v663_v47  ;;  %v472_v28 = vsub.f32 0.0, %v344_v5  ;;  %v1327_v8 = vmul.f32 %v2705_v27, %v1326_v15 }
 0x10b   :  { %v3876_v52 = vpop.eup %2714  ;;  %2254 = vst [vmem:[#allocation5 + $0x1b8] sm:$0xff] %v2399_v0  ;;  %v1999_v37 = vadd.f32 %v1303_v1, %v207_v32  ;;  %v1306_v44 = vmul.f32 0.6931472, %v2713_v33  ;;  %v473_v32 = vsub.f32 0.0, %v345_v50  ;;  %v1336_v55 = vmul.f32 %v3853_v62, %v1335_v58 }
 0x10c   :  { %v2717_v24 = vpop.eup %2716  ;;  %v1340_v39 = vadd.f32 1.0, %v3876_v52  ;;  %v1343_v61 = vmul.f32 -0.5, %v3876_v52  ;;  %v665_v59 = vmul.f32 1.442695, %v472_v28  ;;  %v346_v26 = vand.u32 2147483647, %v3889_v9 }
 0x10d   :  { %v2400_v54 = vadd.f32 -0.6931472, %v1999_v37  ;;  %v1312_v35 = vsel %vm3861_vm9, %v1309_v4, %v1306_v44  ;;  %v1315_v22 = vmul.f32 0.6931472, %v2717_v24  ;;  %v667_v46 = vmul.f32 1.442695, %v473_v32 }
 0x10e   :  { %v2000_v20 = vadd.f32 %v1312_v35, %v208_v12  ;;  %2728 = vlog2.f32 %v1340_v39  ;;  %v2719_v38 = vpop.eup %2718  ;;  %vm3900_vm12 = vcmp.lt.f32.partialorder %v1337_v51, 0.0004427343  ;;  %v213_v62 = vmax.f32 %v3823_v18, 0.0  ;;  %v3924_v44 = vld [vmem:[#allocation2 + $0x228] sm:$0xff]  ;;  %v3932_v39 = vld [vmem:[#allocation2 + $0x230] sm:$0xff] }
 0x10f   :  { %2255 = vst [vmem:[#allocation5 + $0x1c0] sm:$0xff] %v2400_v54  ;;  %v1321_v16 = vsel %vm3869_vm10, %v1318_v30, %v1315_v22  ;;  %v1324_v31 = vmul.f32 0.6931472, %v2719_v38  ;;  %v214_v36 = vmax.f32 %v3829_v63, 0.0  ;;  %2730 = vpow2.f32 %v665_v59 }
 0x110   :  { %v2401_v14 = vadd.f32 -0.6931472, %v2000_v20  ;;  %v2001_v43 = vadd.f32 %v1321_v16, %v209_v60  ;;  %2732 = vpow2.f32 %v667_v46  ;;  %v1344_v47 = vadd.f32 1.0, %v1343_v61 }
 0x111   :  { %v2721_v12 = vpop.eup %2720  ;;  %v1330_v17 = vsel %vm3881_vm11, %v1327_v8, %v1324_v31  ;;  %v1346_v40 = vand.u32 2147483647, %v3876_v52  ;;  %v474_v4 = vsub.f32 0.0, %v346_v26  ;;  %v347_v11 = vand.u32 2147483647, %v3906_v34 }
 0x112   :  { %v2723_v10 = vpop.eup %2722  ;;  %2256 = vst [vmem:[#allocation5 + $0x1c8] sm:$0xff] %v2401_v14  ;;  %v2402_v53 = vadd.f32 -0.6931472, %v2001_v43  ;;  %v1333_v60 = vmul.f32 0.6931472, %v2721_v12  ;;  %v2002_v45 = vadd.f32 %v1330_v17, %v210_v19  ;;  %v215_v3 = vmax.f32 %v3831_v56, 0.0 }
 0x113   :  { %v2725_v42 = vpop.eup %2724  ;;  %v1349_v2 = vadd.f32 1.0, %v2723_v10  ;;  %v1352_v19 = vmul.f32 -0.5, %v2723_v10  ;;  %v1355_v15 = vand.u32 2147483647, %v2723_v10  ;;  %v216_v33 = vmax.f32 %v3865_v25, 0.0 }
 0x114   :  { %v3913_v57 = vpop.eup %2726  ;;  %2257 = vst [vmem:[#allocation5 + $0x1d0] sm:$0xff] %v2402_v53  ;;  %v1339_v29 = vsel %vm3900_vm12, %v1336_v55, %v1333_v60  ;;  %v1358_v7 = vadd.f32 1.0, %v2725_v42  ;;  %v2403_v0 = vadd.f32 -0.6931472, %v2002_v45  ;;  %v1345_v58 = vmul.f32 %v3876_v52, %v1344_v47  ;;  %v3953_v53 = vld [vmem:[#allocation2 + $0x238] sm:$0xff]  ;;  %v3959_v45 = vld [vmem:[#allocation2 + $0x240] sm:$0xff] }
 0x115   :  { %v2003_v41 = vadd.f32 %v1339_v29, %v211_v48  ;;  %2734 = vlog2.f32 %v1349_v2  ;;  %v1361_v5 = vmul.f32 -0.5, %v2725_v42  ;;  %v1367_v37 = vadd.f32 1.0, %v3913_v57 }
 0x116   :  { %2736 = vlog2.f32 %v1358_v7  ;;  %2258 = vst [vmem:[#allocation5 + $0x1d8] sm:$0xff] %v2403_v0  ;;  %vm3926_vm13 = vcmp.lt.f32.partialorder %v1346_v40, 0.0004427343  ;;  %v217_v48 = vmax.f32 %v3867_v13, 0.0  ;;  %v669_v50 = vmul.f32 1.442695, %v474_v4 }
 0x117   :  { %v2404_v1 = vadd.f32 -0.6931472, %v2003_v41  ;;  %v475_v24 = vsub.f32 0.0, %v347_v11  ;;  %v1364_v51 = vand.u32 2147483647, %v2725_v42  ;;  %2738 = vlog2.f32 %v1367_v37 }
 0x118   :  { %v2729_v30 = vpop.eup %2728  ;;  %v1370_v52 = vmul.f32 -0.5, %v3913_v57  ;;  %v1353_v28 = vadd.f32 1.0, %v1352_v19  ;;  %vm3934_vm14 = vcmp.lt.f32.partialorder %v1355_v15, 0.0004427343  ;;  %2740 = vpow2.f32 %v669_v50 }
 0x119   :  { %2259 = vst [vmem:[#allocation5 + $0x1e0] sm:$0xff] %v2404_v1  ;;  %v1342_v21 = vmul.f32 0.6931472, %v2729_v30  ;;  %v671_v35 = vmul.f32 1.442695, %v475_v24  ;;  %v2731_v22 = vpop.eup %2730  ;;  %v1362_v20 = vadd.f32 1.0, %v1361_v5 }
 0x11a   :  { %v1373_v8 = vand.u32 2147483647, %v3913_v57  ;;  %v348_v55 = vand.u32 2147483647, %v3924_v44  ;;  %v3942_v38 = vpop.eup %2732  ;;  %v1376_v61 = vadd.f32 1.0, %v2731_v22  ;;  %v1379_v59 = vmul.f32 -0.5, %v2731_v22 }
 0x11b   :  { %v1348_v32 = vsel %vm3926_vm13, %v1345_v58, %v1342_v21  ;;  %v349_v46 = vand.u32 2147483647, %v3932_v39  ;;  %vm3947_vm15 = vcmp.lt.f32.partialorder %v1364_v51, 0.0004427343  ;;  %v1371_v43 = vadd.f32 1.0, %v1370_v52 }
 0x11c   :  { %v2004_v16 = vadd.f32 %v1348_v32, %v212_v6  ;;  %v1385_v31 = vadd.f32 1.0, %v3942_v38  ;;  %2742 = vpow2.f32 %v671_v35  ;;  %v1354_v12 = vmul.f32 %v2723_v10, %v1353_v28 }
 0x11d   :  { %2744 = vlog2.f32 %v1376_v61  ;;  %v1388_v27 = vmul.f32 -0.5, %v3942_v38  ;;  %v1363_v6 = vmul.f32 %v2725_v42, %v1362_v20  ;;  %vm3955_vm0 = vcmp.lt.f32.partialorder %v1373_v8, 0.0004427343  ;;  %v3990_v61 = vld [vmem:[#allocation2 + $0x248] sm:$0xff] }
 0x11e   :  { %v2405_v26 = vadd.f32 -0.6931472, %v2004_v16  ;;  %2746 = vlog2.f32 %v1385_v31  ;;  %v476_v60 = vsub.f32 0.0, %v348_v55  ;;  %v1380_v2 = vadd.f32 1.0, %v1379_v59 }
 0x11f   :  { %v2735_v49 = vpop.eup %2734  ;;  %v1382_v10 = vand.u32 2147483647, %v2731_v22  ;;  %v477_v29 = vsub.f32 0.0, %v349_v46  ;;  %v1372_v4 = vmul.f32 %v3913_v57, %v1371_v43  ;;  %v350_v42 = vand.u32 2147483647, %v3953_v53 }
 0x120   :  { %v2737_v47 = vpop.eup %2736  ;;  %2260 = vst [vmem:[#allocation5 + $0x1e8] sm:$0xff] %v2405_v26  ;;  %v1351_v40 = vmul.f32 0.6931472, %v2735_v49  ;;  %v673_v11 = vmul.f32 1.442695, %v476_v60  ;;  %v1389_v41 = vadd.f32 1.0, %v1388_v27 }
 0x121   :  { %v1360_v7 = vmul.f32 0.6931472, %v2737_v47  ;;  %v675_v19 = vmul.f32 1.442695, %v477_v29  ;;  %v351_v15 = vand.u32 2147483647, %v3959_v45  ;;  %v2739_v1 = vpop.eup %2738 }
 0x122   :  { %v1357_v0 = vsel %vm3934_vm14, %v1354_v12, %v1351_v40  ;;  %2748 = vpow2.f32 %v673_v11  ;;  %v478_v37 = vsub.f32 0.0, %v350_v42  ;;  %v3970_v57 = vpop.eup %2740  ;;  %v1369_v23 = vmul.f32 0.6931472, %v2739_v1  ;;  %v4003_v27 = vld [vmem:[#allocation2 + $0x250] sm:$0xff] }
 0x123   :  { %v2005_v58 = vadd.f32 %v1357_v0, %v213_v62  ;;  %v1366_v5 = vsel %vm3947_vm15, %v1363_v6, %v1360_v7  ;;  %2750 = vpow2.f32 %v675_v19  ;;  %v479_v50 = vsub.f32 0.0, %v351_v15  ;;  %v4014_v7 = vld [vmem:[#allocation2 + $0x258] sm:$0xff] }
 0x124   :  { %v2006_v30 = vadd.f32 %v1366_v5, %v214_v36  ;;  %v1391_v21 = vand.u32 2147483647, %v3942_v38  ;;  %v218_v51 = vmax.f32 %v3889_v9, 0.0  ;;  %v1394_v18 = vadd.f32 1.0, %v3970_v57 }
 0x125   :  { %v2406_v24 = vadd.f32 -0.6931472, %v2005_v58  ;;  %v1375_v52 = vsel %vm3955_vm0, %v1372_v4, %v1369_v23  ;;  %v677_v28 = vmul.f32 1.442695, %v478_v37  ;;  %v679_v54 = vmul.f32 1.442695, %v479_v50 }
 0x126   :  { %v2407_v62 = vadd.f32 -0.6931472, %v2006_v30  ;;  %v3979_v35 = vpop.eup %2742  ;;  %v2007_v63 = vadd.f32 %v1375_v52, %v215_v3  ;;  %v1381_v36 = vmul.f32 %v2731_v22, %v1380_v2  ;;  %vm3983_vm1 = vcmp.lt.f32.partialorder %v1382_v10, 0.0004427343  ;;  %v4042_v22 = vld [vmem:[#allocation2 + $0x268] sm:$0xff] }
 0x127   :  { %2261 = vst [vmem:[#allocation5 + $0x1f0] sm:$0xff] %v2406_v24  ;;  %2752 = vlog2.f32 %v1394_v18  ;;  %v2745_v20 = vpop.eup %2744  ;;  %v1390_v8 = vmul.f32 %v3942_v38, %v1389_v41  ;;  %v1397_v55 = vmul.f32 -0.5, %v3970_v57  ;;  %v1403_v16 = vadd.f32 1.0, %v3979_v35 }
 0x128   :  { %2262 = vst [vmem:[#allocation5 + $0x1f8] sm:$0xff] %v2407_v62  ;;  %2754 = vpow2.f32 %v677_v28  ;;  %v2747_v59 = vpop.eup %2746  ;;  %v2408_v56 = vadd.f32 -0.6931472, %v2007_v63  ;;  %v1378_v3 = vmul.f32 0.6931472, %v2745_v20  ;;  %v219_v14 = vmax.f32 %v3906_v34, 0.0 }
 0x129   :  { %vm3992_vm2 = vcmp.lt.f32.partialorder %v1391_v21, 0.0004427343  ;;  %2756 = vpow2.f32 %v679_v54  ;;  %v1387_v46 = vmul.f32 0.6931472, %v2747_v59  ;;  %v220_v38 = vmax.f32 %v3924_v44, 0.0 }
 0x12a   :  { %2758 = vlog2.f32 %v1403_v16  ;;  %2263 = vst [vmem:[#allocation5 + $0x200] sm:$0xff] %v2408_v56  ;;  %v1384_v43 = vsel %vm3983_vm1, %v1381_v36, %v1378_v3  ;;  %v1406_v31 = vmul.f32 -0.5, %v3979_v35  ;;  %v221_v26 = vmax.f32 %v3932_v39, 0.0  ;;  %v4040_v3 = vld [vmem:[#allocation2 + $0x260] sm:$0xff] }
 0x12b   :  { %v352_v12 = vand.u32 2147483647, %v3990_v61  ;;  %v2008_v49 = vadd.f32 %v1384_v43, %v216_v33  ;;  %v1393_v6 = vsel %vm3992_vm2, %v1390_v8, %v1387_v46  ;;  %v1398_v17 = vadd.f32 1.0, %v1397_v55  ;;  %v4044_v46 = vld [vmem:[#allocation2 + $0x270] sm:$0xff] }
 0x12c   :  { %v222_v60 = vmax.f32 %v3953_v53, 0.0  ;;  %v2749_v47 = vpop.eup %2748  ;;  %v2009_v40 = vadd.f32 %v1393_v6, %v217_v48  ;;  %v1400_v2 = vand.u32 2147483647, %v3970_v57  ;;  %v1409_v10 = vand.u32 2147483647, %v3979_v35 }
 0x12d   :  { %v480_v29 = vsub.f32 0.0, %v352_v12  ;;  %v2751_v4 = vpop.eup %2750  ;;  %v2409_v25 = vadd.f32 -0.6931472, %v2008_v49  ;;  %v1412_v33 = vadd.f32 1.0, %v2749_v47  ;;  %v1415_v11 = vmul.f32 -0.5, %v2749_v47 }
 0x12e   :  { %v353_v42 = vand.u32 2147483647, %v4003_v27  ;;  %v2410_v0 = vadd.f32 -0.6931472, %v2009_v40  ;;  %v1407_v41 = vadd.f32 1.0, %v1406_v31  ;;  %v1421_v15 = vadd.f32 1.0, %v2751_v4 }
 0x12f   :  { %v1418_v19 = vand.u32 2147483647, %v2749_v47  ;;  %2264 = vst [vmem:[#allocation5 + $0x208] sm:$0xff] %v2409_v25  ;;  %v1399_v13 = vmul.f32 %v3970_v57, %v1398_v17  ;;  %2760 = vlog2.f32 %v1412_v33  ;;  %v681_v48 = vmul.f32 1.442695, %v480_v29 }
 0x130   :  { %v354_v1 = vand.u32 2147483647, %v4014_v7  ;;  %2265 = vst [vmem:[#allocation5 + $0x210] sm:$0xff] %v2410_v0  ;;  %vm4019_vm3 = vcmp.lt.f32.partialorder %v1400_v2, 0.0004427343  ;;  %2762 = vlog2.f32 %v1421_v15  ;;  %v1424_v30 = vmul.f32 -0.5, %v2751_v4 }
 0x131   :  { %v2753_v58 = vpop.eup %2752  ;;  %vm4023_vm4 = vcmp.lt.f32.partialorder %v1409_v10, 0.0004427343  ;;  %v1416_v24 = vadd.f32 1.0, %v1415_v11  ;;  %v1427_v57 = vand.u32 2147483647, %v2751_v4  ;;  %2764 = vpow2.f32 %v681_v48  ;;  %v4053_v11 = vld [vmem:[#allocation2 + $0x278] sm:$0xff] }
 0x132   :  { %v2755_v23 = vpop.eup %2754  ;;  %v1396_v50 = vmul.f32 0.6931472, %v2753_v58  ;;  %v1408_v18 = vmul.f32 %v3979_v35, %v1407_v41  ;;  %vm4028_vm5 = vcmp.lt.f32.partialorder %v1418_v19, 0.0004427343  ;;  %v481_v28 = vsub.f32 0.0, %v353_v42 }
 0x133   :  { %v2757_v21 = vpop.eup %2756  ;;  %v1430_v52 = vadd.f32 1.0, %v2755_v23  ;;  %v1433_v36 = vmul.f32 -0.5, %v2755_v23  ;;  %v482_v20 = vsub.f32 0.0, %v354_v1  ;;  %v1417_v35 = vmul.f32 %v2749_v47, %v1416_v24 }
 0x134   :  { %v2759_v54 = vpop.eup %2758  ;;  %v1402_v63 = vsel %vm4019_vm3, %v1399_v13, %v1396_v50  ;;  %v1439_v32 = vadd.f32 1.0, %v2757_v21  ;;  %v1442_v16 = vmul.f32 -0.5, %v2757_v21  ;;  %v1425_v59 = vadd.f32 1.0, %v1424_v30 }
 0x135   :  { %v2010_v8 = vadd.f32 %v1402_v63, %v218_v51  ;;  %v1405_v55 = vmul.f32 0.6931472, %v2759_v54  ;;  %2766 = vlog2.f32 %v1430_v52  ;;  %vm4036_vm6 = vcmp.lt.f32.partialorder %v1427_v57, 0.0004427343 }
 0x136   :  { %2768 = vlog2.f32 %v1439_v32  ;;  %v1436_v51 = vand.u32 2147483647, %v2755_v23  ;;  %v683_v31 = vmul.f32 1.442695, %v481_v28  ;;  %v1434_v49 = vadd.f32 1.0, %v1433_v36  ;;  %v4082_v32 = vld [vmem:[#allocation2 + $0x280] sm:$0xff] }
 0x137   :  { %v2411_v43 = vadd.f32 -0.6931472, %v2010_v8  ;;  %v1411_v9 = vsel %vm4023_vm4, %v1408_v18, %v1405_v55  ;;  %v1445_v6 = vand.u32 2147483647, %v2757_v21  ;;  %v685_v17 = vmul.f32 1.442695, %v482_v20 }
 0x138   :  { %v2011_v12 = vadd.f32 %v1411_v9, %v219_v14  ;;  %v1443_v47 = vadd.f32 1.0, %v1442_v16  ;;  %2770 = vpow2.f32 %v683_v31  ;;  %v355_v40 = vand.u32 2147483647, %v4040_v3 }
 0x139   :  { %2266 = vst [vmem:[#allocation5 + $0x218] sm:$0xff] %v2411_v43  ;;  %v356_v2 = vand.u32 2147483647, %v4042_v22  ;;  %v2761_v10 = vpop.eup %2760  ;;  %v1426_v25 = vmul.f32 %v2751_v4, %v1425_v59  ;;  %2772 = vpow2.f32 %v685_v17  ;;  %v357_v33 = vand.u32 2147483647, %v4044_v46 }
 0x13a   :  { %v2412_v29 = vadd.f32 -0.6931472, %v2011_v12  ;;  %v2763_v34 = vpop.eup %2762  ;;  %v1414_v14 = vmul.f32 0.6931472, %v2761_v10  ;;  %vm4055_vm7 = vcmp.lt.f32.partialorder %v1436_v51, 0.0004427343  ;;  %v1435_v58 = vmul.f32 %v2755_v23, %v1434_v49 }
 0x13b   :  { %v483_v0 = vsub.f32 0.0, %v355_v40  ;;  %v484_v41 = vsub.f32 0.0, %v356_v2  ;;  %v4059_v19 = vpop.eup %2764  ;;  %v1423_v15 = vmul.f32 0.6931472, %v2763_v34  ;;  %v223_v13 = vmax.f32 %v3959_v45, 0.0 }
 0x13c   :  { %2267 = vst [vmem:[#allocation5 + $0x220] sm:$0xff] %v2412_v29  ;;  %vm4062_vm8 = vcmp.lt.f32.partialorder %v1445_v6, 0.0004427343  ;;  %v485_v48 = vsub.f32 0.0, %v357_v33  ;;  %v1420_v1 = vsel %vm4028_vm5, %v1417_v35, %v1414_v14  ;;  %v1444_v5 = vmul.f32 %v2757_v21, %v1443_v47  ;;  %v4089_v35 = vld [vmem:[#allocation2 + $0x288] sm:$0xff]  ;;  %v4095_v47 = vld [vmem:[#allocation2 + $0x290] sm:$0xff] }
 0x13d   :  { %v1448_v37 = vadd.f32 1.0, %v4059_v19  ;;  %v2012_v30 = vadd.f32 %v1420_v1, %v220_v38  ;;  %v1429_v50 = vsel %vm4036_vm6, %v1426_v25, %v1423_v15  ;;  %v687_v24 = vmul.f32 1.442695, %v483_v0 }
 0x13e   :  { %v689_v45 = vmul.f32 1.442695, %v484_v41  ;;  %v2013_v18 = vadd.f32 %v1429_v50, %v221_v26  ;;  %v1451_v62 = vmul.f32 -0.5, %v4059_v19  ;;  %v358_v23 = vand.u32 2147483647, %v4053_v11 }
 0x13f   :  { %v2767_v57 = vpop.eup %2766  ;;  %2774 = vlog2.f32 %v1448_v37  ;;  %v2413_v52 = vadd.f32 -0.6931472, %v2012_v30  ;;  %v691_v44 = vmul.f32 1.442695, %v485_v48  ;;  %v224_v63 = vmax.f32 %v3990_v61, 0.0 }
 0x140   :  { %v2769_v21 = vpop.eup %2768  ;;  %v1432_v28 = vmul.f32 0.6931472, %v2767_v57  ;;  %2776 = vpow2.f32 %v687_v24  ;;  %v2414_v38 = vadd.f32 -0.6931472, %v2013_v18  ;;  %v225_v26 = vmax.f32 %v4003_v27, 0.0 }
 0x141   :  { %v1441_v54 = vmul.f32 0.6931472, %v2769_v21  ;;  %2778 = vpow2.f32 %v689_v45  ;;  %2268 = vst [vmem:[#allocation5 + $0x228] sm:$0xff] %v2413_v52  ;;  %v226_v36 = vmax.f32 %v4014_v7, 0.0  ;;  %v227_v55 = vmax.f32 %v4040_v3, 0.0  ;;  %v4122_v52 = vld [vmem:[#allocation2 + $0x298] sm:$0xff] }
 0x142   :  { %v1438_v39 = vsel %vm4055_vm7, %v1435_v58, %v1432_v28  ;;  %2780 = vpow2.f32 %v691_v44  ;;  %v2771_v20 = vpop.eup %2770  ;;  %2269 = vst [vmem:[#allocation5 + $0x230] sm:$0xff] %v2414_v38  ;;  %v486_v16 = vsub.f32 0.0, %v358_v23  ;;  %v1452_v43 = vadd.f32 1.0, %v1451_v62 }
 0x143   :  { %v2014_v8 = vadd.f32 %v1438_v39, %v222_v60  ;;  %v1447_v61 = vsel %vm4062_vm8, %v1444_v5, %v1441_v54  ;;  %v2773_v59 = vpop.eup %2772  ;;  %v1454_v9 = vand.u32 2147483647, %v4059_v19  ;;  %v1457_v51 = vadd.f32 1.0, %v2771_v20 }
 0x144   :  { %v2015_v56 = vadd.f32 %v1447_v61, %v223_v13  ;;  %v1466_v12 = vadd.f32 1.0, %v2773_v59  ;;  %v228_v49 = vmax.f32 %v4042_v22, 0.0  ;;  %v359_v53 = vand.u32 2147483647, %v4082_v32 }
 0x145   :  { %v2415_v31 = vadd.f32 -0.6931472, %v2014_v8  ;;  %2782 = vlog2.f32 %v1457_v51  ;;  %v1460_v6 = vmul.f32 -0.5, %v2771_v20  ;;  %v360_v17 = vand.u32 2147483647, %v4089_v35 }
 0x146   :  { %v2416_v60 = vadd.f32 -0.6931472, %v2015_v56  ;;  %v1463_v40 = vand.u32 2147483647, %v2771_v20  ;;  %2784 = vlog2.f32 %v1466_v12  ;;  %v1469_v2 = vmul.f32 -0.5, %v2773_v59 }
 0x147   :  { %2270 = vst [vmem:[#allocation5 + $0x238] sm:$0xff] %v2415_v31  ;;  %v693_v10 = vmul.f32 1.442695, %v486_v16  ;;  %v1453_v29 = vmul.f32 %v4059_v19, %v1452_v43  ;;  %v1472_v25 = vand.u32 2147483647, %v2773_v59  ;;  %v229_v33 = vmax.f32 %v4044_v46, 0.0 }
 0x148   :  { %2271 = vst [vmem:[#allocation5 + $0x240] sm:$0xff] %v2416_v60  ;;  %v230_v34 = vmax.f32 %v4053_v11, 0.0  ;;  %vm4100_vm9 = vcmp.lt.f32.partialorder %v1454_v9, 0.0004427343  ;;  %v487_v0 = vsub.f32 0.0, %v359_v53  ;;  %v231_v4 = vmax.f32 %v4082_v32, 0.0 }
 0x149   :  { %v2775_v14 = vpop.eup %2774  ;;  %2786 = vpow2.f32 %v693_v10  ;;  %v361_v41 = vand.u32 2147483647, %v4095_v47  ;;  %v232_v19 = vmax.f32 %v4089_v35, 0.0  ;;  %v488_v48 = vsub.f32 0.0, %v360_v17  ;;  %v4126_v16 = vld [vmem:[#allocation2 + $0x2a0] sm:$0xff] }
 0x14a   :  { %v2777_v15 = vpop.eup %2776  ;;  %v1450_v13 = vmul.f32 0.6931472, %v2775_v14  ;;  %v1461_v58 = vadd.f32 1.0, %v1460_v6  ;;  %vm4109_vm10 = vcmp.lt.f32.partialorder %v1463_v40, 0.0004427343  ;;  %v1470_v37 = vadd.f32 1.0, %v1469_v2 }
 0x14b   :  { %v4107_v1 = vpop.eup %2778  ;;  %v1475_v30 = vadd.f32 1.0, %v2777_v15  ;;  %vm4117_vm11 = vcmp.lt.f32.partialorder %v1472_v25, 0.0004427343  ;;  %v489_v18 = vsub.f32 0.0, %v361_v41  ;;  %v1478_v23 = vmul.f32 -0.5, %v2777_v15 }
 0x14c   :  { %v4113_v50 = vpop.eup %2780  ;;  %v1456_v24 = vsel %vm4100_vm9, %v1453_v29, %v1450_v13  ;;  %v1484_v57 = vadd.f32 1.0, %v4107_v1  ;;  %v695_v21 = vmul.f32 1.442695, %v487_v0  ;;  %v1481_v28 = vand.u32 2147483647, %v2777_v15 }
 0x14d   :  { %v2016_v62 = vadd.f32 %v1456_v24, %v224_v63  ;;  %2788 = vlog2.f32 %v1475_v30  ;;  %v1493_v44 = vadd.f32 1.0, %v4113_v50  ;;  %v697_v38 = vmul.f32 1.442695, %v488_v48  ;;  %v4150_v24 = vld [vmem:[#allocation2 + $0x2a8] sm:$0xff] }
 0x14e   :  { %2790 = vlog2.f32 %v1484_v57  ;;  %v1462_v39 = vmul.f32 %v2771_v20, %v1461_v58  ;;  %v1471_v8 = vmul.f32 %v2773_v59, %v1470_v37  ;;  %v1487_v61 = vmul.f32 -0.5, %v4107_v1 }
 0x14f   :  { %v2417_v54 = vadd.f32 -0.6931472, %v2016_v62  ;;  %v2783_v56 = vpop.eup %2782  ;;  %v1490_v63 = vand.u32 2147483647, %v4107_v1  ;;  %2792 = vlog2.f32 %v1493_v44  ;;  %v699_v43 = vmul.f32 1.442695, %v489_v18 }
 0x150   :  { %v362_v9 = vand.u32 2147483647, %v4122_v52  ;;  %v2785_v51 = vpop.eup %2784  ;;  %v1459_v31 = vmul.f32 0.6931472, %v2783_v56  ;;  %v1479_v12 = vadd.f32 1.0, %v1478_v23  ;;  %v1496_v53 = vmul.f32 -0.5, %v4113_v50 }
 0x151   :  { %2272 = vst [vmem:[#allocation5 + $0x248] sm:$0xff] %v2417_v54  ;;  %2794 = vpow2.f32 %v695_v21  ;;  %v1468_v20 = vmul.f32 0.6931472, %v2785_v51  ;;  %vm4131_vm12 = vcmp.lt.f32.partialorder %v1481_v28, 0.0004427343  ;;  %v1488_v40 = vadd.f32 1.0, %v1487_v61 }
 0x152   :  { %2796 = vpow2.f32 %v697_v38  ;;  %v490_v60 = vsub.f32 0.0, %v362_v9  ;;  %v1465_v17 = vsel %vm4109_vm10, %v1462_v39, %v1459_v31  ;;  %v363_v2 = vand.u32 2147483647, %v4126_v16  ;;  %v4172_v56 = vld [vmem:[#allocation2 + $0x2b0] sm:$0xff] }
 0x153   :  { %v4135_v6 = vpop.eup %2786  ;;  %2798 = vpow2.f32 %v699_v43  ;;  %v2017_v10 = vadd.f32 %v1465_v17, %v225_v26  ;;  %v1474_v29 = vsel %vm4117_vm11, %v1471_v8, %v1468_v20  ;;  %v1499_v25 = vand.u32 2147483647, %v4113_v50 }
 0x154   :  { %v1502_v14 = vadd.f32 1.0, %v4135_v6  ;;  %v2018_v42 = vadd.f32 %v1474_v29, %v226_v36  ;;  %v1497_v0 = vadd.f32 1.0, %v1496_v53  ;;  %v701_v41 = vmul.f32 1.442695, %v490_v60 }
 0x155   :  { %v491_v13 = vsub.f32 0.0, %v363_v2  ;;  %v2418_v48 = vadd.f32 -0.6931472, %v2017_v10  ;;  %v1480_v58 = vmul.f32 %v2777_v15, %v1479_v12  ;;  %v1505_v5 = vmul.f32 -0.5, %v4135_v6  ;;  %v4185_v2 = vld [vmem:[#allocation2 + $0x2b8] sm:$0xff] }
 0x156   :  { %2800 = vlog2.f32 %v1502_v14  ;;  %v2419_v26 = vadd.f32 -0.6931472, %v2018_v42  ;;  %v1489_v37 = vmul.f32 %v4107_v1, %v1488_v40  ;;  %vm4152_vm13 = vcmp.lt.f32.partialorder %v1490_v63, 0.0004427343 }
 0x157   :  { %v2789_v27 = vpop.eup %2788  ;;  %2802 = vpow2.f32 %v701_v41  ;;  %v703_v30 = vmul.f32 1.442695, %v491_v13  ;;  %2273 = vst [vmem:[#allocation5 + $0x250] sm:$0xff] %v2418_v48  ;;  %v233_v15 = vmax.f32 %v4095_v47, 0.0  ;;  %v234_v57 = vmax.f32 %v4122_v52, 0.0 }
 0x158   :  { %v2791_v45 = vpop.eup %2790  ;;  %v1477_v7 = vmul.f32 0.6931472, %v2789_v27  ;;  %2274 = vst [vmem:[#allocation5 + $0x258] sm:$0xff] %v2419_v26  ;;  %v1498_v62 = vmul.f32 %v4113_v50, %v1497_v0  ;;  %vm4159_vm14 = vcmp.lt.f32.partialorder %v1499_v25, 0.0004427343  ;;  %v1506_v28 = vadd.f32 1.0, %v1505_v5 }
 0x159   :  { %v1486_v18 = vmul.f32 0.6931472, %v2791_v45  ;;  %2804 = vpow2.f32 %v703_v30  ;;  %v2793_v23 = vpop.eup %2792  ;;  %v1508_v44 = vand.u32 2147483647, %v4135_v6  ;;  %v235_v38 = vmax.f32 %v4126_v16, 0.0 }
 0x15a   :  { %v1483_v21 = vsel %vm4131_vm12, %v1480_v58, %v1477_v7  ;;  %v1495_v8 = vmul.f32 0.6931472, %v2793_v23  ;;  %v364_v61 = vand.u32 2147483647, %v4150_v24  ;;  %v236_v31 = vmax.f32 %v4150_v24, 0.0 }
 0x15b   :  { %v2795_v54 = vpop.eup %2794  ;;  %v2019_v39 = vadd.f32 %v1483_v21, %v227_v55  ;;  %v1492_v50 = vsel %vm4152_vm13, %v1489_v37, %v1486_v18  ;;  %v365_v22 = vand.u32 2147483647, %v4172_v56  ;;  %vm4187_vm15 = vcmp.lt.f32.partialorder %v1508_v44, 0.0004427343  ;;  %v4214_v21 = vld [vmem:[#allocation2 + $0x2c0] sm:$0xff] }
 0x15c   :  { %v2797_v63 = vpop.eup %2796  ;;  %v2020_v43 = vadd.f32 %v1492_v50, %v228_v49  ;;  %v1511_v9 = vadd.f32 1.0, %v2795_v54  ;;  %v1514_v51 = vmul.f32 -0.5, %v2795_v54  ;;  %v1501_v55 = vsel %vm4159_vm14, %v1498_v62, %v1495_v8  ;;  %v4224_v8 = vld [vmem:[#allocation2 + $0x2d0] sm:$0xff] }
 0x15d   :  { %v4177_v12 = vpop.eup %2798  ;;  %v2420_v3 = vadd.f32 -0.6931472, %v2019_v39  ;;  %v1520_v53 = vadd.f32 1.0, %v2797_v63  ;;  %v1523_v20 = vmul.f32 -0.5, %v2797_v63  ;;  %v2021_v60 = vadd.f32 %v1501_v55, %v229_v33 }
 0x15e   :  { %v2421_v59 = vadd.f32 -0.6931472, %v2020_v43  ;;  %2806 = vlog2.f32 %v1511_v9  ;;  %v1507_v49 = vmul.f32 %v4135_v6, %v1506_v28  ;;  %v1517_v17 = vand.u32 2147483647, %v2795_v54  ;;  %v4216_v28 = vld [vmem:[#allocation2 + $0x2c8] sm:$0xff] }
 0x15f   :  { %2275 = vst [vmem:[#allocation5 + $0x260] sm:$0xff] %v2420_v3  ;;  %2808 = vlog2.f32 %v1520_v53  ;;  %v492_v40 = vsub.f32 0.0, %v364_v61  ;;  %v2422_v29 = vadd.f32 -0.6931472, %v2021_v60  ;;  %v1515_v46 = vadd.f32 1.0, %v1514_v51  ;;  %v4228_v51 = vld [vmem:[#allocation2 + $0x2d8] sm:$0xff] }
 0x160   :  { %v2801_v10 = vpop.eup %2800  ;;  %2276 = vst [vmem:[#allocation5 + $0x268] sm:$0xff] %v2421_v59  ;;  %v1529_v33 = vadd.f32 1.0, %v4177_v12  ;;  %v1524_v0 = vadd.f32 1.0, %v1523_v20  ;;  %v1526_v6 = vand.u32 2147483647, %v2797_v63  ;;  %v1532_v41 = vmul.f32 -0.5, %v4177_v12 }
 0x161   :  { %v4192_v14 = vpop.eup %2802  ;;  %v1504_v42 = vmul.f32 0.6931472, %v2801_v10  ;;  %2277 = vst [vmem:[#allocation5 + $0x270] sm:$0xff] %v2422_v29  ;;  %v1535_v13 = vand.u32 2147483647, %v4177_v12  ;;  %v493_v58 = vsub.f32 0.0, %v365_v22  ;;  %v1516_v7 = vmul.f32 %v2795_v54, %v1515_v46 }
 0x162   :  { %2810 = vlog2.f32 %v1529_v33  ;;  %v1538_v48 = vadd.f32 1.0, %v4192_v14  ;;  %vm4201_vm0 = vcmp.lt.f32.partialorder %v1517_v17, 0.0004427343  ;;  %v705_v37 = vmul.f32 1.442695, %v492_v40 }
 0x163   :  { %v4197_v5 = vpop.eup %2804  ;;  %v1510_v27 = vsel %vm4187_vm15, %v1507_v49, %v1504_v42  ;;  %v366_v30 = vand.u32 2147483647, %v4185_v2  ;;  %v1541_v36 = vmul.f32 -0.5, %v4192_v14  ;;  %v1525_v18 = vmul.f32 %v2797_v63, %v1524_v0 }
 0x164   :  { %v2022_v45 = vadd.f32 %v1510_v27, %v230_v34  ;;  %2812 = vlog2.f32 %v1538_v48  ;;  %vm4209_vm1 = vcmp.lt.f32.partialorder %v1526_v6, 0.0004427343  ;;  %v1533_v1 = vadd.f32 1.0, %v1532_v41 }
 0x165   :  { %v1547_v23 = vadd.f32 1.0, %v4197_v5  ;;  %vm4218_vm2 = vcmp.lt.f32.partialorder %v1535_v13, 0.0004427343  ;;  %2814 = vpow2.f32 %v705_v37  ;;  %v707_v34 = vmul.f32 1.442695, %v493_v58 }
 0x166   :  { %v2423_v44 = vadd.f32 -0.6931472, %v2022_v45  ;;  %v1544_v54 = vand.u32 2147483647, %v4192_v14  ;;  %v1550_v39 = vmul.f32 -0.5, %v4197_v5  ;;  %v494_v50 = vsub.f32 0.0, %v366_v30 }
 0x167   :  { %2816 = vlog2.f32 %v1547_v23  ;;  %v1542_v63 = vadd.f32 1.0, %v1541_v36  ;;  %v367_v43 = vand.u32 2147483647, %v4214_v21  ;;  %v368_v9 = vand.u32 2147483647, %v4216_v28 }
 0x168   :  { %v2807_v61 = vpop.eup %2806  ;;  %2278 = vst [vmem:[#allocation5 + $0x278] sm:$0xff] %v2423_v44  ;;  %2818 = vpow2.f32 %v707_v34  ;;  %v1534_v53 = vmul.f32 %v4177_v12, %v1533_v1  ;;  %v1553_v20 = vand.u32 2147483647, %v4197_v5  ;;  %v709_v59 = vmul.f32 1.442695, %v494_v50 }
 0x169   :  { %v2809_v3 = vpop.eup %2808  ;;  %v1513_v55 = vmul.f32 0.6931472, %v2807_v61  ;;  %v495_v22 = vsub.f32 0.0, %v367_v43  ;;  %v496_v49 = vsub.f32 0.0, %v368_v9  ;;  %v369_v17 = vand.u32 2147483647, %v4224_v8 }
 0x16a   :  { %v1522_v60 = vmul.f32 0.6931472, %v2809_v3  ;;  %v1551_v10 = vadd.f32 1.0, %v1550_v39  ;;  %2820 = vpow2.f32 %v709_v59  ;;  %v370_v29 = vand.u32 2147483647, %v4228_v51  ;;  %v4271_v3 = vld [vmem:[#allocation2 + $0x2e8] sm:$0xff] }
 0x16b   :  { %v1519_v40 = vsel %vm4201_vm0, %v1516_v7, %v1513_v55  ;;  %v711_v33 = vmul.f32 1.442695, %v495_v22  ;;  %v713_v42 = vmul.f32 1.442695, %v496_v49  ;;  %v1543_v41 = vmul.f32 %v4192_v14, %v1542_v63 }
 0x16c   :  { %v2811_v25 = vpop.eup %2810  ;;  %v2023_v46 = vadd.f32 %v1519_v40, %v231_v4  ;;  %v1528_v12 = vsel %vm4209_vm1, %v1525_v18, %v1522_v60  ;;  %v497_v13 = vsub.f32 0.0, %v369_v17  ;;  %vm4243_vm3 = vcmp.lt.f32.partialorder %v1544_v54, 0.0004427343  ;;  %v4247_v4 = vld [vmem:[#allocation2 + $0x2e0] sm:$0xff] }
 0x16d   :  { %v2024_v0 = vadd.f32 %v1528_v12, %v232_v19  ;;  %v1531_v6 = vmul.f32 0.6931472, %v2811_v25  ;;  %2822 = vpow2.f32 %v711_v33  ;;  %v498_v32 = vsub.f32 0.0, %v370_v29 }
 0x16e   :  { %v2813_v48 = vpop.eup %2812  ;;  %v2424_v58 = vadd.f32 -0.6931472, %v2023_v46  ;;  %2824 = vpow2.f32 %v713_v42  ;;  %v1552_v30 = vmul.f32 %v4197_v5, %v1551_v10  ;;  %v237_v45 = vmax.f32 %v4172_v56, 0.0  ;;  %v4321_v56 = vld [vmem:[#allocation2 + $0x308] sm:$0xff] }
 0x16f   :  { %v2425_v26 = vadd.f32 -0.6931472, %v2024_v0  ;;  %v1537_v37 = vsel %vm4218_vm2, %v1534_v53, %v1531_v6  ;;  %v1540_v35 = vmul.f32 0.6931472, %v2813_v48  ;;  %v2815_v19 = vpop.eup %2814  ;;  %v715_v7 = vmul.f32 1.442695, %v497_v13 }
 0x170   :  { %2279 = vst [vmem:[#allocation5 + $0x280] sm:$0xff] %v2424_v58  ;;  %v2025_v14 = vadd.f32 %v1537_v37, %v233_v15  ;;  %vm4257_vm4 = vcmp.lt.f32.partialorder %v1553_v20, 0.0004427343  ;;  %v1556_v1 = vadd.f32 1.0, %v2815_v19  ;;  %v371_v23 = vand.u32 2147483647, %v4247_v4 }
 0x171   :  { %v2817_v36 = vpop.eup %2816  ;;  %2280 = vst [vmem:[#allocation5 + $0x288] sm:$0xff] %v2425_v26  ;;  %v1546_v18 = vsel %vm4243_vm3, %v1543_v41, %v1540_v35  ;;  %2826 = vpow2.f32 %v715_v7  ;;  %v1559_v11 = vmul.f32 -0.5, %v2815_v19  ;;  %v717_v54 = vmul.f32 1.442695, %v498_v32  ;;  %v4289_v37 = vld [vmem:[#allocation2 + $0x2f0] sm:$0xff] }
 0x172   :  { %v2819_v44 = vpop.eup %2818  ;;  %v2426_v47 = vadd.f32 -0.6931472, %v2025_v14  ;;  %v2026_v15 = vadd.f32 %v1546_v18, %v234_v57  ;;  %v1549_v5 = vmul.f32 0.6931472, %v2817_v36  ;;  %2828 = vlog2.f32 %v1556_v1  ;;  %v4295_v1 = vld [vmem:[#allocation2 + $0x2f8] sm:$0xff] }
 0x173   :  { %v1565_v34 = vadd.f32 1.0, %v2819_v44  ;;  %v1568_v61 = vmul.f32 -0.5, %v2819_v44  ;;  %v238_v63 = vmax.f32 %v4185_v2, 0.0  ;;  %v239_v52 = vmax.f32 %v4214_v21, 0.0 }
 0x174   :  { %2281 = vst [vmem:[#allocation5 + $0x290] sm:$0xff] %v2426_v47  ;;  %v2427_v39 = vadd.f32 -0.6931472, %v2026_v15  ;;  %v1555_v50 = vsel %vm4257_vm4, %v1552_v30, %v1549_v5  ;;  %v2821_v43 = vpop.eup %2820  ;;  %v240_v57 = vmax.f32 %v4216_v28, 0.0  ;;  %v1562_v55 = vand.u32 2147483647, %v2815_v19 }
 0x175   :  { %v2027_v9 = vadd.f32 %v1555_v50, %v235_v38  ;;  %2830 = vlog2.f32 %v1565_v34  ;;  %v1574_v53 = vadd.f32 1.0, %v2821_v43  ;;  %v1577_v20 = vmul.f32 -0.5, %v2821_v43 }
 0x176   :  { %2282 = vst [vmem:[#allocation5 + $0x298] sm:$0xff] %v2427_v39  ;;  %v499_v59 = vsub.f32 0.0, %v371_v23  ;;  %v1560_v22 = vadd.f32 1.0, %v1559_v11  ;;  %v241_v49 = vmax.f32 %v4224_v8, 0.0  ;;  %2832 = vpow2.f32 %v717_v54 }
 0x177   :  { %v2428_v60 = vadd.f32 -0.6931472, %v2027_v9  ;;  %v2823_v17 = vpop.eup %2822  ;;  %v1569_v16 = vadd.f32 1.0, %v1568_v61  ;;  %v1571_v38 = vand.u32 2147483647, %v2819_v44  ;;  %2834 = vlog2.f32 %v1574_v53 }
 0x178   :  { %v372_v40 = vand.u32 2147483647, %v4271_v3  ;;  %v4275_v10 = vpop.eup %2824  ;;  %v1578_v29 = vadd.f32 1.0, %v1577_v20  ;;  %v1580_v25 = vand.u32 2147483647, %v2821_v43  ;;  %v1583_v46 = vadd.f32 1.0, %v2823_v17 }
 0x179   :  { %2283 = vst [vmem:[#allocation5 + $0x2a0] sm:$0xff] %v2428_v60  ;;  %v242_v12 = vmax.f32 %v4228_v51, 0.0  ;;  %vm4278_vm5 = vcmp.lt.f32.partialorder %v1562_v55, 0.0004427343  ;;  %v1592_v42 = vadd.f32 1.0, %v4275_v10  ;;  %v243_v0 = vmax.f32 %v4247_v4, 0.0 }
 0x17a   :  { %v719_v6 = vmul.f32 1.442695, %v499_v59  ;;  %v1561_v41 = vmul.f32 %v2815_v19, %v1560_v22  ;;  %2836 = vlog2.f32 %v1583_v46  ;;  %v1586_v13 = vmul.f32 -0.5, %v2823_v17  ;;  %v4385_v51 = vld [vmem:[#allocation2 + $0x328] sm:$0xff] }
 0x17b   :  { %v500_v48 = vsub.f32 0.0, %v372_v40  ;;  %v2827_v58 = vpop.eup %2826  ;;  %v1570_v27 = vmul.f32 %v2819_v44, %v1569_v16  ;;  %vm4284_vm6 = vcmp.lt.f32.partialorder %v1571_v38, 0.0004427343  ;;  %2838 = vlog2.f32 %v1592_v42 }
 0x17c   :  { %v1595_v26 = vmul.f32 -0.5, %v4275_v10  ;;  %v2829_v35 = vpop.eup %2828  ;;  %v1579_v14 = vmul.f32 %v2821_v43, %v1578_v29  ;;  %vm4291_vm7 = vcmp.lt.f32.partialorder %v1580_v25, 0.0004427343  ;;  %v1589_v19 = vand.u32 2147483647, %v2823_v17  ;;  %v4316_v29 = vld [vmem:[#allocation2 + $0x300] sm:$0xff] }
 0x17d   :  { %v1601_v7 = vadd.f32 1.0, %v2827_v58  ;;  %v1558_v36 = vmul.f32 0.6931472, %v2829_v35  ;;  %v1604_v18 = vmul.f32 -0.5, %v2827_v58  ;;  %2840 = vpow2.f32 %v719_v6 }
 0x17e   :  { %v721_v62 = vmul.f32 1.442695, %v500_v48  ;;  %v1587_v44 = vadd.f32 1.0, %v1586_v13  ;;  %v1598_v47 = vand.u32 2147483647, %v4275_v10  ;;  %v1596_v34 = vadd.f32 1.0, %v1595_v26 }
 0x17f   :  { %v2831_v23 = vpop.eup %2830  ;;  %2842 = vlog2.f32 %v1601_v7  ;;  %v373_v15 = vand.u32 2147483647, %v4289_v37  ;;  %v1564_v5 = vsel %vm4278_vm5, %v1561_v41, %v1558_v36  ;;  %vm4305_vm8 = vcmp.lt.f32.partialorder %v1589_v19, 0.0004427343 }
 0x180   :  { %v1567_v11 = vmul.f32 0.6931472, %v2831_v23  ;;  %2844 = vpow2.f32 %v721_v62  ;;  %v4301_v54 = vpop.eup %2832  ;;  %v2028_v39 = vadd.f32 %v1564_v5, %v236_v31  ;;  %v374_v43 = vand.u32 2147483647, %v4295_v1 }
 0x181   :  { %v501_v61 = vsub.f32 0.0, %v373_v15  ;;  %v2835_v9 = vpop.eup %2834  ;;  %v1605_v53 = vadd.f32 1.0, %v1604_v18  ;;  %v1607_v20 = vand.u32 2147483647, %v2827_v58  ;;  %v1610_v59 = vadd.f32 1.0, %v4301_v54  ;;  %v4348_v15 = vld [vmem:[#allocation2 + $0x310] sm:$0xff] }
 0x182   :  { %v1573_v55 = vsel %vm4284_vm6, %v1570_v27, %v1567_v11  ;;  %v2429_v60 = vadd.f32 -0.6931472, %v2028_v39  ;;  %v1576_v31 = vmul.f32 0.6931472, %v2835_v9  ;;  %v1588_v16 = vmul.f32 %v2823_v17, %v1587_v44 }
 0x183   :  { %v2029_v24 = vadd.f32 %v1573_v55, %v237_v45  ;;  %v723_v22 = vmul.f32 1.442695, %v501_v61  ;;  %v1597_v38 = vmul.f32 %v4275_v10, %v1596_v34  ;;  %2846 = vlog2.f32 %v1610_v59 }
 0x184   :  { %v502_v40 = vsub.f32 0.0, %v374_v43  ;;  %v2837_v25 = vpop.eup %2836  ;;  %2284 = vst [vmem:[#allocation5 + $0x2a8] sm:$0xff] %v2429_v60  ;;  %v1582_v33 = vsel %vm4291_vm7, %v1579_v14, %v1576_v31  ;;  %v1613_v42 = vmul.f32 -0.5, %v4301_v54  ;;  %vm4325_vm9 = vcmp.lt.f32.partialorder %v1598_v47, 0.0004427343 }
 0x185   :  { %v2430_v46 = vadd.f32 -0.6931472, %v2029_v24  ;;  %2848 = vpow2.f32 %v723_v22  ;;  %v2839_v45 = vpop.eup %2838  ;;  %v2030_v17 = vadd.f32 %v1582_v33, %v238_v63  ;;  %v1585_v10 = vmul.f32 0.6931472, %v2837_v25 }
 0x186   :  { %v725_v41 = vmul.f32 1.442695, %v502_v40  ;;  %v1594_v13 = vmul.f32 0.6931472, %v2839_v45  ;;  %v1606_v48 = vmul.f32 %v2827_v58, %v1605_v53  ;;  %vm4329_vm10 = vcmp.lt.f32.partialorder %v1607_v20, 0.0004427343 }
 0x187   :  { %2285 = vst [vmem:[#allocation5 + $0x2b0] sm:$0xff] %v2430_v46  ;;  %v375_v32 = vand.u32 2147483647, %v4316_v29  ;;  %v4334_v26 = vpop.eup %2840  ;;  %v2431_v35 = vadd.f32 -0.6931472, %v2030_v17  ;;  %v1591_v2 = vsel %vm4305_vm8, %v1588_v16, %v1585_v10  ;;  %v1614_v19 = vadd.f32 1.0, %v1613_v42 }
 0x188   :  { %v1616_v63 = vand.u32 2147483647, %v4301_v54  ;;  %2850 = vpow2.f32 %v725_v41  ;;  %v2031_v30 = vadd.f32 %v1591_v2, %v239_v52  ;;  %v1600_v58 = vsel %vm4325_vm9, %v1597_v38, %v1594_v13  ;;  %v4375_v45 = vld [vmem:[#allocation2 + $0x318] sm:$0xff]  ;;  %v4383_v41 = vld [vmem:[#allocation2 + $0x320] sm:$0xff] }
 0x189   :  { %v2843_v14 = vpop.eup %2842  ;;  %v1619_v7 = vadd.f32 1.0, %v4334_v26  ;;  %2286 = vst [vmem:[#allocation5 + $0x2b8] sm:$0xff] %v2431_v35  ;;  %v2032_v18 = vadd.f32 %v1600_v58, %v240_v57  ;;  %v503_v23 = vsub.f32 0.0, %v375_v32  ;;  %v376_v44 = vand.u32 2147483647, %v4321_v56 }
 0x18a   :  { %v2845_v36 = vpop.eup %2844  ;;  %v1603_v62 = vmul.f32 0.6931472, %v2843_v14  ;;  %v2432_v47 = vadd.f32 -0.6931472, %v2031_v30  ;;  %v1622_v21 = vmul.f32 -0.5, %v4334_v26  ;;  %v1615_v39 = vmul.f32 %v4301_v54, %v1614_v19  ;;  %v4395_v19 = vld [vmem:[#allocation2 + $0x330] sm:$0xff] }
 0x18b   :  { %2852 = vlog2.f32 %v1619_v7  ;;  %v1628_v52 = vadd.f32 1.0, %v2845_v36  ;;  %v2433_v5 = vadd.f32 -0.6931472, %v2032_v18  ;;  %vm4352_vm11 = vcmp.lt.f32.partialorder %v1616_v63, 0.0004427343 }
 0x18c   :  { %v1609_v11 = vsel %vm4329_vm10, %v1606_v48, %v1603_v62  ;;  %v1631_v28 = vmul.f32 -0.5, %v2845_v36  ;;  %2287 = vst [vmem:[#allocation5 + $0x2c0] sm:$0xff] %v2432_v47  ;;  %v1625_v50 = vand.u32 2147483647, %v4334_v26  ;;  %v244_v43 = vmax.f32 %v4271_v3, 0.0  ;;  %v4428_v48 = vld [vmem:[#allocation2 + $0x340] sm:$0xff] }
 0x18d   :  { %v2033_v57 = vadd.f32 %v1609_v11, %v241_v49  ;;  %2854 = vlog2.f32 %v1628_v52  ;;  %v2847_v61 = vpop.eup %2846  ;;  %2288 = vst [vmem:[#allocation5 + $0x2c8] sm:$0xff] %v2433_v5  ;;  %v727_v9 = vmul.f32 1.442695, %v503_v23  ;;  %v504_v55 = vsub.f32 0.0, %v376_v44 }
 0x18e   :  { %v377_v53 = vand.u32 2147483647, %v4348_v15  ;;  %v1612_v60 = vmul.f32 0.6931472, %v2847_v61  ;;  %v1623_v24 = vadd.f32 1.0, %v1622_v21  ;;  %v245_v8 = vmax.f32 %v4289_v37, 0.0 }
 0x18f   :  { %v4362_v20 = vpop.eup %2848  ;;  %v2434_v59 = vadd.f32 -0.6931472, %v2033_v57  ;;  %v1632_v49 = vadd.f32 1.0, %v1631_v28  ;;  %v1634_v54 = vand.u32 2147483647, %v2845_v36  ;;  %2856 = vpow2.f32 %v727_v9 }
 0x190   :  { %v1637_v31 = vadd.f32 1.0, %v4362_v20  ;;  %v1640_v22 = vmul.f32 -0.5, %v4362_v20  ;;  %v1618_v16 = vsel %vm4352_vm11, %v1615_v39, %v1612_v60  ;;  %v729_v38 = vmul.f32 1.442695, %v504_v55 }
 0x191   :  { %2289 = vst [vmem:[#allocation5 + $0x2d0] sm:$0xff] %v2434_v59  ;;  %v505_v40 = vsub.f32 0.0, %v377_v53  ;;  %v2034_v46 = vadd.f32 %v1618_v16, %v242_v12  ;;  %v246_v33 = vmax.f32 %v4295_v1, 0.0  ;;  %v247_v42 = vmax.f32 %v4316_v29, 0.0 }
 0x192   :  { %v4369_v25 = vpop.eup %2850  ;;  %2858 = vlog2.f32 %v1637_v31  ;;  %vm4377_vm12 = vcmp.lt.f32.partialorder %v1625_v50, 0.0004427343  ;;  %v248_v6 = vmax.f32 %v4321_v56, 0.0  ;;  %v1624_v13 = vmul.f32 %v4334_v26, %v1623_v24  ;;  %v4415_v31 = vld [vmem:[#allocation2 + $0x338] sm:$0xff] }
 0x193   :  { %v1646_v10 = vadd.f32 1.0, %v4369_v25  ;;  %2860 = vpow2.f32 %v729_v38  ;;  %v2435_v12 = vadd.f32 -0.6931472, %v2034_v46  ;;  %vm4388_vm13 = vcmp.lt.f32.partialorder %v1634_v54, 0.0004427343 }
 0x194   :  { %v731_v27 = vmul.f32 1.442695, %v505_v40  ;;  %v1633_v35 = vmul.f32 %v2845_v36, %v1632_v49  ;;  %v1641_v2 = vadd.f32 1.0, %v1640_v22  ;;  %v378_v63 = vand.u32 2147483647, %v4375_v45 }
 0x195   :  { %v2853_v32 = vpop.eup %2852  ;;  %2862 = vlog2.f32 %v1646_v10  ;;  %2290 = vst [vmem:[#allocation5 + $0x2d8] sm:$0xff] %v2435_v12  ;;  %v1649_v30 = vmul.f32 -0.5, %v4369_v25  ;;  %v379_v58 = vand.u32 2147483647, %v4383_v41  ;;  %v1643_v7 = vand.u32 2147483647, %v4362_v20 }
 0x196   :  { %v1621_v14 = vmul.f32 0.6931472, %v2853_v32  ;;  %2864 = vpow2.f32 %v731_v27  ;;  %v249_v18 = vmax.f32 %v4348_v15, 0.0  ;;  %v506_v62 = vsub.f32 0.0, %v378_v63 }
 0x197   :  { %v2855_v26 = vpop.eup %2854  ;;  %v380_v36 = vand.u32 2147483647, %v4385_v51  ;;  %v1652_v47 = vand.u32 2147483647, %v4369_v25  ;;  %v507_v21 = vsub.f32 0.0, %v379_v58  ;;  %v1642_v57 = vmul.f32 %v4362_v20, %v1641_v2 }
 0x198   :  { %v1627_v23 = vsel %vm4377_vm12, %v1624_v13, %v1621_v14  ;;  %v1630_v44 = vmul.f32 0.6931472, %v2855_v26  ;;  %v733_v5 = vmul.f32 1.442695, %v506_v62  ;;  %v381_v34 = vand.u32 2147483647, %v4395_v19 }
 0x199   :  { %v2035_v52 = vadd.f32 %v1627_v23, %v243_v0  ;;  %v508_v11 = vsub.f32 0.0, %v380_v36  ;;  %v1650_v39 = vadd.f32 1.0, %v1649_v30  ;;  %v735_v50 = vmul.f32 1.442695, %v507_v21  ;;  %v2857_v61 = vpop.eup %2856 }
 0x19a   :  { %v1636_v28 = vsel %vm4388_vm13, %v1633_v35, %v1630_v44  ;;  %2866 = vpow2.f32 %v733_v5  ;;  %vm4411_vm14 = vcmp.lt.f32.partialorder %v1643_v7, 0.0004427343  ;;  %v1655_v59 = vadd.f32 1.0, %v2857_v61 }
 0x19b   :  { %v2436_v9 = vadd.f32 -0.6931472, %v2035_v52  ;;  %v2036_v55 = vadd.f32 %v1636_v28, %v244_v43  ;;  %v737_v53 = vmul.f32 1.442695, %v508_v11  ;;  %v1658_v60 = vmul.f32 -0.5, %v2857_v61 }
 0x19c   :  { %v2859_v4 = vpop.eup %2858  ;;  %2868 = vpow2.f32 %v735_v50  ;;  %v509_v54 = vsub.f32 0.0, %v381_v34  ;;  %v1651_v3 = vmul.f32 %v4369_v25, %v1650_v39  ;;  %v250_v22 = vmax.f32 %v4375_v45, 0.0 }
 0x19d   :  { %v2861_v24 = vpop.eup %2860  ;;  %2291 = vst [vmem:[#allocation5 + $0x2e0] sm:$0xff] %v2436_v9  ;;  %v2437_v20 = vadd.f32 -0.6931472, %v2036_v55  ;;  %v1639_v49 = vmul.f32 0.6931472, %v2859_v4  ;;  %2870 = vpow2.f32 %v737_v53  ;;  %v1659_v27 = vadd.f32 1.0, %v1658_v60 }
 0x19e   :  { %2872 = vlog2.f32 %v1655_v59  ;;  %v1664_v43 = vadd.f32 1.0, %v2861_v24  ;;  %vm4421_vm15 = vcmp.lt.f32.partialorder %v1652_v47, 0.0004427343  ;;  %v1667_v46 = vmul.f32 -0.5, %v2861_v24  ;;  %v4448_v9 = vld [vmem:[#allocation2 + $0x348] sm:$0xff] }
 0x19f   :  { %v2863_v16 = vpop.eup %2862  ;;  %2292 = vst [vmem:[#allocation5 + $0x2e8] sm:$0xff] %v2437_v20  ;;  %v1645_v38 = vsel %vm4411_vm14, %v1642_v57, %v1639_v49  ;;  %v739_v17 = vmul.f32 1.442695, %v509_v54  ;;  %v382_v13 = vand.u32 2147483647, %v4415_v31  ;;  %v251_v58 = vmax.f32 %v4383_v41, 0.0 }
 0x1a0   :  { %v2865_v10 = vpop.eup %2864  ;;  %v2037_v12 = vadd.f32 %v1645_v38, %v245_v8  ;;  %v1648_v25 = vmul.f32 0.6931472, %v2863_v16  ;;  %2874 = vlog2.f32 %v1664_v43  ;;  %v1661_v32 = vand.u32 2147483647, %v2857_v61 }
 0x1a1   :  { %v1670_v35 = vand.u32 2147483647, %v2861_v24  ;;  %v1673_v2 = vadd.f32 1.0, %v2865_v10  ;;  %v1676_v30 = vmul.f32 -0.5, %v2865_v10  ;;  %2876 = vpow2.f32 %v739_v17 }
 0x1a2   :  { %v2438_v63 = vadd.f32 -0.6931472, %v2037_v12  ;;  %v1654_v14 = vsel %vm4421_vm15, %v1651_v3, %v1648_v25  ;;  %v1668_v8 = vadd.f32 1.0, %v1667_v46  ;;  %v252_v26 = vmax.f32 %v4385_v51, 0.0 }
 0x1a3   :  { %v2038_v37 = vadd.f32 %v1654_v14, %v246_v33  ;;  %2878 = vlog2.f32 %v1673_v2  ;;  %v253_v7 = vmax.f32 %v4395_v19, 0.0  ;;  %v510_v62 = vsub.f32 0.0, %v382_v13  ;;  %v4475_v14 = vld [vmem:[#allocation2 + $0x358] sm:$0xff] }
 0x1a4   :  { %2293 = vst [vmem:[#allocation5 + $0x2f0] sm:$0xff] %v2438_v63  ;;  %v383_v36 = vand.u32 2147483647, %v4428_v48  ;;  %v2867_v23 = vpop.eup %2866  ;;  %vm4438_vm0 = vcmp.lt.f32.partialorder %v1661_v32, 0.0004427343  ;;  %v1660_v21 = vmul.f32 %v2857_v61, %v1659_v27  ;;  %v1677_v5 = vadd.f32 1.0, %v1676_v30 }
 0x1a5   :  { %v2439_v44 = vadd.f32 -0.6931472, %v2038_v37  ;;  %v1679_v1 = vand.u32 2147483647, %v2865_v10  ;;  %vm4442_vm1 = vcmp.lt.f32.partialorder %v1670_v35, 0.0004427343  ;;  %v1669_v28 = vmul.f32 %v2861_v24, %v1668_v8 }
 0x1a6   :  { %v2869_v33 = vpop.eup %2868  ;;  %v1682_v11 = vadd.f32 1.0, %v2867_v23  ;;  %v1685_v57 = vmul.f32 -0.5, %v2867_v23  ;;  %v741_v50 = vmul.f32 1.442695, %v510_v62  ;;  %v1688_v53 = vand.u32 2147483647, %v2867_v23 }
 0x1a7   :  { %v4446_v34 = vpop.eup %2870  ;;  %2294 = vst [vmem:[#allocation5 + $0x2f8] sm:$0xff] %v2439_v44  ;;  %v1691_v39 = vadd.f32 1.0, %v2869_v33  ;;  %v511_v4 = vsub.f32 0.0, %v383_v36  ;;  %vm4451_vm2 = vcmp.lt.f32.partialorder %v1679_v1, 0.0004427343  ;;  %v1694_v60 = vmul.f32 -0.5, %v2869_v33 }
 0x1a8   :  { %v2873_v55 = vpop.eup %2872  ;;  %2880 = vlog2.f32 %v1682_v11  ;;  %v1700_v61 = vadd.f32 1.0, %v4446_v34  ;;  %v1678_v24 = vmul.f32 %v2865_v10, %v1677_v5  ;;  %v1703_v49 = vmul.f32 -0.5, %v4446_v34  ;;  %v4471_v35 = vld [vmem:[#allocation2 + $0x350] sm:$0xff]  ;;  %v4482_v62 = vld [vmem:[#allocation2 + $0x360] sm:$0xff] }
 0x1a9   :  { %v1657_v0 = vmul.f32 0.6931472, %v2873_v55  ;;  %2882 = vlog2.f32 %v1691_v39  ;;  %v384_v54 = vand.u32 2147483647, %v4448_v9  ;;  %v1697_v16 = vand.u32 2147483647, %v2869_v33 }
 0x1aa   :  { %v2875_v20 = vpop.eup %2874  ;;  %2884 = vlog2.f32 %v1700_v61  ;;  %v1686_v46 = vadd.f32 1.0, %v1685_v57  ;;  %vm4463_vm3 = vcmp.lt.f32.partialorder %v1688_v53, 0.0004427343  ;;  %v743_v10 = vmul.f32 1.442695, %v511_v4 }
 0x1ab   :  { %v1663_v3 = vsel %vm4438_vm0, %v1660_v21, %v1657_v0  ;;  %v1666_v43 = vmul.f32 0.6931472, %v2875_v20  ;;  %2886 = vpow2.f32 %v741_v50  ;;  %v4459_v38 = vpop.eup %2876  ;;  %v1695_v13 = vadd.f32 1.0, %v1694_v60  ;;  %v4502_v20 = vld [vmem:[#allocation2 + $0x368] sm:$0xff] }
 0x1ac   :  { %v2039_v40 = vadd.f32 %v1663_v3, %v247_v42  ;;  %v1709_v27 = vadd.f32 1.0, %v4459_v38  ;;  %v1712_v32 = vmul.f32 -0.5, %v4459_v38  ;;  %v1704_v63 = vadd.f32 1.0, %v1703_v49 }
 0x1ad   :  { %v2879_v12 = vpop.eup %2878  ;;  %v1672_v25 = vsel %vm4442_vm1, %v1669_v28, %v1666_v43  ;;  %vm4477_vm4 = vcmp.lt.f32.partialorder %v1697_v16, 0.0004427343  ;;  %v1706_v37 = vand.u32 2147483647, %v4446_v34  ;;  %v512_v8 = vsub.f32 0.0, %v384_v54 }
 0x1ae   :  { %v2440_v2 = vadd.f32 -0.6931472, %v2039_v40  ;;  %v2040_v29 = vadd.f32 %v1672_v25, %v248_v6  ;;  %v1675_v42 = vmul.f32 0.6931472, %v2879_v12  ;;  %2888 = vlog2.f32 %v1709_v27 }
 0x1af   :  { %v1713_v6 = vadd.f32 1.0, %v1712_v32  ;;  %2890 = vpow2.f32 %v743_v10  ;;  %v1687_v47 = vmul.f32 %v2867_v23, %v1686_v46  ;;  %v745_v1 = vmul.f32 1.442695, %v512_v8  ;;  %v4530_v8 = vld [vmem:[#allocation2 + $0x378] sm:$0xff] }
 0x1b0   :  { %2295 = vst [vmem:[#allocation5 + $0x300] sm:$0xff] %v2440_v2  ;;  %v2441_v36 = vadd.f32 -0.6931472, %v2040_v29  ;;  %v1681_v56 = vsel %vm4451_vm2, %v1678_v24, %v1675_v42  ;;  %v385_v21 = vand.u32 2147483647, %v4471_v35  ;;  %v1696_v5 = vmul.f32 %v2869_v33, %v1695_v13  ;;  %v4524_v42 = vld [vmem:[#allocation2 + $0x370] sm:$0xff] }
 0x1b1   :  { %v2041_v44 = vadd.f32 %v1681_v56, %v249_v18  ;;  %v1705_v11 = vmul.f32 %v4446_v34, %v1704_v63  ;;  %v386_v28 = vand.u32 2147483647, %v4475_v14  ;;  %v387_v57 = vand.u32 2147483647, %v4482_v62 }
 0x1b2   :  { %v2881_v52 = vpop.eup %2880  ;;  %2296 = vst [vmem:[#allocation5 + $0x308] sm:$0xff] %v2441_v36  ;;  %2892 = vpow2.f32 %v745_v1  ;;  %v513_v53 = vsub.f32 0.0, %v385_v21  ;;  %vm4492_vm5 = vcmp.lt.f32.partialorder %v1706_v37, 0.0004427343  ;;  %v1714_v61 = vmul.f32 %v4459_v38, %v1713_v6  ;;  %v4532_v36 = vld [vmem:[#allocation2 + $0x380] sm:$0xff] }
 0x1b3   :  { %v2883_v39 = vpop.eup %2882  ;;  %v2442_v50 = vadd.f32 -0.6931472, %v2041_v44  ;;  %v1684_v55 = vmul.f32 0.6931472, %v2881_v52  ;;  %v1715_v33 = vand.u32 2147483647, %v4459_v38 }
 0x1b4   :  { %v2885_v15 = vpop.eup %2884  ;;  %v1693_v18 = vmul.f32 0.6931472, %v2883_v39  ;;  %v747_v59 = vmul.f32 1.442695, %v513_v53  ;;  %v514_v60 = vsub.f32 0.0, %v386_v28  ;;  %v515_v3 = vsub.f32 0.0, %v387_v57 }
 0x1b5   :  { %v4498_v34 = vpop.eup %2886  ;;  %2297 = vst [vmem:[#allocation5 + $0x310] sm:$0xff] %v2442_v50  ;;  %v1690_v4 = vsel %vm4463_vm3, %v1687_v47, %v1684_v55  ;;  %v1702_v0 = vmul.f32 0.6931472, %v2885_v15  ;;  %vm4517_vm6 = vcmp.lt.f32.partialorder %v1715_v33, 0.0004427343  ;;  %v254_v27 = vmax.f32 %v4415_v31, 0.0 }
 0x1b6   :  { %v2042_v24 = vadd.f32 %v1690_v4, %v250_v22  ;;  %v1699_v49 = vsel %vm4477_vm4, %v1696_v5, %v1693_v18  ;;  %v1718_v54 = vadd.f32 1.0, %v4498_v34  ;;  %v1721_v38 = vmul.f32 -0.5, %v4498_v34 }
 0x1b7   :  { %v2043_v43 = vadd.f32 %v1699_v49, %v251_v58  ;;  %v1708_v16 = vsel %vm4492_vm5, %v1705_v11, %v1702_v0  ;;  %2894 = vpow2.f32 %v747_v59  ;;  %v388_v22 = vand.u32 2147483647, %v4502_v20 }
 0x1b8   :  { %v2443_v40 = vadd.f32 -0.6931472, %v2042_v24  ;;  %v2044_v45 = vadd.f32 %v1708_v16, %v252_v26  ;;  %2896 = vlog2.f32 %v1718_v54  ;;  %v2889_v46 = vpop.eup %2888  ;;  %v749_v41 = vmul.f32 1.442695, %v514_v60 }
 0x1b9   :  { %v2444_v17 = vadd.f32 -0.6931472, %v2043_v43  ;;  %v2891_v58 = vpop.eup %2890  ;;  %v1711_v25 = vmul.f32 0.6931472, %v2889_v46  ;;  %v751_v13 = vmul.f32 1.442695, %v515_v3 }
 0x1ba   :  { %2298 = vst [vmem:[#allocation5 + $0x318] sm:$0xff] %v2443_v40  ;;  %v2445_v12 = vadd.f32 -0.6931472, %v2044_v45  ;;  %v1722_v51 = vadd.f32 1.0, %v1721_v38  ;;  %v1727_v26 = vadd.f32 1.0, %v2891_v58  ;;  %2898 = vpow2.f32 %v749_v41 }
 0x1bb   :  { %2299 = vst [vmem:[#allocation5 + $0x320] sm:$0xff] %v2444_v17  ;;  %v1717_v32 = vsel %vm4517_vm6, %v1714_v61, %v1711_v25  ;;  %v1730_v2 = vmul.f32 -0.5, %v2891_v58  ;;  %2900 = vpow2.f32 %v751_v13  ;;  %v516_v29 = vsub.f32 0.0, %v388_v22  ;;  %v4557_v22 = vld [vmem:[#allocation2 + $0x388] sm:$0xff] }
 0x1bc   :  { %2300 = vst [vmem:[#allocation5 + $0x328] sm:$0xff] %v2445_v12  ;;  %v2893_v63 = vpop.eup %2892  ;;  %v2045_v30 = vadd.f32 %v1717_v32, %v253_v7  ;;  %v255_v37 = vmax.f32 %v4428_v48, 0.0  ;;  %2902 = vlog2.f32 %v1727_v26  ;;  %v256_v31 = vmax.f32 %v4448_v9, 0.0 }
 0x1bd   :  { %v1724_v56 = vand.u32 2147483647, %v4498_v34  ;;  %v1736_v6 = vadd.f32 1.0, %v2893_v63  ;;  %v257_v44 = vmax.f32 %v4471_v35, 0.0  ;;  %v753_v47 = vmul.f32 1.442695, %v516_v29 }
 0x1be   :  { %v2446_v1 = vadd.f32 -0.6931472, %v2045_v30  ;;  %v1723_v21 = vmul.f32 %v4498_v34, %v1722_v51  ;;  %v258_v19 = vmax.f32 %v4475_v14, 0.0  ;;  %v389_v7 = vand.u32 2147483647, %v4524_v42 }
 0x1bf   :  { %v1731_v52 = vadd.f32 1.0, %v1730_v2  ;;  %v1733_v5 = vand.u32 2147483647, %v2891_v58  ;;  %2904 = vlog2.f32 %v1736_v6  ;;  %v390_v11 = vand.u32 2147483647, %v4530_v8 }
 0x1c0   :  { %2301 = vst [vmem:[#allocation5 + $0x330] sm:$0xff] %v2446_v1  ;;  %v1739_v57 = vmul.f32 -0.5, %v2893_v63  ;;  %2906 = vpow2.f32 %v753_v47  ;;  %v517_v39 = vsub.f32 0.0, %v389_v7  ;;  %v391_v50 = vand.u32 2147483647, %v4532_v36  ;;  %v4607_v1 = vld [vmem:[#allocation2 + $0x3a8] sm:$0xff] }
 0x1c1   :  { %v2895_v28 = vpop.eup %2894  ;;  %vm4541_vm7 = vcmp.lt.f32.partialorder %v1724_v56, 0.0004427343  ;;  %v1742_v15 = vand.u32 2147483647, %v2893_v63  ;;  %v259_v23 = vmax.f32 %v4482_v62, 0.0  ;;  %v518_v34 = vsub.f32 0.0, %v390_v11 }
 0x1c2   :  { %v2897_v55 = vpop.eup %2896  ;;  %v1745_v18 = vadd.f32 1.0, %v2895_v28  ;;  %v755_v33 = vmul.f32 1.442695, %v517_v39  ;;  %v519_v4 = vsub.f32 0.0, %v391_v50  ;;  %v1732_v0 = vmul.f32 %v2891_v58, %v1731_v52  ;;  %v4563_v56 = vld [vmem:[#allocation2 + $0x390] sm:$0xff] }
 0x1c3   :  { %v1720_v61 = vmul.f32 0.6931472, %v2897_v55  ;;  %vm4546_vm8 = vcmp.lt.f32.partialorder %v1733_v5, 0.0004427343  ;;  %v260_v60 = vmax.f32 %v4502_v20, 0.0  ;;  %v1740_v54 = vadd.f32 1.0, %v1739_v57 }
 0x1c4   :  { %2908 = vlog2.f32 %v1745_v18  ;;  %v2899_v24 = vpop.eup %2898  ;;  %v1748_v3 = vmul.f32 -0.5, %v2895_v28  ;;  %vm4553_vm9 = vcmp.lt.f32.partialorder %v1742_v15, 0.0004427343  ;;  %v757_v45 = vmul.f32 1.442695, %v518_v34  ;;  %v4583_v15 = vld [vmem:[#allocation2 + $0x398] sm:$0xff] }
 0x1c5   :  { %v1726_v49 = vsel %vm4541_vm7, %v1723_v21, %v1720_v61  ;;  %2910 = vpow2.f32 %v755_v33  ;;  %v2901_v43 = vpop.eup %2900  ;;  %v1754_v40 = vadd.f32 1.0, %v2899_v24  ;;  %v1751_v17 = vand.u32 2147483647, %v2895_v28 }
 0x1c6   :  { %v2046_v16 = vadd.f32 %v1726_v49, %v254_v27  ;;  %v2903_v46 = vpop.eup %2902  ;;  %v1763_v10 = vadd.f32 1.0, %v2901_v43  ;;  %v261_v41 = vmax.f32 %v4524_v42, 0.0  ;;  %v759_v58 = vmul.f32 1.442695, %v519_v4 }
 0x1c7   :  { %v1729_v25 = vmul.f32 0.6931472, %v2903_v46  ;;  %2912 = vlog2.f32 %v1754_v40  ;;  %v1757_v13 = vmul.f32 -0.5, %v2899_v24  ;;  %v1741_v51 = vmul.f32 %v2893_v63, %v1740_v54 }
 0x1c8   :  { %v2447_v12 = vadd.f32 -0.6931472, %v2046_v16  ;;  %v1749_v27 = vadd.f32 1.0, %v1748_v3  ;;  %v1760_v26 = vand.u32 2147483647, %v2899_v24  ;;  %2914 = vlog2.f32 %v1763_v10 }
 0x1c9   :  { %v2905_v32 = vpop.eup %2904  ;;  %v1735_v2 = vsel %vm4546_vm8, %v1732_v0, %v1729_v25  ;;  %v1766_v29 = vmul.f32 -0.5, %v2901_v43  ;;  %2916 = vpow2.f32 %v757_v45  ;;  %v392_v30 = vand.u32 2147483647, %v4557_v22 }
 0x1ca   :  { %2302 = vst [vmem:[#allocation5 + $0x338] sm:$0xff] %v2447_v12  ;;  %v4565_v6 = vpop.eup %2906  ;;  %v2047_v47 = vadd.f32 %v1735_v2, %v255_v37  ;;  %v1738_v63 = vmul.f32 0.6931472, %v2905_v32  ;;  %vm4569_vm10 = vcmp.lt.f32.partialorder %v1751_v17, 0.0004427343  ;;  %2918 = vpow2.f32 %v759_v58 }
 0x1cb   :  { %v1758_v21 = vadd.f32 1.0, %v1757_v13  ;;  %v1769_v7 = vand.u32 2147483647, %v2901_v43  ;;  %v1772_v52 = vadd.f32 1.0, %v4565_v6  ;;  %v520_v5 = vsub.f32 0.0, %v392_v30 }
 0x1cc   :  { %v2448_v11 = vadd.f32 -0.6931472, %v2047_v47  ;;  %v1744_v57 = vsel %vm4553_vm9, %v1741_v51, %v1738_v63  ;;  %v1750_v39 = vmul.f32 %v2895_v28, %v1749_v27  ;;  %v393_v50 = vand.u32 2147483647, %v4563_v56  ;;  %v4605_v63 = vld [vmem:[#allocation2 + $0x3a0] sm:$0xff] }
 0x1cd   :  { %v2048_v37 = vadd.f32 %v1744_v57, %v256_v31  ;;  %vm4579_vm11 = vcmp.lt.f32.partialorder %v1760_v26, 0.0004427343  ;;  %v1767_v53 = vadd.f32 1.0, %v1766_v29  ;;  %2920 = vlog2.f32 %v1772_v52 }
 0x1ce   :  { %v2909_v48 = vpop.eup %2908  ;;  %2303 = vst [vmem:[#allocation5 + $0x340] sm:$0xff] %v2448_v11  ;;  %v1775_v33 = vmul.f32 -0.5, %v4565_v6  ;;  %v761_v28 = vmul.f32 1.442695, %v520_v5  ;;  %v521_v34 = vsub.f32 0.0, %v393_v50  ;;  %v1759_v0 = vmul.f32 %v2899_v24, %v1758_v21 }
 0x1cf   :  { %v2911_v18 = vpop.eup %2910  ;;  %v1747_v61 = vmul.f32 0.6931472, %v2909_v48  ;;  %v2449_v4 = vadd.f32 -0.6931472, %v2048_v37  ;;  %vm4586_vm12 = vcmp.lt.f32.partialorder %v1769_v7, 0.0004427343  ;;  %v1768_v38 = vmul.f32 %v2901_v43, %v1767_v53 }
 0x1d0   :  { %v1781_v31 = vadd.f32 1.0, %v2911_v18  ;;  %v1784_v49 = vmul.f32 -0.5, %v2911_v18  ;;  %2922 = vpow2.f32 %v761_v28  ;;  %v763_v54 = vmul.f32 1.442695, %v521_v34 }
 0x1d1   :  { %v1753_v59 = vsel %vm4569_vm10, %v1750_v39, %v1747_v61  ;;  %v2913_v3 = vpop.eup %2912  ;;  %2304 = vst [vmem:[#allocation5 + $0x348] sm:$0xff] %v2449_v4  ;;  %v394_v24 = vand.u32 2147483647, %v4583_v15  ;;  %v1776_v46 = vadd.f32 1.0, %v1775_v33  ;;  %v1778_v17 = vand.u32 2147483647, %v4565_v6 }
 0x1d2   :  { %v2049_v16 = vadd.f32 %v1753_v59, %v257_v44  ;;  %2924 = vlog2.f32 %v1781_v31  ;;  %v2915_v40 = vpop.eup %2914  ;;  %v1756_v45 = vmul.f32 0.6931472, %v2913_v3  ;;  %v1787_v25 = vand.u32 2147483647, %v2911_v18  ;;  %v4618_v39 = vld [vmem:[#allocation2 + $0x3b0] sm:$0xff]  ;;  %v4687_v3 = vld [vmem:[#allocation2 + $0x3d8] sm:$0xff] }
 0x1d3   :  { %2926 = vpow2.f32 %v763_v54  ;;  %v2917_v10 = vpop.eup %2916  ;;  %v1765_v12 = vmul.f32 0.6931472, %v2915_v40  ;;  %v1785_v35 = vadd.f32 1.0, %v1784_v49  ;;  %v522_v43 = vsub.f32 0.0, %v394_v24 }
 0x1d4   :  { %v2450_v58 = vadd.f32 -0.6931472, %v2049_v16  ;;  %v2919_v13 = vpop.eup %2918  ;;  %v1762_v51 = vsel %vm4579_vm11, %v1759_v0, %v1756_v45  ;;  %v1790_v44 = vadd.f32 1.0, %v2917_v10  ;;  %v1793_v32 = vmul.f32 -0.5, %v2917_v10 }
 0x1d5   :  { %v2050_v27 = vadd.f32 %v1762_v51, %v258_v19  ;;  %v1771_v26 = vsel %vm4586_vm12, %v1768_v38, %v1765_v12  ;;  %v1799_v2 = vadd.f32 1.0, %v2919_v13  ;;  %v1777_v30 = vmul.f32 %v4565_v6, %v1776_v46  ;;  %v4664_v19 = vld [vmem:[#allocation2 + $0x3d0] sm:$0xff] }
 0x1d6   :  { %2305 = vst [vmem:[#allocation5 + $0x350] sm:$0xff] %v2450_v58  ;;  %v2051_v29 = vadd.f32 %v1771_v26, %v259_v23  ;;  %2928 = vlog2.f32 %v1790_v44  ;;  %v1802_v47 = vmul.f32 -0.5, %v2919_v13  ;;  %vm4609_vm13 = vcmp.lt.f32.partialorder %v1778_v17, 0.0004427343  ;;  %v4649_v58 = vld [vmem:[#allocation2 + $0x3c0] sm:$0xff]  ;;  %v4653_v44 = vld [vmem:[#allocation2 + $0x3c8] sm:$0xff] }
 0x1d7   :  { %v2921_v21 = vpop.eup %2920  ;;  %v2451_v7 = vadd.f32 -0.6931472, %v2050_v27  ;;  %vm4613_vm14 = vcmp.lt.f32.partialorder %v1787_v25, 0.0004427343  ;;  %2930 = vlog2.f32 %v1799_v2  ;;  %v765_v6 = vmul.f32 1.442695, %v522_v43 }
 0x1d8   :  { %v2452_v62 = vadd.f32 -0.6931472, %v2051_v29  ;;  %v1774_v23 = vmul.f32 0.6931472, %v2921_v21  ;;  %v1786_v52 = vmul.f32 %v2911_v18, %v1785_v35  ;;  %v1794_v5 = vadd.f32 1.0, %v1793_v32 }
 0x1d9   :  { %2306 = vst [vmem:[#allocation5 + $0x358] sm:$0xff] %v2451_v7  ;;  %v1796_v11 = vand.u32 2147483647, %v2917_v10  ;;  %v395_v57 = vand.u32 2147483647, %v4605_v63  ;;  %v1803_v37 = vadd.f32 1.0, %v1802_v47  ;;  %2932 = vpow2.f32 %v765_v6 }
 0x1da   :  { %v4620_v50 = vpop.eup %2922  ;;  %2307 = vst [vmem:[#allocation5 + $0x360] sm:$0xff] %v2452_v62  ;;  %v1780_v48 = vsel %vm4609_vm13, %v1777_v30, %v1774_v23  ;;  %v396_v55 = vand.u32 2147483647, %v4607_v1  ;;  %v1805_v61 = vand.u32 2147483647, %v2919_v13  ;;  %v262_v49 = vmax.f32 %v4530_v8, 0.0 }
 0x1db   :  { %v2052_v18 = vadd.f32 %v1780_v48, %v260_v60  ;;  %v1808_v33 = vadd.f32 1.0, %v4620_v50  ;;  %v1811_v28 = vmul.f32 -0.5, %v4620_v50  ;;  %v523_v0 = vsub.f32 0.0, %v395_v57 }
 0x1dc   :  { %v2925_v53 = vpop.eup %2924  ;;  %v524_v9 = vsub.f32 0.0, %v396_v55  ;;  %v397_v31 = vand.u32 2147483647, %v4618_v39  ;;  %v263_v54 = vmax.f32 %v4532_v36, 0.0  ;;  %v1795_v60 = vmul.f32 %v2917_v10, %v1794_v5  ;;  %v4647_v10 = vld [vmem:[#allocation2 + $0x3b8] sm:$0xff] }
 0x1dd   :  { %v4629_v34 = vpop.eup %2926  ;;  %v1783_v4 = vmul.f32 0.6931472, %v2925_v53  ;;  %v2453_v59 = vadd.f32 -0.6931472, %v2052_v18  ;;  %2934 = vlog2.f32 %v1808_v33  ;;  %vm4636_vm15 = vcmp.lt.f32.partialorder %v1796_v11, 0.0004427343 }
 0x1de   :  { %v1817_v16 = vadd.f32 1.0, %v4629_v34  ;;  %v1804_v24 = vmul.f32 %v2919_v13, %v1803_v37  ;;  %v767_v40 = vmul.f32 1.442695, %v523_v0  ;;  %v769_v8 = vmul.f32 1.442695, %v524_v9 }
 0x1df   :  { %v1789_v20 = vsel %vm4613_vm14, %v1786_v52, %v1783_v4  ;;  %2308 = vst [vmem:[#allocation5 + $0x368] sm:$0xff] %v2453_v59  ;;  %vm4643_vm0 = vcmp.lt.f32.partialorder %v1805_v61, 0.0004427343  ;;  %v1812_v46 = vadd.f32 1.0, %v1811_v28  ;;  %v525_v17 = vsub.f32 0.0, %v397_v31 }
 0x1e0   :  { %v2053_v38 = vadd.f32 %v1789_v20, %v261_v41  ;;  %v2929_v45 = vpop.eup %2928  ;;  %2936 = vlog2.f32 %v1817_v16  ;;  %v1820_v42 = vmul.f32 -0.5, %v4629_v34  ;;  %v264_v13 = vmax.f32 %v4557_v22, 0.0 }
 0x1e1   :  { %v2931_v12 = vpop.eup %2930  ;;  %v1792_v51 = vmul.f32 0.6931472, %v2929_v45  ;;  %2938 = vpow2.f32 %v767_v40  ;;  %v771_v35 = vmul.f32 1.442695, %v525_v17  ;;  %v1814_v27 = vand.u32 2147483647, %v4620_v50 }
 0x1e2   :  { %v2454_v25 = vadd.f32 -0.6931472, %v2053_v38  ;;  %v1801_v41 = vmul.f32 0.6931472, %v2931_v12  ;;  %2940 = vpow2.f32 %v769_v8  ;;  %v398_v26 = vand.u32 2147483647, %v4647_v10 }
 0x1e3   :  { %v1798_v43 = vsel %vm4636_vm15, %v1795_v60, %v1792_v51  ;;  %v399_v32 = vand.u32 2147483647, %v4649_v58  ;;  %v2933_v2 = vpop.eup %2932  ;;  %v1823_v22 = vand.u32 2147483647, %v4629_v34  ;;  %2942 = vpow2.f32 %v771_v35 }
 0x1e4   :  { %2309 = vst [vmem:[#allocation5 + $0x370] sm:$0xff] %v2454_v25  ;;  %v2054_v29 = vadd.f32 %v1798_v43, %v262_v49  ;;  %v1807_v30 = vsel %vm4643_vm0, %v1804_v24, %v1801_v41  ;;  %v1813_v21 = vmul.f32 %v4620_v50, %v1812_v46  ;;  %v1821_v7 = vadd.f32 1.0, %v1820_v42 }
 0x1e5   :  { %v2055_v47 = vadd.f32 %v1807_v30, %v263_v54  ;;  %v1826_v14 = vadd.f32 1.0, %v2933_v2  ;;  %v526_v23 = vsub.f32 0.0, %v398_v26  ;;  %v527_v6 = vsub.f32 0.0, %v399_v32  ;;  %v4701_v26 = vld [vmem:[#allocation2 + $0x3e0] sm:$0xff] }
 0x1e6   :  { %v2455_v62 = vadd.f32 -0.6931472, %v2054_v29  ;;  %v400_v52 = vand.u32 2147483647, %v4653_v44  ;;  %vm4667_vm1 = vcmp.lt.f32.partialorder %v1814_v27, 0.0004427343  ;;  %v1822_v18 = vmul.f32 %v4629_v34, %v1821_v7 }
 0x1e7   :  { %v2935_v5 = vpop.eup %2934  ;;  %v2456_v11 = vadd.f32 -0.6931472, %v2055_v47  ;;  %2944 = vlog2.f32 %v1826_v14  ;;  %v1829_v48 = vmul.f32 -0.5, %v2933_v2  ;;  %v773_v50 = vmul.f32 1.442695, %v526_v23 }
 0x1e8   :  { %2310 = vst [vmem:[#allocation5 + $0x378] sm:$0xff] %v2455_v62  ;;  %v1810_v37 = vmul.f32 0.6931472, %v2935_v5  ;;  %v775_v55 = vmul.f32 1.442695, %v527_v6  ;;  %v265_v53 = vmax.f32 %v4563_v56, 0.0 }
 0x1e9   :  { %2311 = vst [vmem:[#allocation5 + $0x380] sm:$0xff] %v2456_v11  ;;  %v401_v61 = vand.u32 2147483647, %v4664_v19  ;;  %vm4676_vm2 = vcmp.lt.f32.partialorder %v1823_v22, 0.0004427343  ;;  %2946 = vpow2.f32 %v773_v50  ;;  %v528_v0 = vsub.f32 0.0, %v400_v52 }
 0x1ea   :  { %v2937_v33 = vpop.eup %2936  ;;  %v1816_v28 = vsel %vm4667_vm1, %v1813_v21, %v1810_v37  ;;  %v266_v56 = vmax.f32 %v4583_v15, 0.0  ;;  %2948 = vpow2.f32 %v775_v55  ;;  %v1830_v49 = vadd.f32 1.0, %v1829_v48 }
 0x1eb   :  { %v4680_v9 = vpop.eup %2938  ;;  %v2056_v31 = vadd.f32 %v1816_v28, %v264_v13  ;;  %v1819_v59 = vmul.f32 0.6931472, %v2937_v33  ;;  %v1832_v54 = vand.u32 2147483647, %v2933_v2  ;;  %v529_v40 = vsub.f32 0.0, %v401_v61 }
 0x1ec   :  { %v4683_v34 = vpop.eup %2940  ;;  %v1835_v20 = vadd.f32 1.0, %v4680_v9  ;;  %v1838_v60 = vmul.f32 -0.5, %v4680_v9  ;;  %v267_v45 = vmax.f32 %v4605_v63, 0.0  ;;  %v777_v36 = vmul.f32 1.442695, %v528_v0 }
 0x1ed   :  { %v2457_v16 = vadd.f32 -0.6931472, %v2056_v31  ;;  %v1825_v38 = vsel %vm4676_vm2, %v1822_v18, %v1819_v59  ;;  %v1844_v24 = vadd.f32 1.0, %v4683_v34  ;;  %v2943_v8 = vpop.eup %2942  ;;  %v268_v46 = vmax.f32 %v4607_v1, 0.0  ;;  %v4751_v1 = vld [vmem:[#allocation2 + $0x3f8] sm:$0xff] }
 0x1ee   :  { %v2057_v15 = vadd.f32 %v1825_v38, %v265_v53  ;;  %2950 = vlog2.f32 %v1835_v20  ;;  %v1853_v17 = vadd.f32 1.0, %v2943_v8  ;;  %v402_v12 = vand.u32 2147483647, %v4687_v3 }
 0x1ef   :  { %2312 = vst [vmem:[#allocation5 + $0x388] sm:$0xff] %v2457_v16  ;;  %2952 = vlog2.f32 %v1844_v24  ;;  %v1831_v51 = vmul.f32 %v2933_v2, %v1830_v49  ;;  %v1847_v42 = vmul.f32 -0.5, %v4683_v34  ;;  %v269_v41 = vmax.f32 %v4618_v39, 0.0  ;;  %v4704_v2 = vld [vmem:[#allocation2 + $0x3e8] sm:$0xff] }
 0x1f0   :  { %v2458_v25 = vadd.f32 -0.6931472, %v2057_v15  ;;  %vm4697_vm3 = vcmp.lt.f32.partialorder %v1832_v54, 0.0004427343  ;;  %v1839_v43 = vadd.f32 1.0, %v1838_v60  ;;  %2954 = vlog2.f32 %v1853_v17  ;;  %v4727_v54 = vld [vmem:[#allocation2 + $0x3f0] sm:$0xff] }
 0x1f1   :  { %v2945_v13 = vpop.eup %2944  ;;  %v779_v27 = vmul.f32 1.442695, %v529_v40  ;;  %v1856_v29 = vmul.f32 -0.5, %v2943_v8  ;;  %v270_v30 = vmax.f32 %v4647_v10, 0.0  ;;  %2956 = vpow2.f32 %v777_v36 }
 0x1f2   :  { %2313 = vst [vmem:[#allocation5 + $0x390] sm:$0xff] %v2458_v25  ;;  %v1828_v32 = vmul.f32 0.6931472, %v2945_v13  ;;  %v1841_v22 = vand.u32 2147483647, %v4680_v9  ;;  %v271_v47 = vmax.f32 %v4649_v58, 0.0  ;;  %v1840_v11 = vmul.f32 %v4680_v9, %v1839_v43 }
 0x1f3   :  { %2958 = vpow2.f32 %v779_v27  ;;  %v530_v21 = vsub.f32 0.0, %v402_v12  ;;  %v2947_v7 = vpop.eup %2946  ;;  %v1848_v62 = vadd.f32 1.0, %v1847_v42  ;;  %v1850_v23 = vand.u32 2147483647, %v4683_v34 }
 0x1f4   :  { %v1834_v14 = vsel %vm4697_vm3, %v1831_v51, %v1828_v32  ;;  %v403_v6 = vand.u32 2147483647, %v4701_v26  ;;  %v4712_v52 = vpop.eup %2948  ;;  %v1862_v57 = vadd.f32 1.0, %v2947_v7  ;;  %v404_v48 = vand.u32 2147483647, %v4704_v2 }
 0x1f5   :  { %v2058_v5 = vadd.f32 %v1834_v14, %v266_v56  ;;  %v1857_v37 = vadd.f32 1.0, %v1856_v29  ;;  %v1859_v50 = vand.u32 2147483647, %v2943_v8  ;;  %v1871_v55 = vadd.f32 1.0, %v4712_v52 }
 0x1f6   :  { %v781_v53 = vmul.f32 1.442695, %v530_v21  ;;  %2960 = vlog2.f32 %v1862_v57  ;;  %v1865_v61 = vmul.f32 -0.5, %v2947_v7  ;;  %v1874_v33 = vmul.f32 -0.5, %v4712_v52 }
 0x1f7   :  { %v2459_v18 = vadd.f32 -0.6931472, %v2058_v5  ;;  %vm4718_vm4 = vcmp.lt.f32.partialorder %v1841_v22, 0.0004427343  ;;  %v1849_v0 = vmul.f32 %v4683_v34, %v1848_v62  ;;  %2962 = vlog2.f32 %v1871_v55 }
 0x1f8   :  { %v2951_v28 = vpop.eup %2950  ;;  %v531_v9 = vsub.f32 0.0, %v403_v6  ;;  %vm4723_vm5 = vcmp.lt.f32.partialorder %v1850_v23, 0.0004427343  ;;  %2964 = vpow2.f32 %v781_v53  ;;  %v532_v49 = vsub.f32 0.0, %v404_v48 }
 0x1f9   :  { %v2953_v31 = vpop.eup %2952  ;;  %2314 = vst [vmem:[#allocation5 + $0x398] sm:$0xff] %v2459_v18  ;;  %v1837_v59 = vmul.f32 0.6931472, %v2951_v28  ;;  %v1858_v60 = vmul.f32 %v2943_v8, %v1857_v37  ;;  %vm4729_vm6 = vcmp.lt.f32.partialorder %v1859_v50, 0.0004427343  ;;  %v1866_v40 = vadd.f32 1.0, %v1865_v61 }
 0x1fa   :  { %v1846_v20 = vmul.f32 0.6931472, %v2953_v31  ;;  %v783_v34 = vmul.f32 1.442695, %v531_v9  ;;  %v2955_v38 = vpop.eup %2954  ;;  %v1868_v15 = vand.u32 2147483647, %v2947_v7 }
 0x1fb   :  { %v1843_v24 = vsel %vm4718_vm4, %v1840_v11, %v1837_v59  ;;  %v1875_v36 = vadd.f32 1.0, %v1874_v33  ;;  %v2957_v17 = vpop.eup %2956  ;;  %v1855_v8 = vmul.f32 0.6931472, %v2955_v38  ;;  %v785_v35 = vmul.f32 1.442695, %v532_v49 }
 0x1fc   :  { %v2059_v12 = vadd.f32 %v1843_v24, %v267_v45  ;;  %v1852_v25 = vsel %vm4723_vm5, %v1849_v0, %v1846_v20  ;;  %2966 = vpow2.f32 %v783_v34  ;;  %v1880_v13 = vadd.f32 1.0, %v2957_v17 }
 0x1fd   :  { %v2959_v51 = vpop.eup %2958  ;;  %v2060_v42 = vadd.f32 %v1852_v25, %v268_v46  ;;  %v405_v43 = vand.u32 2147483647, %v4727_v54  ;;  %v1861_v32 = vsel %vm4729_vm6, %v1858_v60, %v1855_v8  ;;  %v1877_v63 = vand.u32 2147483647, %v4712_v52 }
 0x1fe   :  { %v2460_v27 = vadd.f32 -0.6931472, %v2059_v12  ;;  %v1889_v45 = vadd.f32 1.0, %v2959_v51  ;;  %v2061_v22 = vadd.f32 %v1861_v32, %v269_v41  ;;  %vm4747_vm7 = vcmp.lt.f32.partialorder %v1868_v15, 0.0004427343 }
 0x1ff   :  { %v2461_v29 = vadd.f32 -0.6931472, %v2060_v42  ;;  %2968 = vlog2.f32 %v1880_v13  ;;  %v1867_v46 = vmul.f32 %v2947_v7, %v1866_v40  ;;  %v1883_v14 = vmul.f32 -0.5, %v2957_v17 }
 0x200   :  { %2315 = vst [vmem:[#allocation5 + $0x3a0] sm:$0xff] %v2460_v27  ;;  %2970 = vlog2.f32 %v1889_v45  ;;  %v1892_v62 = vmul.f32 -0.5, %v2959_v51  ;;  %v2961_v23 = vpop.eup %2960  ;;  %v2462_v6 = vadd.f32 -0.6931472, %v2061_v22  ;;  %v1876_v5 = vmul.f32 %v4712_v52, %v1875_v36 }
 0x201   :  { %2316 = vst [vmem:[#allocation5 + $0x3a8] sm:$0xff] %v2461_v29  ;;  %2972 = vpow2.f32 %v785_v35  ;;  %v533_v39 = vsub.f32 0.0, %v405_v43  ;;  %v2963_v41 = vpop.eup %2962  ;;  %v1864_v11 = vmul.f32 0.6931472, %v2961_v23  ;;  %vm4754_vm8 = vcmp.lt.f32.partialorder %v1877_v63, 0.0004427343 }
 0x202   :  { %v406_v48 = vand.u32 2147483647, %v4751_v1  ;;  %v2965_v37 = vpop.eup %2964  ;;  %2317 = vst [vmem:[#allocation5 + $0x3b0] sm:$0xff] %v2462_v6  ;;  %v1873_v7 = vmul.f32 0.6931472, %v2963_v41  ;;  %v1884_v18 = vadd.f32 1.0, %v1883_v14 }
 0x203   :  { %v1886_v50 = vand.u32 2147483647, %v2957_v17  ;;  %v787_v55 = vmul.f32 1.442695, %v533_v39  ;;  %v1870_v53 = vsel %vm4747_vm7, %v1867_v46, %v1864_v11  ;;  %v1893_v52 = vadd.f32 1.0, %v1892_v62 }
 0x204   :  { %v1898_v61 = vadd.f32 1.0, %v2965_v37  ;;  %v2062_v33 = vadd.f32 %v1870_v53, %v270_v30  ;;  %v1879_v28 = vsel %vm4754_vm8, %v1876_v5, %v1873_v7  ;;  %v534_v4 = vsub.f32 0.0, %v406_v48 }
 0x205   :  { %2974 = vpow2.f32 %v787_v55  ;;  %v2063_v9 = vadd.f32 %v1879_v28, %v271_v47  ;;  %v1895_v31 = vand.u32 2147483647, %v2959_v51  ;;  %v1901_v56 = vmul.f32 -0.5, %v2965_v37 }
 0x206   :  { %v2967_v0 = vpop.eup %2966  ;;  %2976 = vlog2.f32 %v1898_v61  ;;  %v2463_v59 = vadd.f32 -0.6931472, %v2062_v33  ;;  %v272_v60 = vmax.f32 %v4653_v44, 0.0  ;;  %v1885_v16 = vmul.f32 %v2957_v17, %v1884_v18 }
 0x207   :  { %v1907_v49 = vadd.f32 1.0, %v2967_v0  ;;  %v2464_v20 = vadd.f32 -0.6931472, %v2063_v9  ;;  %v789_v10 = vmul.f32 1.442695, %v534_v4  ;;  %v273_v38 = vmax.f32 %v4664_v19, 0.0 }
 0x208   :  { %2318 = vst [vmem:[#allocation5 + $0x3b8] sm:$0xff] %v2463_v59  ;;  %vm4768_vm9 = vcmp.lt.f32.partialorder %v1886_v50, 0.0004427343  ;;  %v1894_v58 = vmul.f32 %v2959_v51, %v1893_v52  ;;  %vm1896_vm10 = vcmp.lt.f32.partialorder %v1895_v31, 0.0004427343  ;;  %v1910_v40 = vmul.f32 -0.5, %v2967_v0 }
 0x209   :  { %v2969_v30 = vpop.eup %2968  ;;  %2978 = vlog2.f32 %v1907_v49  ;;  %2319 = vst [vmem:[#allocation5 + $0x3c0] sm:$0xff] %v2464_v20  ;;  %v1902_v36 = vadd.f32 1.0, %v1901_v56  ;;  %v1904_v12 = vand.u32 2147483647, %v2965_v37  ;;  %v1913_v27 = vand.u32 2147483647, %v2967_v0 }
 0x20a   :  { %v2971_v47 = vpop.eup %2970  ;;  %v1882_v24 = vmul.f32 0.6931472, %v2969_v30  ;;  %2980 = vpow2.f32 %v789_v10  ;;  %v1911_v19 = vadd.f32 1.0, %v1910_v40  ;;  %v274_v29 = vmax.f32 %v4687_v3, 0.0 }
 0x20b   :  { %v2973_v15 = vpop.eup %2972  ;;  %v1891_v44 = vmul.f32 0.6931472, %v2971_v47  ;;  %v1903_v43 = vmul.f32 %v2965_v37, %v1902_v36  ;;  %vm1905_vm11 = vcmp.lt.f32.partialorder %v1904_v12, 0.0004427343  ;;  %v275_v46 = vmax.f32 %v4701_v26, 0.0 }
 0x20c   :  { %v1888_v17 = vsel %vm4768_vm9, %v1885_v16, %v1882_v24  ;;  %v1916_v25 = vadd.f32 1.0, %v2973_v15  ;;  %v1919_v32 = vmul.f32 -0.5, %v2973_v15  ;;  %v1912_v14 = vmul.f32 %v2967_v0, %v1911_v19 }
 0x20d   :  { %v2064_v8 = vadd.f32 %v1888_v17, %v272_v60  ;;  %v1897_v42 = vsel %vm1896_vm10, %v1894_v58, %v1891_v44  ;;  %vm1914_vm12 = vcmp.lt.f32.partialorder %v1913_v27, 0.0004427343  ;;  %v1922_v57 = vand.u32 2147483647, %v2973_v15 }
 0x20e   :  { %v2065_v13 = vadd.f32 %v1897_v42, %v273_v38  ;;  %2982 = vlog2.f32 %v1916_v25  ;;  %v1920_v6 = vadd.f32 1.0, %v1919_v32  ;;  %v276_v26 = vmax.f32 %v4704_v2, 0.0 }
 0x20f   :  { %v2975_v51 = vpop.eup %2974  ;;  %v2465_v35 = vadd.f32 -0.6931472, %v2064_v8  ;;  %vm1923_vm13 = vcmp.lt.f32.partialorder %v1922_v57, 0.0004427343  ;;  %v277_v31 = vmax.f32 %v4727_v54, 0.0  ;;  %v278_v30 = vmax.f32 %v4751_v1, 0.0 }
 0x210   :  { %v2977_v63 = vpop.eup %2976  ;;  %v2466_v45 = vadd.f32 -0.6931472, %v2065_v13  ;;  %v1925_v22 = vadd.f32 1.0, %v2975_v51  ;;  %v1928_v5 = vmul.f32 -0.5, %v2975_v51  ;;  %v1921_v50 = vmul.f32 %v2973_v15, %v1920_v6 }
 0x211   :  { %2320 = vst [vmem:[#allocation5 + $0x3c8] sm:$0xff] %v2465_v35  ;;  %v1900_v21 = vmul.f32 0.6931472, %v2977_v63  ;;  %v1931_v18 = vand.u32 2147483647, %v2975_v51 }
 0x212   :  { %2321 = vst [vmem:[#allocation5 + $0x3d0] sm:$0xff] %v2466_v45  ;;  %2984 = vlog2.f32 %v1925_v22  ;;  %v1929_v55 = vadd.f32 1.0, %v1928_v5 }
 0x213   :  { %v2979_v62 = vpop.eup %2978  ;;  %v1906_v23 = vsel %vm1905_vm11, %v1903_v43, %v1900_v21  ;;  %vm1932_vm14 = vcmp.lt.f32.partialorder %v1931_v18, 0.0004427343 }
 0x214   :  { %v2981_v39 = vpop.eup %2980  ;;  %v2066_v41 = vadd.f32 %v1906_v23, %v274_v29  ;;  %v1909_v11 = vmul.f32 0.6931472, %v2979_v62  ;;  %v1930_v4 = vmul.f32 %v2975_v51, %v1929_v55 }
 0x215   :  { %v1934_v48 = vadd.f32 1.0, %v2981_v39  ;;  %v1937_v52 = vmul.f32 -0.5, %v2981_v39  ;;  %v1940_v49 = vand.u32 2147483647, %v2981_v39 }
 0x216   :  { %v2467_v3 = vadd.f32 -0.6931472, %v2066_v41  ;;  %v1915_v37 = vsel %vm1914_vm12, %v1912_v14, %v1909_v11 }
 0x217   :  { %v2067_v7 = vadd.f32 %v1915_v37, %v275_v46  ;;  %2986 = vlog2.f32 %v1934_v48  ;;  %v1938_v59 = vadd.f32 1.0, %v1937_v52  ;;  %vm1941_vm15 = vcmp.lt.f32.partialorder %v1940_v49, 0.0004427343 }
 0x218   :  { %v2983_v53 = vpop.eup %2982  ;;  %2322 = vst [vmem:[#allocation5 + $0x3d8] sm:$0xff] %v2467_v3 }
 0x219   :  { %v2468_v61 = vadd.f32 -0.6931472, %v2067_v7  ;;  %v1918_v33 = vmul.f32 0.6931472, %v2983_v53  ;;  %v1939_v16 = vmul.f32 %v2981_v39, %v1938_v59 }
 0x21b   :  { %2323 = vst [vmem:[#allocation5 + $0x3e0] sm:$0xff] %v2468_v61  ;;  %v1924_v28 = vsel %vm1923_vm13, %v1921_v50, %v1918_v33 }
 0x21c   :  { %v2985_v0 = vpop.eup %2984  ;;  %v2068_v9 = vadd.f32 %v1924_v28, %v276_v26 }
 0x21d   :  { %v1927_v56 = vmul.f32 0.6931472, %v2985_v0 }
 0x21e   :  { %v2469_v20 = vadd.f32 -0.6931472, %v2068_v9 }
 0x21f   :  { %v1933_v60 = vsel %vm1932_vm14, %v1930_v4, %v1927_v56 }
 0x220   :  { %2324 = vst [vmem:[#allocation5 + $0x3e8] sm:$0xff] %v2469_v20  ;;  %v2069_v2 = vadd.f32 %v1933_v60, %v277_v31 }
 0x221   :  { %v2987_v10 = vpop.eup %2986 }
 0x222   :  { %v2470_v34 = vadd.f32 -0.6931472, %v2069_v2  ;;  %v1936_v38 = vmul.f32 0.6931472, %v2987_v10 }
 0x224   :  { %2325 = vst [vmem:[#allocation5 + $0x3f0] sm:$0xff] %v2470_v34  ;;  %v1942_v58 = vsel %vm1941_vm15, %v1939_v16, %v1936_v38 }
 0x225   :  { %v2070_v54 = vadd.f32 %v1942_v58, %v278_v30 }
 0x227   :  { %v2471_v47 = vadd.f32 -0.6931472, %v2070_v54 }
 0x229   :  { %2326 = vst [vmem:[#allocation5 + $0x3f8] sm:$0xff] %v2471_v47 }
 0x22a   :  { %3021 = shalt.err (!%p3018_p12)
}
 0x22b   :  { %s3022_s24 = scalar_lea.hbm %s4796_s1, 16384 }
 0x22c   :  { %p3023_p13 = scmp.ne.s32.totalorder %s4796_s1, %s3022_s24  ;;  %p3026_p0 = scmp.lt.u32.totalorder %s3022_s24, %s4796_s1 }
 0x22e   :  { %p3028_p1 = pnand %p3026_p0, %p3023_p13 }
 0x230   :  { %3031 = shalt.err (!%p3028_p1)
}
 0x231   :  { %2338 = dma.vmem_to_hbm [thread:$0]  %s2333_s20, 16384, %s4796_s1, [#allocation4], %s3037_s16, %s3037_s16, %s3038_s17  }
 0x232   :  { %3034 = dma.done.wait [#allocation4], 16384  }
 0x233   :  { %3035 = vsyncadd [#allocation4], 4294950912 }
 0x234   :  { %2342 = vsyncpa [#allocation3], 1 }
 0x235   :  { %2343 = vsyncpa [#allocation4], 1 }

</bundles_post_ra>
